<compile_context>
chip_gen: v7x
topology: tpu7x:2x2x1
jax: 0.10.0
libtpu: 0.0.40
codegen_flags: <defaults>
</compile_context>

<pallas_src>
import functools

import jax
import jax.numpy as jnp
from jax.experimental import pallas as pl
from jax.experimental.pallas import tpu as pltpu

RATIO = 3.0
EPS = 1e-6

# ---- histogram / output-packing layout ------------------------------------
HBINS = 28            # pass 1: one-octave bins, bin b <-> loss in [2^(b-20), 2^(b-19))
_EXP_BASE = 107       # biased exponent of 2^-20  (bin = (bits >> 23) - _EXP_BASE)
REFBINS = 32          # pass 2: linear sub-bins inside the threshold octave
_P1_POS, _P1_NEG, _P1_PPART = 120, 121, 122   # lanes of row 0 of the (8,128) block
_P2_CHI, _P2_SHI = 120, 121

_VMEM_LIMIT_BYTES = 40 * 1024 * 1024          # safe on v5e/v6e (128 MiB) and v7x (64 MiB)


def _bce_and_masks(pred_ref, pmap_ref, pmask_ref, hw, tile):
    """Shared per-tile element math (upcast, tail masking, BCE, pos/neg masks)."""
    p = jnp.clip(pred_ref[...].astype(jnp.float32), 0.0, 1.0)   # BCE requires p in [0,1]
    tgt = pmap_ref[...].astype(jnp.float32)
    msk = pmask_ref[...].astype(jnp.float32)
    _, bt = p.shape
    col = pl.program_id(0) * tile + jax.lax.broadcasted_iota(jnp.int32, (1, bt), 1)
    valid = col < hw                                             # mask ragged tail in-kernel

    # F.binary_cross_entropy(reduction='none') with PyTorch's log clamp at -100.
    # TODO(synk): if targets are guaranteed binary, one log + select would halve EUP work.
    log_p = jnp.maximum(jnp.log(p), -100.0)
    log_1mp = jnp.maximum(jnp.log(1.0 - p), -100.0)
    loss = jnp.where(valid, -(tgt * log_p + (1.0 - tgt) * log_1mp), 0.0)

    # .byte() truncation: operands are >= 0 and < 256 for sane masks, so floor == trunc.
    posf = jnp.where(valid, jnp.floor(tgt * msk), 0.0)
    negf = jnp.where(valid, jnp.floor((1.0 - tgt) * msk), 0.0)
    return loss, posf, negf


def _stats_kernel(pred_ref, pmap_ref, pmask_ref, out_ref, *, hw, tile):
    loss, posf, negf = _bce_and_masks(pred_ref, pmap_ref, pmask_ref, hw, tile)

    posc = jnp.sum(posf, axis=0, keepdims=True)    # (1, T): sum_i pos[i, s]
    negc = jnp.sum(negf, axis=0, keepdims=True)    # (1, T): sum_i neg[i, s]  (hist weight)
    lsum = jnp.sum(loss, axis=0, keepdims=True)    # (1, T): sum_j loss[j, s]

    pos_cnt = jnp.sum(posf)
    neg_cnt = jnp.sum(negf)
    pos_part = jnp.sum(lsum * posc)                # per-tile piece of pos_loss.sum()

    # Weighted count histogram over one-octave (exponent) bins of the loss.
    bits = pltpu.bitcast(loss, jnp.int32)
    binidx = jnp.clip((bits >> 23) - _EXP_BASE, 0, HBINS - 1)

    lane = jax.lax.broadcasted_iota(jnp.int32, (1, 128), 1)
    row = jnp.zeros((1, 128), jnp.float32)
    for b in range(HBINS):                         # static unroll, ~3 VPU ops/bin/elem
        cnt_b = jnp.sum(jnp.where(binidx == b, negc, 0.0))
        row = row + jnp.where(lane == b, cnt_b, 0.0)
    row = row + jnp.where(lane == _P1_POS, pos_cnt, 0.0)
    row = row + jnp.where(lane == _P1_NEG, neg_cnt, 0.0)
    row = row + jnp.where(lane == _P1_PPART, pos_part, 0.0)

    sub = jax.lax.broadcasted_iota(jnp.int32, (8, 128), 0)
    out_ref[...] = jnp.where(sub == 0, row, 0.0)   # full (8,128) unmasked store


def _select_kernel(params_ref, pred_ref, pmap_ref, pmask_ref, out_ref, *, hw, tile):
    lo = params_ref[0]                 # threshold octave lower edge (exact power of 2 or 0)
    hi = params_ref[1]                 # threshold octave upper edge (exact power of 2)
    scale = params_ref[2]              # REFBINS / (hi - lo)

    loss, _, negf = _bce_and_masks(pred_ref, pmap_ref, pmask_ref, hw, tile)
    negc = jnp.sum(negf, axis=0, keepdims=True)    # per-pixel weight

    # Exact weighted count / sum of everything strictly above the threshold octave.
    above = loss >= hi
    c_hi = jnp.sum(jnp.where(above, negc, 0.0))
    s_hi = jnp.sum(jnp.where(above, negc * loss, 0.0))

    # Linear refinement sub-histogram (counts + value sums) inside [lo, hi).
    inb = jnp.logical_and(loss >= lo, loss < hi)
    win = jnp.where(inb, negc, 0.0)
    sidx = jnp.clip(((loss - lo) * scale).astype(jnp.int32), 0, REFBINS - 1)

    lane = jax.lax.broadcasted_iota(jnp.int32, (1, 128), 1)
    row = jnp.zeros((1, 128), jnp.float32)
    for c in range(REFBINS):
        wsel = jnp.where(sidx == c, win, 0.0)
        row = row + jnp.where(lane == c, jnp.sum(wsel), 0.0)
        row = row + jnp.where(lane == REFBINS + c, jnp.sum(wsel * loss), 0.0)
    row = row + jnp.where(lane == _P2_CHI, c_hi, 0.0)
    row = row + jnp.where(lane == _P2_SHI, s_hi, 0.0)

    sub = jax.lax.broadcasted_iota(jnp.int32, (8, 128), 0)
    out_ref[...] = jnp.where(sub == 0, row, 0.0)


def _choose_tile(n, hw):
    # (8,128)-aware sizing: an (n, T) f32 block occupies ceil(n/8)*8 sublanes in VMEM.
    n_pad = ((n + 7) // 8) * 8
    # 3 double-buffered input streams + ~8 live (n_pad, T) f32 in-kernel temporaries.
    bytes_per_col = (3 * 2 + 8) * n_pad * 4
    budget = 24 * 1024 * 1024            # conservative; leaves headroom on v7x (64 MiB VMEM)
    t = (budget // bytes_per_col) // 128 * 128
    t = max(128, min(t, 16384))
    hw_up = ((hw + 127) // 128) * 128    # lane-dense: multiple of 128
    return int(min(t, max(hw_up, 128)))


def hard_bce_loss(pred, prob_map, prob_mask, ratio=RATIO, eps=EPS):
    n, c, h, w = pred.shape
    assert c == 1 and prob_map.shape == pred.shape and prob_mask.shape == pred.shape
    hw = h * w

    # Free, layout-preserving reshapes; dtype passes through (bf16 inputs stay bf16
    # on the HBM streams, kernels upcast to f32 in-register).
    pred2 = pred[:, 0].reshape(n, hw)
    pmap2 = prob_map[:, 0].reshape(n, hw)
    pmask2 = prob_mask[:, 0].reshape(n, hw)

    tile = _choose_tile(n, hw)
    num_tiles = pl.cdiv(hw, tile)

    row_spec = pl.BlockSpec((n, tile), lambda i: (0, i))
    out_spec = pl.BlockSpec((8, 128), lambda i: (i, 0))
    out_shape = jax.ShapeDtypeStruct((num_tiles * 8, 128), jnp.float32)
    cparams = pltpu.CompilerParams(
        dimension_semantics=("parallel",),
        vmem_limit_bytes=_VMEM_LIMIT_BYTES,
    )

    # ---- pass 1: stats + coarse weighted histogram --------------------------
    stats1 = pl.pallas_call(
        functools.partial(_stats_kernel, hw=hw, tile=tile),
        grid=(num_tiles,),
        in_specs=[row_spec, row_spec, row_spec],
        out_specs=out_spec,
        out_shape=out_shape,
        compiler_params=cparams,
    )(pred2, pmap2, pmask2)

    agg1 = jnp.sum(stats1.reshape(num_tiles, 8, 128)[:, 0, :], axis=0)   # (128,)
    hist = agg1[:HBINS]
    pos_cnt = agg1[_P1_POS]
    neg_cnt = agg1[_P1_NEG]
    pos_loss_sum = agg1[_P1_PPART]

    pos_num = pos_cnt.astype(jnp.int32)          # int(pos.float().sum())
    neg_total = neg_cnt.astype(jnp.int32)        # int(neg.float().sum())
    if float(ratio).is_integer():
        cap = pos_num * jnp.int32(int(ratio))    # exact integer arithmetic
    else:
        cap = jnp.floor(pos_num.astype(jnp.float32) * jnp.float32(ratio)).astype(jnp.int32)
    k = jnp.minimum(neg_total, cap)              # neg_num
    kf = k.astype(jnp.float32)

    # Threshold octave search (take from the top).
    cum = jnp.cumsum(hist[::-1])[::-1]           # cum[b] = weighted count of bins >= b
    b_star = jnp.maximum(jnp.sum((cum >= kf).astype(jnp.int32)) - 1, 0)
    hi = jax.lax.bitcast_convert_type(((b_star + _EXP_BASE + 1) << 23).astype(jnp.int32),
                                      jnp.float32)
    lo = jnp.where(
        b_star == 0, jnp.float32(0.0),
        jax.lax.bitcast_convert_type(((b_star + _EXP_BASE) << 23).astype(jnp.int32),
                                     jnp.float32))
    scale = jnp.float32(REFBINS) / (hi - lo)
    params = jnp.stack([lo, hi, scale, jnp.float32(0.0)]).astype(jnp.float32)

    # ---- pass 2: exact sums above the octave + refinement sub-histogram -----
    smem_spec = pl.BlockSpec(memory_space=pltpu.MemorySpace.SMEM)
    stats2 = pl.pallas_call(
        functools.partial(_select_kernel, hw=hw, tile=tile),
        grid=(num_tiles,),
        in_specs=[smem_spec, row_spec, row_spec, row_spec],
        out_specs=out_spec,
        out_shape=out_shape,
        compiler_params=cparams,
    )(params, pred2, pmap2, pmask2)

    agg2 = jnp.sum(stats2.reshape(num_tiles, 8, 128)[:, 0, :], axis=0)
    cnt2 = agg2[:REFBINS]
    sum2 = agg2[REFBINS:2 * REFBINS]
    c_hi = agg2[_P2_CHI]
    s_hi = agg2[_P2_SHI]

    # Weighted top-k finish: full sub-bins contribute exact sums, the single
    # boundary sub-bin is taken at its exact weighted mean.
    r = jnp.maximum(kf - c_hi, 0.0)
    cum2 = jnp.cumsum(cnt2[::-1])[::-1]
    cum2_above = jnp.concatenate([cum2[1:], jnp.zeros((1,), jnp.float32)])
    take = jnp.clip(r - cum2_above, 0.0, cnt2)
    mean2 = sum2 / jnp.maximum(cnt2, 1.0)
    contrib = jnp.where(take >= cnt2, sum2, take * mean2)
    neg_top_sum = jnp.where(k > 0, s_hi + jnp.sum(contrib), jnp.float32(0.0))

    denom = (pos_num + k).astype(jnp.float32) + jnp.float32(eps)
    return (pos_loss_sum + neg_top_sum) / denom


if __name__ == "__main__":
    key = jax.random.PRNGKey(0)
    k1, k2, k3 = jax.random.split(key, 3)
    N, C, H, W = 2, 1, 16, 16

    # pred: sigmoid-like probabilities in (0,1); prob_map/prob_mask: binary maps.
    pred = jax.nn.sigmoid(jax.random.normal(k1, (N, C, H, W), jnp.float32))
    prob_map = jax.random.bernoulli(k2, 0.3, (N, C, H, W)).astype(jnp.float32)
    prob_mask = jax.random.bernoulli(k3, 0.8, (N, C, H, W)).astype(jnp.float32)

    out = jax.jit(hard_bce_loss)(pred, prob_map, prob_mask)
    out = jax.block_until_ready(out)
    assert out.shape == () and bool(jnp.isfinite(out))
    print("KERNEL_OK")
</pallas_src>

<mosaic_0001>
module attributes {stable_mosaic.version = 11 : i64} {
  func.func @_stats_kernel(%arg0: i32, %arg1: memref<2x256xf32, #tpu.memory_space<vmem>>, %arg2: memref<2x256xf32, #tpu.memory_space<vmem>>, %arg3: memref<2x256xf32, #tpu.memory_space<vmem>>, %arg4: memref<8x128xf32, #tpu.memory_space<vmem>>) attributes {dimension_semantics = [#tpu.dimension_semantics<parallel>], iteration_bounds = array<i64: 1>, scalar_prefetch = 0 : i64, scratch_operands = 0 : i64, tpu.core_type = #tpu.core_type<tc>, window_params = [{transform_indices = @transform_0, window_bounds = array<i64: 2, 256>}, {transform_indices = @transform_1, window_bounds = array<i64: 2, 256>}, {transform_indices = @transform_2, window_bounds = array<i64: 2, 256>}, {transform_indices = @transform_3, window_bounds = array<i64: 8, 128>}]} {
    %c0 = arith.constant 0 : index
    %c0_0 = arith.constant 0 : index
    %0 = vector.load %arg1[%c0, %c0_0] : memref<2x256xf32, #tpu.memory_space<vmem>>, vector<2x256xf32>
    %cst = arith.constant 0.000000e+00 : f32
    %cst_1 = arith.constant 1.000000e+00 : f32
    %1 = vector.broadcast %cst : f32 to vector<2x256xf32>
    %2 = arith.maximumf %1, %0 : vector<2x256xf32>
    %3 = vector.broadcast %cst_1 : f32 to vector<2x256xf32>
    %4 = arith.minimumf %3, %2 : vector<2x256xf32>
    %c0_2 = arith.constant 0 : index
    %c0_3 = arith.constant 0 : index
    %5 = vector.load %arg2[%c0_2, %c0_3] : memref<2x256xf32, #tpu.memory_space<vmem>>, vector<2x256xf32>
    %c0_4 = arith.constant 0 : index
    %c0_5 = arith.constant 0 : index
    %6 = vector.load %arg3[%c0_4, %c0_5] : memref<2x256xf32, #tpu.memory_space<vmem>>, vector<2x256xf32>
    %c256_i32 = arith.constant 256 : i32
    %7 = arith.muli %arg0, %c256_i32 : i32
    %8 = tpu.iota {dimensions = array<i32: 1>} : vector<1x256xi32>
    %9 = vector.broadcast %7 : i32 to vector<1x256xi32>
    %10 = arith.addi %9, %8 : vector<1x256xi32>
    %c256_i32_6 = arith.constant 256 : i32
    %11 = vector.broadcast %c256_i32_6 : i32 to vector<1x256xi32>
    %12 = arith.cmpi slt, %10, %11 : vector<1x256xi32>
    %13 = math.log %4 : vector<2x256xf32>
    %cst_7 = arith.constant -1.000000e+02 : f32
    %14 = vector.broadcast %cst_7 : f32 to vector<2x256xf32>
    %15 = arith.maximumf %13, %14 : vector<2x256xf32>
    %cst_8 = arith.constant 1.000000e+00 : f32
    %16 = vector.broadcast %cst_8 : f32 to vector<2x256xf32>
    %17 = arith.subf %16, %4 : vector<2x256xf32>
    %18 = math.log %17 : vector<2x256xf32>
    %cst_9 = arith.constant -1.000000e+02 : f32
    %19 = vector.broadcast %cst_9 : f32 to vector<2x256xf32>
    %20 = arith.maximumf %18, %19 : vector<2x256xf32>
    %21 = arith.mulf %5, %15 : vector<2x256xf32>
    %cst_10 = arith.constant 1.000000e+00 : f32
    %22 = vector.broadcast %cst_10 : f32 to vector<2x256xf32>
    %23 = arith.subf %22, %5 : vector<2x256xf32>
    %24 = arith.mulf %23, %20 : vector<2x256xf32>
    %25 = arith.addf %21, %24 : vector<2x256xf32>
    %cst_11 = arith.constant 0.000000e+00 : f32
    %26 = vector.broadcast %cst_11 : f32 to vector<2x256xf32>
    %27 = arith.subf %26, %25 : vector<2x256xf32>
    %cst_12 = arith.constant 0.000000e+00 : f32
    %28 = vector.shape_cast %12 : vector<1x256xi1> to vector<1x256xi1>
    %29 = vector.broadcast %28 : vector<1x256xi1> to vector<2x256xi1>
    %30 = vector.broadcast %cst_12 : f32 to vector<2x256xf32>
    %31 = arith.select %29, %27, %30 : vector<2x256xi1>, vector<2x256xf32>
    %32 = arith.mulf %5, %6 : vector<2x256xf32>
    %33 = math.floor %32 : vector<2x256xf32>
    %cst_13 = arith.constant 0.000000e+00 : f32
    %34 = vector.shape_cast %12 : vector<1x256xi1> to vector<1x256xi1>
    %35 = vector.broadcast %34 : vector<1x256xi1> to vector<2x256xi1>
    %36 = vector.broadcast %cst_13 : f32 to vector<2x256xf32>
    %37 = arith.select %35, %33, %36 : vector<2x256xi1>, vector<2x256xf32>
    %cst_14 = arith.constant 1.000000e+00 : f32
    %38 = vector.broadcast %cst_14 : f32 to vector<2x256xf32>
    %39 = arith.subf %38, %5 : vector<2x256xf32>
    %40 = arith.mulf %39, %6 : vector<2x256xf32>
    %41 = math.floor %40 : vector<2x256xf32>
    %cst_15 = arith.constant 0.000000e+00 : f32
    %42 = vector.shape_cast %12 : vector<1x256xi1> to vector<1x256xi1>
    %43 = vector.broadcast %42 : vector<1x256xi1> to vector<2x256xi1>
    %44 = vector.broadcast %cst_15 : f32 to vector<2x256xf32>
    %45 = arith.select %43, %41, %44 : vector<2x256xi1>, vector<2x256xf32>
    %cst_16 = arith.constant dense<0.000000e+00> : vector<256xf32>
    %46 = vector.multi_reduction <add>, %37, %cst_16 [0] : vector<2x256xf32> to vector<256xf32>
    %47 = vector.shape_cast %46 : vector<256xf32> to vector<1x256xf32>
    %cst_17 = arith.constant dense<0.000000e+00> : vector<256xf32>
    %48 = vector.multi_reduction <add>, %45, %cst_17 [0] : vector<2x256xf32> to vector<256xf32>
    %49 = vector.shape_cast %48 : vector<256xf32> to vector<1x256xf32>
    %cst_18 = arith.constant dense<0.000000e+00> : vector<256xf32>
    %50 = vector.multi_reduction <add>, %31, %cst_18 [0] : vector<2x256xf32> to vector<256xf32>
    %51 = vector.shape_cast %50 : vector<256xf32> to vector<1x256xf32>
    %52 = vector.shape_cast %37 : vector<2x256xf32> to vector<1x2x256xf32>
    %cst_19 = arith.constant dense<0.000000e+00> : vector<1xf32>
    %53 = vector.multi_reduction <add>, %52, %cst_19 [1, 2] : vector<1x2x256xf32> to vector<1xf32>
    %54 = vector.shape_cast %53 : vector<1xf32> to vector<1x1x1xf32>
    %55 = vector.extract %54[0, 0, 0] : f32 from vector<1x1x1xf32>
    %56 = vector.shape_cast %45 : vector<2x256xf32> to vector<1x2x256xf32>
    %cst_20 = arith.constant dense<0.000000e+00> : vector<1xf32>
    %57 = vector.multi_reduction <add>, %56, %cst_20 [1, 2] : vector<1x2x256xf32> to vector<1xf32>
    %58 = vector.shape_cast %57 : vector<1xf32> to vector<1x1x1xf32>
    %59 = vector.extract %58[0, 0, 0] : f32 from vector<1x1x1xf32>
    %60 = arith.mulf %51, %47 : vector<1x256xf32>
    %61 = vector.shape_cast %60 : vector<1x256xf32> to vector<1x1x256xf32>
    %cst_21 = arith.constant dense<0.000000e+00> : vector<1xf32>
    %62 = vector.multi_reduction <add>, %61, %cst_21 [1, 2] : vector<1x1x256xf32> to vector<1xf32>
    %63 = vector.shape_cast %62 : vector<1xf32> to vector<1x1x1xf32>
    %64 = vector.extract %63[0, 0, 0] : f32 from vector<1x1x1xf32>
    %65 = tpu.bitcast %31 : vector<2x256xf32> -> vector<2x256xi32>
    %c23_i32 = arith.constant 23 : i32
    %66 = vector.broadcast %c23_i32 : i32 to vector<2x256xi32>
    %67 = arith.shrsi %65, %66 : vector<2x256xi32>
    %c107_i32 = arith.constant 107 : i32
    %68 = vector.broadcast %c107_i32 : i32 to vector<2x256xi32>
    %69 = arith.subi %67, %68 : vector<2x256xi32>
    %c0_i32 = arith.constant 0 : i32
    %c27_i32 = arith.constant 27 : i32
    %70 = vector.broadcast %c0_i32 : i32 to vector<2x256xi32>
    %71 = arith.maxsi %70, %69 : vector<2x256xi32>
    %72 = vector.broadcast %c27_i32 : i32 to vector<2x256xi32>
    %73 = arith.minsi %72, %71 : vector<2x256xi32>
    %74 = tpu.iota {dimensions = array<i32: 1>} : vector<1x128xi32>
    %cst_22 = arith.constant 0.000000e+00 : f32
    %75 = vector.broadcast %cst_22 : f32 to vector<1x128xf32>
    %c0_i32_23 = arith.constant 0 : i32
    %76 = vector.broadcast %c0_i32_23 : i32 to vector<2x256xi32>
    %77 = arith.cmpi eq, %73, %76 : vector<2x256xi32>
    %cst_24 = arith.constant 0.000000e+00 : f32
    %78 = vector.shape_cast %49 : vector<1x256xf32> to vector<1x256xf32>
    %79 = vector.broadcast %78 : vector<1x256xf32> to vector<2x256xf32>
    %80 = vector.broadcast %cst_24 : f32 to vector<2x256xf32>
    %81 = arith.select %77, %79, %80 : vector<2x256xi1>, vector<2x256xf32>
    %82 = vector.shape_cast %81 : vector<2x256xf32> to vector<1x2x256xf32>
    %cst_25 = arith.constant dense<0.000000e+00> : vector<1xf32>
    %83 = vector.multi_reduction <add>, %82, %cst_25 [1, 2] : vector<1x2x256xf32> to vector<1xf32>
    %84 = vector.shape_cast %83 : vector<1xf32> to vector<1x1x1xf32>
    %85 = vector.extract %84[0, 0, 0] : f32 from vector<1x1x1xf32>
    %c0_i32_26 = arith.constant 0 : i32
    %86 = vector.broadcast %c0_i32_26 : i32 to vector<1x128xi32>
    %87 = arith.cmpi eq, %74, %86 : vector<1x128xi32>
    %cst_27 = arith.constant 0.000000e+00 : f32
    %88 = vector.broadcast %85 : f32 to vector<1x128xf32>
    %89 = vector.broadcast %cst_27 : f32 to vector<1x128xf32>
    %90 = arith.select %87, %88, %89 : vector<1x128xi1>, vector<1x128xf32>
    %91 = arith.addf %75, %90 : vector<1x128xf32>
    %c1_i32 = arith.constant 1 : i32
    %92 = vector.broadcast %c1_i32 : i32 to vector<2x256xi32>
    %93 = arith.cmpi eq, %73, %92 : vector<2x256xi32>
    %cst_28 = arith.constant 0.000000e+00 : f32
    %94 = vector.shape_cast %49 : vector<1x256xf32> to vector<1x256xf32>
    %95 = vector.broadcast %94 : vector<1x256xf32> to vector<2x256xf32>
    %96 = vector.broadcast %cst_28 : f32 to vector<2x256xf32>
    %97 = arith.select %93, %95, %96 : vector<2x256xi1>, vector<2x256xf32>
    %98 = vector.shape_cast %97 : vector<2x256xf32> to vector<1x2x256xf32>
    %cst_29 = arith.constant dense<0.000000e+00> : vector<1xf32>
    %99 = vector.multi_reduction <add>, %98, %cst_29 [1, 2] : vector<1x2x256xf32> to vector<1xf32>
    %100 = vector.shape_cast %99 : vector<1xf32> to vector<1x1x1xf32>
    %101 = vector.extract %100[0, 0, 0] : f32 from vector<1x1x1xf32>
    %c1_i32_30 = arith.constant 1 : i32
    %102 = vector.broadcast %c1_i32_30 : i32 to vector<1x128xi32>
    %103 = arith.cmpi eq, %74, %102 : vector<1x128xi32>
    %cst_31 = arith.constant 0.000000e+00 : f32
    %104 = vector.broadcast %101 : f32 to vector<1x128xf32>
    %105 = vector.broadcast %cst_31 : f32 to vector<1x128xf32>
    %106 = arith.select %103, %104, %105 : vector<1x128xi1>, vector<1x128xf32>
    %107 = arith.addf %91, %106 : vector<1x128xf32>
    %c2_i32 = arith.constant 2 : i32
    %108 = vector.broadcast %c2_i32 : i32 to vector<2x256xi32>
    %109 = arith.cmpi eq, %73, %108 : vector<2x256xi32>
    %cst_32 = arith.constant 0.000000e+00 : f32
    %110 = vector.shape_cast %49 : vector<1x256xf32> to vector<1x256xf32>
    %111 = vector.broadcast %110 : vector<1x256xf32> to vector<2x256xf32>
    %112 = vector.broadcast %cst_32 : f32 to vector<2x256xf32>
    %113 = arith.select %109, %111, %112 : vector<2x256xi1>, vector<2x256xf32>
    %114 = vector.shape_cast %113 : vector<2x256xf32> to vector<1x2x256xf32>
    %cst_33 = arith.constant dense<0.000000e+00> : vector<1xf32>
    %115 = vector.multi_reduction <add>, %114, %cst_33 [1, 2] : vector<1x2x256xf32> to vector<1xf32>
    %116 = vector.shape_cast %115 : vector<1xf32> to vector<1x1x1xf32>
    %117 = vector.extract %116[0, 0, 0] : f32 from vector<1x1x1xf32>
    %c2_i32_34 = arith.constant 2 : i32
    %118 = vector.broadcast %c2_i32_34 : i32 to vector<1x128xi32>
    %119 = arith.cmpi eq, %74, %118 : vector<1x128xi32>
    %cst_35 = arith.constant 0.000000e+00 : f32
    %120 = vector.broadcast %117 : f32 to vector<1x128xf32>
    %121 = vector.broadcast %cst_35 : f32 to vector<1x128xf32>
    %122 = arith.select %119, %120, %121 : vector<1x128xi1>, vector<1x128xf32>
    %123 = arith.addf %107, %122 : vector<1x128xf32>
    %c3_i32 = arith.constant 3 : i32
    %124 = vector.broadcast %c3_i32 : i32 to vector<2x256xi32>
    %125 = arith.cmpi eq, %73, %124 : vector<2x256xi32>
    %cst_36 = arith.constant 0.000000e+00 : f32
    %126 = vector.shape_cast %49 : vector<1x256xf32> to vector<1x256xf32>
    %127 = vector.broadcast %126 : vector<1x256xf32> to vector<2x256xf32>
    %128 = vector.broadcast %cst_36 : f32 to vector<2x256xf32>
    %129 = arith.select %125, %127, %128 : vector<2x256xi1>, vector<2x256xf32>
    %130 = vector.shape_cast %129 : vector<2x256xf32> to vector<1x2x256xf32>
    %cst_37 = arith.constant dense<0.000000e+00> : vector<1xf32>
    %131 = vector.multi_reduction <add>, %130, %cst_37 [1, 2] : vector<1x2x256xf32> to vector<1xf32>
    %132 = vector.shape_cast %131 : vector<1xf32> to vector<1x1x1xf32>
    %133 = vector.extract %132[0, 0, 0] : f32 from vector<1x1x1xf32>
    %c3_i32_38 = arith.constant 3 : i32
    %134 = vector.broadcast %c3_i32_38 : i32 to vector<1x128xi32>
    %135 = arith.cmpi eq, %74, %134 : vector<1x128xi32>
    %cst_39 = arith.constant 0.000000e+00 : f32
    %136 = vector.broadcast %133 : f32 to vector<1x128xf32>
    %137 = vector.broadcast %cst_39 : f32 to vector<1x128xf32>
    %138 = arith.select %135, %136, %137 : vector<1x128xi1>, vector<1x128xf32>
    %139 = arith.addf %123, %138 : vector<1x128xf32>
    %c4_i32 = arith.constant 4 : i32
    %140 = vector.broadcast %c4_i32 : i32 to vector<2x256xi32>
    %141 = arith.cmpi eq, %73, %140 : vector<2x256xi32>
    %cst_40 = arith.constant 0.000000e+00 : f32
    %142 = vector.shape_cast %49 : vector<1x256xf32> to vector<1x256xf32>
    %143 = vector.broadcast %142 : vector<1x256xf32> to vector<2x256xf32>
    %144 = vector.broadcast %cst_40 : f32 to vector<2x256xf32>
    %145 = arith.select %141, %143, %144 : vector<2x256xi1>, vector<2x256xf32>
    %146 = vector.shape_cast %145 : vector<2x256xf32> to vector<1x2x256xf32>
    %cst_41 = arith.constant dense<0.000000e+00> : vector<1xf32>
    %147 = vector.multi_reduction <add>, %146, %cst_41 [1, 2] : vector<1x2x256xf32> to vector<1xf32>
    %148 = vector.shape_cast %147 : vector<1xf32> to vector<1x1x1xf32>
    %149 = vector.extract %148[0, 0, 0] : f32 from vector<1x1x1xf32>
    %c4_i32_42 = arith.constant 4 : i32
    %150 = vector.broadcast %c4_i32_42 : i32 to vector<1x128xi32>
    %151 = arith.cmpi eq, %74, %150 : vector<1x128xi32>
    %cst_43 = arith.constant 0.000000e+00 : f32
    %152 = vector.broadcast %149 : f32 to vector<1x128xf32>
    %153 = vector.broadcast %cst_43 : f32 to vector<1x128xf32>
    %154 = arith.select %151, %152, %153 : vector<1x128xi1>, vector<1x128xf32>
    %155 = arith.addf %139, %154 : vector<1x128xf32>
    %c5_i32 = arith.constant 5 : i32
    %156 = vector.broadcast %c5_i32 : i32 to vector<2x256xi32>
    %157 = arith.cmpi eq, %73, %156 : vector<2x256xi32>
    %cst_44 = arith.constant 0.000000e+00 : f32
    %158 = vector.shape_cast %49 : vector<1x256xf32> to vector<1x256xf32>
    %159 = vector.broadcast %158 : vector<1x256xf32> to vector<2x256xf32>
    %160 = vector.broadcast %cst_44 : f32 to vector<2x256xf32>
    %161 = arith.select %157, %159, %160 : vector<2x256xi1>, vector<2x256xf32>
    %162 = vector.shape_cast %161 : vector<2x256xf32> to vector<1x2x256xf32>
    %cst_45 = arith.constant dense<0.000000e+00> : vector<1xf32>
    %163 = vector.multi_reduction <add>, %162, %cst_45 [1, 2] : vector<1x2x256xf32> to vector<1xf32>
    %164 = vector.shape_cast %163 : vector<1xf32> to vector<1x1x1xf32>
    %165 = vector.extract %164[0, 0, 0] : f32 from vector<1x1x1xf32>
    %c5_i32_46 = arith.constant 5 : i32
    %166 = vector.broadcast %c5_i32_46 : i32 to vector<1x128xi32>
    %167 = arith.cmpi eq, %74, %166 : vector<1x128xi32>
    %cst_47 = arith.constant 0.000000e+00 : f32
    %168 = vector.broadcast %165 : f32 to vector<1x128xf32>
    %169 = vector.broadcast %cst_47 : f32 to vector<1x128xf32>
    %170 = arith.select %167, %168, %169 : vector<1x128xi1>, vector<1x128xf32>
    %171 = arith.addf %155, %170 : vector<1x128xf32>
    %c6_i32 = arith.constant 6 : i32
    %172 = vector.broadcast %c6_i32 : i32 to vector<2x256xi32>
    %173 = arith.cmpi eq, %73, %172 : vector<2x256xi32>
    %cst_48 = arith.constant 0.000000e+00 : f32
    %174 = vector.shape_cast %49 : vector<1x256xf32> to vector<1x256xf32>
    %175 = vector.broadcast %174 : vector<1x256xf32> to vector<2x256xf32>
    %176 = vector.broadcast %cst_48 : f32 to vector<2x256xf32>
    %177 = arith.select %173, %175, %176 : vector<2x256xi1>, vector<2x256xf32>
    %178 = vector.shape_cast %177 : vector<2x256xf32> to vector<1x2x256xf32>
    %cst_49 = arith.constant dense<0.000000e+00> : vector<1xf32>
    %179 = vector.multi_reduction <add>, %178, %cst_49 [1, 2] : vector<1x2x256xf32> to vector<1xf32>
    %180 = vector.shape_cast %179 : vector<1xf32> to vector<1x1x1xf32>
    %181 = vector.extract %180[0, 0, 0] : f32 from vector<1x1x1xf32>
    %c6_i32_50 = arith.constant 6 : i32
    %182 = vector.broadcast %c6_i32_50 : i32 to vector<1x128xi32>
    %183 = arith.cmpi eq, %74, %182 : vector<1x128xi32>
    %cst_51 = arith.constant 0.000000e+00 : f32
    %184 = vector.broadcast %181 : f32 to vector<1x128xf32>
    %185 = vector.broadcast %cst_51 : f32 to vector<1x128xf32>
    %186 = arith.select %183, %184, %185 : vector<1x128xi1>, vector<1x128xf32>
    %187 = arith.addf %171, %186 : vector<1x128xf32>
    %c7_i32 = arith.constant 7 : i32
    %188 = vector.broadcast %c7_i32 : i32 to vector<2x256xi32>
    %189 = arith.cmpi eq, %73, %188 : vector<2x256xi32>
    %cst_52 = arith.constant 0.000000e+00 : f32
    %190 = vector.shape_cast %49 : vector<1x256xf32> to vector<1x256xf32>
    %191 = vector.broadcast %190 : vector<1x256xf32> to vector<2x256xf32>
    %192 = vector.broadcast %cst_52 : f32 to vector<2x256xf32>
    %193 = arith.select %189, %191, %192 : vector<2x256xi1>, vector<2x256xf32>
    %194 = vector.shape_cast %193 : vector<2x256xf32> to vector<1x2x256xf32>
    %cst_53 = arith.constant dense<0.000000e+00> : vector<1xf32>
    %195 = vector.multi_reduction <add>, %194, %cst_53 [1, 2] : vector<1x2x256xf32> to vector<1xf32>
    %196 = vector.shape_cast %195 : vector<1xf32> to vector<1x1x1xf32>
    %197 = vector.extract %196[0, 0, 0] : f32 from vector<1x1x1xf32>
    %c7_i32_54 = arith.constant 7 : i32
    %198 = vector.broadcast %c7_i32_54 : i32 to vector<1x128xi32>
    %199 = arith.cmpi eq, %74, %198 : vector<1x128xi32>
    %cst_55 = arith.constant 0.000000e+00 : f32
    %200 = vector.broadcast %197 : f32 to vector<1x128xf32>
    %201 = vector.broadcast %cst_55 : f32 to vector<1x128xf32>
    %202 = arith.select %199, %200, %201 : vector<1x128xi1>, vector<1x128xf32>
    %203 = arith.addf %187, %202 : vector<1x128xf32>
    %c8_i32 = arith.constant 8 : i32
    %204 = vector.broadcast %c8_i32 : i32 to vector<2x256xi32>
    %205 = arith.cmpi eq, %73, %204 : vector<2x256xi32>
    %cst_56 = arith.constant 0.000000e+00 : f32
    %206 = vector.shape_cast %49 : vector<1x256xf32> to vector<1x256xf32>
    %207 = vector.broadcast %206 : vector<1x256xf32> to vector<2x256xf32>
    %208 = vector.broadcast %cst_56 : f32 to vector<2x256xf32>
    %209 = arith.select %205, %207, %208 : vector<2x256xi1>, vector<2x256xf32>
    %210 = vector.shape_cast %209 : vector<2x256xf32> to vector<1x2x256xf32>
    %cst_57 = arith.constant dense<0.000000e+00> : vector<1xf32>
    %211 = vector.multi_reduction <add>, %210, %cst_57 [1, 2] : vector<1x2x256xf32> to vector<1xf32>
    %212 = vector.shape_cast %211 : vector<1xf32> to vector<1x1x1xf32>
    %213 = vector.extract %212[0, 0, 0] : f32 from vector<1x1x1xf32>
    %c8_i32_58 = arith.constant 8 : i32
    %214 = vector.broadcast %c8_i32_58 : i32 to vector<1x128xi32>
    %215 = arith.cmpi eq, %74, %214 : vector<1x128xi32>
    %cst_59 = arith.constant 0.000000e+00 : f32
    %216 = vector.broadcast %213 : f32 to vector<1x128xf32>
    %217 = vector.broadcast %cst_59 : f32 to vector<1x128xf32>
    %218 = arith.select %215, %216, %217 : vector<1x128xi1>, vector<1x128xf32>
    %219 = arith.addf %203, %218 : vector<1x128xf32>
    %c9_i32 = arith.constant 9 : i32
    %220 = vector.broadcast %c9_i32 : i32 to vector<2x256xi32>
    %221 = arith.cmpi eq, %73, %220 : vector<2x256xi32>
    %cst_60 = arith.constant 0.000000e+00 : f32
    %222 = vector.shape_cast %49 : vector<1x256xf32> to vector<1x256xf32>
    %223 = vector.broadcast %222 : vector<1x256xf32> to vector<2x256xf32>
    %224 = vector.broadcast %cst_60 : f32 to vector<2x256xf32>
    %225 = arith.select %221, %223, %224 : vector<2x256xi1>, vector<2x256xf32>
    %226 = vector.shape_cast %225 : vector<2x256xf32> to vector<1x2x256xf32>
    %cst_61 = arith.constant dense<0.000000e+00> : vector<1xf32>
    %227 = vector.multi_reduction <add>, %226, %cst_61 [1, 2] : vector<1x2x256xf32> to vector<1xf32>
    %228 = vector.shape_cast %227 : vector<1xf32> to vector<1x1x1xf32>
    %229 = vector.extract %228[0, 0, 0] : f32 from vector<1x1x1xf32>
    %c9_i32_62 = arith.constant 9 : i32
    %230 = vector.broadcast %c9_i32_62 : i32 to vector<1x128xi32>
    %231 = arith.cmpi eq, %74, %230 : vector<1x128xi32>
    %cst_63 = arith.constant 0.000000e+00 : f32
    %232 = vector.broadcast %229 : f32 to vector<1x128xf32>
    %233 = vector.broadcast %cst_63 : f32 to vector<1x128xf32>
    %234 = arith.select %231, %232, %233 : vector<1x128xi1>, vector<1x128xf32>
    %235 = arith.addf %219, %234 : vector<1x128xf32>
    %c10_i32 = arith.constant 10 : i32
    %236 = vector.broadcast %c10_i32 : i32 to vector<2x256xi32>
    %237 = arith.cmpi eq, %73, %236 : vector<2x256xi32>
    %cst_64 = arith.constant 0.000000e+00 : f32
    %238 = vector.shape_cast %49 : vector<1x256xf32> to vector<1x256xf32>
    %239 = vector.broadcast %238 : vector<1x256xf32> to vector<2x256xf32>
    %240 = vector.broadcast %cst_64 : f32 to vector<2x256xf32>
    %241 = arith.select %237, %239, %240 : vector<2x256xi1>, vector<2x256xf32>
    %242 = vector.shape_cast %241 : vector<2x256xf32> to vector<1x2x256xf32>
    %cst_65 = arith.constant dense<0.000000e+00> : vector<1xf32>
    %243 = vector.multi_reduction <add>, %242, %cst_65 [1, 2] : vector<1x2x256xf32> to vector<1xf32>
    %244 = vector.shape_cast %243 : vector<1xf32> to vector<1x1x1xf32>
    %245 = vector.extract %244[0, 0, 0] : f32 from vector<1x1x1xf32>
    %c10_i32_66 = arith.constant 10 : i32
    %246 = vector.broadcast %c10_i32_66 : i32 to vector<1x128xi32>
    %247 = arith.cmpi eq, %74, %246 : vector<1x128xi32>
    %cst_67 = arith.constant 0.000000e+00 : f32
    %248 = vector.broadcast %245 : f32 to vector<1x128xf32>
    %249 = vector.broadcast %cst_67 : f32 to vector<1x128xf32>
    %250 = arith.select %247, %248, %249 : vector<1x128xi1>, vector<1x128xf32>
    %251 = arith.addf %235, %250 : vector<1x128xf32>
    %c11_i32 = arith.constant 11 : i32
    %252 = vector.broadcast %c11_i32 : i32 to vector<2x256xi32>
    %253 = arith.cmpi eq, %73, %252 : vector<2x256xi32>
    %cst_68 = arith.constant 0.000000e+00 : f32
    %254 = vector.shape_cast %49 : vector<1x256xf32> to vector<1x256xf32>
    %255 = vector.broadcast %254 : vector<1x256xf32> to vector<2x256xf32>
    %256 = vector.broadcast %cst_68 : f32 to vector<2x256xf32>
    %257 = arith.select %253, %255, %256 : vector<2x256xi1>, vector<2x256xf32>
    %258 = vector.shape_cast %257 : vector<2x256xf32> to vector<1x2x256xf32>
    %cst_69 = arith.constant dense<0.000000e+00> : vector<1xf32>
    %259 = vector.multi_reduction <add>, %258, %cst_69 [1, 2] : vector<1x2x256xf32> to vector<1xf32>
    %260 = vector.shape_cast %259 : vector<1xf32> to vector<1x1x1xf32>
    %261 = vector.extract %260[0, 0, 0] : f32 from vector<1x1x1xf32>
    %c11_i32_70 = arith.constant 11 : i32
    %262 = vector.broadcast %c11_i32_70 : i32 to vector<1x128xi32>
    %263 = arith.cmpi eq, %74, %262 : vector<1x128xi32>
    %cst_71 = arith.constant 0.000000e+00 : f32
    %264 = vector.broadcast %261 : f32 to vector<1x128xf32>
    %265 = vector.broadcast %cst_71 : f32 to vector<1x128xf32>
    %266 = arith.select %263, %264, %265 : vector<1x128xi1>, vector<1x128xf32>
    %267 = arith.addf %251, %266 : vector<1x128xf32>
    %c12_i32 = arith.constant 12 : i32
    %268 = vector.broadcast %c12_i32 : i32 to vector<2x256xi32>
    %269 = arith.cmpi eq, %73, %268 : vector<2x256xi32>
    %cst_72 = arith.constant 0.000000e+00 : f32
    %270 = vector.shape_cast %49 : vector<1x256xf32> to vector<1x256xf32>
    %271 = vector.broadcast %270 : vector<1x256xf32> to vector<2x256xf32>
    %272 = vector.broadcast %cst_72 : f32 to vector<2x256xf32>
    %273 = arith.select %269, %271, %272 : vector<2x256xi1>, vector<2x256xf32>
    %274 = vector.shape_cast %273 : vector<2x256xf32> to vector<1x2x256xf32>
    %cst_73 = arith.constant dense<0.000000e+00> : vector<1xf32>
    %275 = vector.multi_reduction <add>, %274, %cst_73 [1, 2] : vector<1x2x256xf32> to vector<1xf32>
    %276 = vector.shape_cast %275 : vector<1xf32> to vector<1x1x1xf32>
    %277 = vector.extract %276[0, 0, 0] : f32 from vector<1x1x1xf32>
    %c12_i32_74 = arith.constant 12 : i32
    %278 = vector.broadcast %c12_i32_74 : i32 to vector<1x128xi32>
    %279 = arith.cmpi eq, %74, %278 : vector<1x128xi32>
    %cst_75 = arith.constant 0.000000e+00 : f32
    %280 = vector.broadcast %277 : f32 to vector<1x128xf32>
    %281 = vector.broadcast %cst_75 : f32 to vector<1x128xf32>
    %282 = arith.select %279, %280, %281 : vector<1x128xi1>, vector<1x128xf32>
    %283 = arith.addf %267, %282 : vector<1x128xf32>
    %c13_i32 = arith.constant 13 : i32
    %284 = vector.broadcast %c13_i32 : i32 to vector<2x256xi32>
    %285 = arith.cmpi eq, %73, %284 : vector<2x256xi32>
    %cst_76 = arith.constant 0.000000e+00 : f32
    %286 = vector.shape_cast %49 : vector<1x256xf32> to vector<1x256xf32>
    %287 = vector.broadcast %286 : vector<1x256xf32> to vector<2x256xf32>
    %288 = vector.broadcast %cst_76 : f32 to vector<2x256xf32>
    %289 = arith.select %285, %287, %288 : vector<2x256xi1>, vector<2x256xf32>
    %290 = vector.shape_cast %289 : vector<2x256xf32> to vector<1x2x256xf32>
    %cst_77 = arith.constant dense<0.000000e+00> : vector<1xf32>
    %291 = vector.multi_reduction <add>, %290, %cst_77 [1, 2] : vector<1x2x256xf32> to vector<1xf32>
    %292 = vector.shape_cast %291 : vector<1xf32> to vector<1x1x1xf32>
    %293 = vector.extract %292[0, 0, 0] : f32 from vector<1x1x1xf32>
    %c13_i32_78 = arith.constant 13 : i32
    %294 = vector.broadcast %c13_i32_78 : i32 to vector<1x128xi32>
    %295 = arith.cmpi eq, %74, %294 : vector<1x128xi32>
    %cst_79 = arith.constant 0.000000e+00 : f32
    %296 = vector.broadcast %293 : f32 to vector<1x128xf32>
    %297 = vector.broadcast %cst_79 : f32 to vector<1x128xf32>
    %298 = arith.select %295, %296, %297 : vector<1x128xi1>, vector<1x128xf32>
    %299 = arith.addf %283, %298 : vector<1x128xf32>
    %c14_i32 = arith.constant 14 : i32
    %300 = vector.broadcast %c14_i32 : i32 to vector<2x256xi32>
    %301 = arith.cmpi eq, %73, %300 : vector<2x256xi32>
    %cst_80 = arith.constant 0.000000e+00 : f32
    %302 = vector.shape_cast %49 : vector<1x256xf32> to vector<1x256xf32>
    %303 = vector.broadcast %302 : vector<1x256xf32> to vector<2x256xf32>
    %304 = vector.broadcast %cst_80 : f32 to vector<2x256xf32>
    %305 = arith.select %301, %303, %304 : vector<2x256xi1>, vector<2x256xf32>
    %306 = vector.shape_cast %305 : vector<2x256xf32> to vector<1x2x256xf32>
    %cst_81 = arith.constant dense<0.000000e+00> : vector<1xf32>
    %307 = vector.multi_reduction <add>, %306, %cst_81 [1, 2] : vector<1x2x256xf32> to vector<1xf32>
    %308 = vector.shape_cast %307 : vector<1xf32> to vector<1x1x1xf32>
    %309 = vector.extract %308[0, 0, 0] : f32 from vector<1x1x1xf32>
    %c14_i32_82 = arith.constant 14 : i32
    %310 = vector.broadcast %c14_i32_82 : i32 to vector<1x128xi32>
    %311 = arith.cmpi eq, %74, %310 : vector<1x128xi32>
    %cst_83 = arith.constant 0.000000e+00 : f32
    %312 = vector.broadcast %309 : f32 to vector<1x128xf32>
    %313 = vector.broadcast %cst_83 : f32 to vector<1x128xf32>
    %314 = arith.select %311, %312, %313 : vector<1x128xi1>, vector<1x128xf32>
    %315 = arith.addf %299, %314 : vector<1x128xf32>
    %c15_i32 = arith.constant 15 : i32
    %316 = vector.broadcast %c15_i32 : i32 to vector<2x256xi32>
    %317 = arith.cmpi eq, %73, %316 : vector<2x256xi32>
    %cst_84 = arith.constant 0.000000e+00 : f32
    %318 = vector.shape_cast %49 : vector<1x256xf32> to vector<1x256xf32>
    %319 = vector.broadcast %318 : vector<1x256xf32> to vector<2x256xf32>
    %320 = vector.broadcast %cst_84 : f32 to vector<2x256xf32>
    %321 = arith.select %317, %319, %320 : vector<2x256xi1>, vector<2x256xf32>
    %322 = vector.shape_cast %321 : vector<2x256xf32> to vector<1x2x256xf32>
    %cst_85 = arith.constant dense<0.000000e+00> : vector<1xf32>
    %323 = vector.multi_reduction <add>, %322, %cst_85 [1, 2] : vector<1x2x256xf32> to vector<1xf32>
    %324 = vector.shape_cast %323 : vector<1xf32> to vector<1x1x1xf32>
    %325 = vector.extract %324[0, 0, 0] : f32 from vector<1x1x1xf32>
    %c15_i32_86 = arith.constant 15 : i32
    %326 = vector.broadcast %c15_i32_86 : i32 to vector<1x128xi32>
    %327 = arith.cmpi eq, %74, %326 : vector<1x128xi32>
    %cst_87 = arith.constant 0.000000e+00 : f32
    %328 = vector.broadcast %325 : f32 to vector<1x128xf32>
    %329 = vector.broadcast %cst_87 : f32 to vector<1x128xf32>
    %330 = arith.select %327, %328, %329 : vector<1x128xi1>, vector<1x128xf32>
    %331 = arith.addf %315, %330 : vector<1x128xf32>
    %c16_i32 = arith.constant 16 : i32
    %332 = vector.broadcast %c16_i32 : i32 to vector<2x256xi32>
    %333 = arith.cmpi eq, %73, %332 : vector<2x256xi32>
    %cst_88 = arith.constant 0.000000e+00 : f32
    %334 = vector.shape_cast %49 : vector<1x256xf32> to vector<1x256xf32>
    %335 = vector.broadcast %334 : vector<1x256xf32> to vector<2x256xf32>
    %336 = vector.broadcast %cst_88 : f32 to vector<2x256xf32>
    %337 = arith.select %333, %335, %336 : vector<2x256xi1>, vector<2x256xf32>
    %338 = vector.shape_cast %337 : vector<2x256xf32> to vector<1x2x256xf32>
    %cst_89 = arith.constant dense<0.000000e+00> : vector<1xf32>
    %339 = vector.multi_reduction <add>, %338, %cst_89 [1, 2] : vector<1x2x256xf32> to vector<1xf32>
    %340 = vector.shape_cast %339 : vector<1xf32> to vector<1x1x1xf32>
    %341 = vector.extract %340[0, 0, 0] : f32 from vector<1x1x1xf32>
    %c16_i32_90 = arith.constant 16 : i32
    %342 = vector.broadcast %c16_i32_90 : i32 to vector<1x128xi32>
    %343 = arith.cmpi eq, %74, %342 : vector<1x128xi32>
    %cst_91 = arith.constant 0.000000e+00 : f32
    %344 = vector.broadcast %341 : f32 to vector<1x128xf32>
    %345 = vector.broadcast %cst_91 : f32 to vector<1x128xf32>
    %346 = arith.select %343, %344, %345 : vector<1x128xi1>, vector<1x128xf32>
    %347 = arith.addf %331, %346 : vector<1x128xf32>
    %c17_i32 = arith.constant 17 : i32
    %348 = vector.broadcast %c17_i32 : i32 to vector<2x256xi32>
    %349 = arith.cmpi eq, %73, %348 : vector<2x256xi32>
    %cst_92 = arith.constant 0.000000e+00 : f32
    %350 = vector.shape_cast %49 : vector<1x256xf32> to vector<1x256xf32>
    %351 = vector.broadcast %350 : vector<1x256xf32> to vector<2x256xf32>
    %352 = vector.broadcast %cst_92 : f32 to vector<2x256xf32>
    %353 = arith.select %349, %351, %352 : vector<2x256xi1>, vector<2x256xf32>
    %354 = vector.shape_cast %353 : vector<2x256xf32> to vector<1x2x256xf32>
    %cst_93 = arith.constant dense<0.000000e+00> : vector<1xf32>
    %355 = vector.multi_reduction <add>, %354, %cst_93 [1, 2] : vector<1x2x256xf32> to vector<1xf32>
    %356 = vector.shape_cast %355 : vector<1xf32> to vector<1x1x1xf32>
    %357 = vector.extract %356[0, 0, 0] : f32 from vector<1x1x1xf32>
    %c17_i32_94 = arith.constant 17 : i32
    %358 = vector.broadcast %c17_i32_94 : i32 to vector<1x128xi32>
    %359 = arith.cmpi eq, %74, %358 : vector<1x128xi32>
    %cst_95 = arith.constant 0.000000e+00 : f32
    %360 = vector.broadcast %357 : f32 to vector<1x128xf32>
    %361 = vector.broadcast %cst_95 : f32 to vector<1x128xf32>
    %362 = arith.select %359, %360, %361 : vector<1x128xi1>, vector<1x128xf32>
    %363 = arith.addf %347, %362 : vector<1x128xf32>
    %c18_i32 = arith.constant 18 : i32
    %364 = vector.broadcast %c18_i32 : i32 to vector<2x256xi32>
    %365 = arith.cmpi eq, %73, %364 : vector<2x256xi32>
    %cst_96 = arith.constant 0.000000e+00 : f32
    %366 = vector.shape_cast %49 : vector<1x256xf32> to vector<1x256xf32>
    %367 = vector.broadcast %366 : vector<1x256xf32> to vector<2x256xf32>
    %368 = vector.broadcast %cst_96 : f32 to vector<2x256xf32>
    %369 = arith.select %365, %367, %368 : vector<2x256xi1>, vector<2x256xf32>
    %370 = vector.shape_cast %369 : vector<2x256xf32> to vector<1x2x256xf32>
    %cst_97 = arith.constant dense<0.000000e+00> : vector<1xf32>
    %371 = vector.multi_reduction <add>, %370, %cst_97 [1, 2] : vector<1x2x256xf32> to vector<1xf32>
    %372 = vector.shape_cast %371 : vector<1xf32> to vector<1x1x1xf32>
    %373 = vector.extract %372[0, 0, 0] : f32 from vector<1x1x1xf32>
    %c18_i32_98 = arith.constant 18 : i32
    %374 = vector.broadcast %c18_i32_98 : i32 to vector<1x128xi32>
    %375 = arith.cmpi eq, %74, %374 : vector<1x128xi32>
    %cst_99 = arith.constant 0.000000e+00 : f32
    %376 = vector.broadcast %373 : f32 to vector<1x128xf32>
    %377 = vector.broadcast %cst_99 : f32 to vector<1x128xf32>
    %378 = arith.select %375, %376, %377 : vector<1x128xi1>, vector<1x128xf32>
    %379 = arith.addf %363, %378 : vector<1x128xf32>
    %c19_i32 = arith.constant 19 : i32
    %380 = vector.broadcast %c19_i32 : i32 to vector<2x256xi32>
    %381 = arith.cmpi eq, %73, %380 : vector<2x256xi32>
    %cst_100 = arith.constant 0.000000e+00 : f32
    %382 = vector.shape_cast %49 : vector<1x256xf32> to vector<1x256xf32>
    %383 = vector.broadcast %382 : vector<1x256xf32> to vector<2x256xf32>
    %384 = vector.broadcast %cst_100 : f32 to vector<2x256xf32>
    %385 = arith.select %381, %383, %384 : vector<2x256xi1>, vector<2x256xf32>
    %386 = vector.shape_cast %385 : vector<2x256xf32> to vector<1x2x256xf32>
    %cst_101 = arith.constant dense<0.000000e+00> : vector<1xf32>
    %387 = vector.multi_reduction <add>, %386, %cst_101 [1, 2] : vector<1x2x256xf32> to vector<1xf32>
    %388 = vector.shape_cast %387 : vector<1xf32> to vector<1x1x1xf32>
    %389 = vector.extract %388[0, 0, 0] : f32 from vector<1x1x1xf32>
    %c19_i32_102 = arith.constant 19 : i32
    %390 = vector.broadcast %c19_i32_102 : i32 to vector<1x128xi32>
    %391 = arith.cmpi eq, %74, %390 : vector<1x128xi32>
    %cst_103 = arith.constant 0.000000e+00 : f32
    %392 = vector.broadcast %389 : f32 to vector<1x128xf32>
    %393 = vector.broadcast %cst_103 : f32 to vector<1x128xf32>
    %394 = arith.select %391, %392, %393 : vector<1x128xi1>, vector<1x128xf32>
    %395 = arith.addf %379, %394 : vector<1x128xf32>
    %c20_i32 = arith.constant 20 : i32
    %396 = vector.broadcast %c20_i32 : i32 to vector<2x256xi32>
    %397 = arith.cmpi eq, %73, %396 : vector<2x256xi32>
    %cst_104 = arith.constant 0.000000e+00 : f32
    %398 = vector.shape_cast %49 : vector<1x256xf32> to vector<1x256xf32>
    %399 = vector.broadcast %398 : vector<1x256xf32> to vector<2x256xf32>
    %400 = vector.broadcast %cst_104 : f32 to vector<2x256xf32>
    %401 = arith.select %397, %399, %400 : vector<2x256xi1>, vector<2x256xf32>
    %402 = vector.shape_cast %401 : vector<2x256xf32> to vector<1x2x256xf32>
    %cst_105 = arith.constant dense<0.000000e+00> : vector<1xf32>
    %403 = vector.multi_reduction <add>, %402, %cst_105 [1, 2] : vector<1x2x256xf32> to vector<1xf32>
    %404 = vector.shape_cast %403 : vector<1xf32> to vector<1x1x1xf32>
    %405 = vector.extract %404[0, 0, 0] : f32 from vector<1x1x1xf32>
    %c20_i32_106 = arith.constant 20 : i32
    %406 = vector.broadcast %c20_i32_106 : i32 to vector<1x128xi32>
    %407 = arith.cmpi eq, %74, %406 : vector<1x128xi32>
    %cst_107 = arith.constant 0.000000e+00 : f32
    %408 = vector.broadcast %405 : f32 to vector<1x128xf32>
    %409 = vector.broadcast %cst_107 : f32 to vector<1x128xf32>
    %410 = arith.select %407, %408, %409 : vector<1x128xi1>, vector<1x128xf32>
    %411 = arith.addf %395, %410 : vector<1x128xf32>
    %c21_i32 = arith.constant 21 : i32
    %412 = vector.broadcast %c21_i32 : i32 to vector<2x256xi32>
    %413 = arith.cmpi eq, %73, %412 : vector<2x256xi32>
    %cst_108 = arith.constant 0.000000e+00 : f32
    %414 = vector.shape_cast %49 : vector<1x256xf32> to vector<1x256xf32>
    %415 = vector.broadcast %414 : vector<1x256xf32> to vector<2x256xf32>
    %416 = vector.broadcast %cst_108 : f32 to vector<2x256xf32>
    %417 = arith.select %413, %415, %416 : vector<2x256xi1>, vector<2x256xf32>
    %418 = vector.shape_cast %417 : vector<2x256xf32> to vector<1x2x256xf32>
    %cst_109 = arith.constant dense<0.000000e+00> : vector<1xf32>
    %419 = vector.multi_reduction <add>, %418, %cst_109 [1, 2] : vector<1x2x256xf32> to vector<1xf32>
    %420 = vector.shape_cast %419 : vector<1xf32> to vector<1x1x1xf32>
    %421 = vector.extract %420[0, 0, 0] : f32 from vector<1x1x1xf32>
    %c21_i32_110 = arith.constant 21 : i32
    %422 = vector.broadcast %c21_i32_110 : i32 to vector<1x128xi32>
    %423 = arith.cmpi eq, %74, %422 : vector<1x128xi32>
    %cst_111 = arith.constant 0.000000e+00 : f32
    %424 = vector.broadcast %421 : f32 to vector<1x128xf32>
    %425 = vector.broadcast %cst_111 : f32 to vector<1x128xf32>
    %426 = arith.select %423, %424, %425 : vector<1x128xi1>, vector<1x128xf32>
    %427 = arith.addf %411, %426 : vector<1x128xf32>
    %c22_i32 = arith.constant 22 : i32
    %428 = vector.broadcast %c22_i32 : i32 to vector<2x256xi32>
    %429 = arith.cmpi eq, %73, %428 : vector<2x256xi32>
    %cst_112 = arith.constant 0.000000e+00 : f32
    %430 = vector.shape_cast %49 : vector<1x256xf32> to vector<1x256xf32>
    %431 = vector.broadcast %430 : vector<1x256xf32> to vector<2x256xf32>
    %432 = vector.broadcast %cst_112 : f32 to vector<2x256xf32>
    %433 = arith.select %429, %431, %432 : vector<2x256xi1>, vector<2x256xf32>
    %434 = vector.shape_cast %433 : vector<2x256xf32> to vector<1x2x256xf32>
    %cst_113 = arith.constant dense<0.000000e+00> : vector<1xf32>
    %435 = vector.multi_reduction <add>, %434, %cst_113 [1, 2] : vector<1x2x256xf32> to vector<1xf32>
    %436 = vector.shape_cast %435 : vector<1xf32> to vector<1x1x1xf32>
    %437 = vector.extract %436[0, 0, 0] : f32 from vector<1x1x1xf32>
    %c22_i32_114 = arith.constant 22 : i32
    %438 = vector.broadcast %c22_i32_114 : i32 to vector<1x128xi32>
    %439 = arith.cmpi eq, %74, %438 : vector<1x128xi32>
    %cst_115 = arith.constant 0.000000e+00 : f32
    %440 = vector.broadcast %437 : f32 to vector<1x128xf32>
    %441 = vector.broadcast %cst_115 : f32 to vector<1x128xf32>
    %442 = arith.select %439, %440, %441 : vector<1x128xi1>, vector<1x128xf32>
    %443 = arith.addf %427, %442 : vector<1x128xf32>
    %c23_i32_116 = arith.constant 23 : i32
    %444 = vector.broadcast %c23_i32_116 : i32 to vector<2x256xi32>
    %445 = arith.cmpi eq, %73, %444 : vector<2x256xi32>
    %cst_117 = arith.constant 0.000000e+00 : f32
    %446 = vector.shape_cast %49 : vector<1x256xf32> to vector<1x256xf32>
    %447 = vector.broadcast %446 : vector<1x256xf32> to vector<2x256xf32>
    %448 = vector.broadcast %cst_117 : f32 to vector<2x256xf32>
    %449 = arith.select %445, %447, %448 : vector<2x256xi1>, vector<2x256xf32>
    %450 = vector.shape_cast %449 : vector<2x256xf32> to vector<1x2x256xf32>
    %cst_118 = arith.constant dense<0.000000e+00> : vector<1xf32>
    %451 = vector.multi_reduction <add>, %450, %cst_118 [1, 2] : vector<1x2x256xf32> to vector<1xf32>
    %452 = vector.shape_cast %451 : vector<1xf32> to vector<1x1x1xf32>
    %453 = vector.extract %452[0, 0, 0] : f32 from vector<1x1x1xf32>
    %c23_i32_119 = arith.constant 23 : i32
    %454 = vector.broadcast %c23_i32_119 : i32 to vector<1x128xi32>
    %455 = arith.cmpi eq, %74, %454 : vector<1x128xi32>
    %cst_120 = arith.constant 0.000000e+00 : f32
    %456 = vector.broadcast %453 : f32 to vector<1x128xf32>
    %457 = vector.broadcast %cst_120 : f32 to vector<1x128xf32>
    %458 = arith.select %455, %456, %457 : vector<1x128xi1>, vector<1x128xf32>
    %459 = arith.addf %443, %458 : vector<1x128xf32>
    %c24_i32 = arith.constant 24 : i32
    %460 = vector.broadcast %c24_i32 : i32 to vector<2x256xi32>
    %461 = arith.cmpi eq, %73, %460 : vector<2x256xi32>
    %cst_121 = arith.constant 0.000000e+00 : f32
    %462 = vector.shape_cast %49 : vector<1x256xf32> to vector<1x256xf32>
    %463 = vector.broadcast %462 : vector<1x256xf32> to vector<2x256xf32>
    %464 = vector.broadcast %cst_121 : f32 to vector<2x256xf32>
    %465 = arith.select %461, %463, %464 : vector<2x256xi1>, vector<2x256xf32>
    %466 = vector.shape_cast %465 : vector<2x256xf32> to vector<1x2x256xf32>
    %cst_122 = arith.constant dense<0.000000e+00> : vector<1xf32>
    %467 = vector.multi_reduction <add>, %466, %cst_122 [1, 2] : vector<1x2x256xf32> to vector<1xf32>
    %468 = vector.shape_cast %467 : vector<1xf32> to vector<1x1x1xf32>
    %469 = vector.extract %468[0, 0, 0] : f32 from vector<1x1x1xf32>
    %c24_i32_123 = arith.constant 24 : i32
    %470 = vector.broadcast %c24_i32_123 : i32 to vector<1x128xi32>
    %471 = arith.cmpi eq, %74, %470 : vector<1x128xi32>
    %cst_124 = arith.constant 0.000000e+00 : f32
    %472 = vector.broadcast %469 : f32 to vector<1x128xf32>
    %473 = vector.broadcast %cst_124 : f32 to vector<1x128xf32>
    %474 = arith.select %471, %472, %473 : vector<1x128xi1>, vector<1x128xf32>
    %475 = arith.addf %459, %474 : vector<1x128xf32>
    %c25_i32 = arith.constant 25 : i32
    %476 = vector.broadcast %c25_i32 : i32 to vector<2x256xi32>
    %477 = arith.cmpi eq, %73, %476 : vector<2x256xi32>
    %cst_125 = arith.constant 0.000000e+00 : f32
    %478 = vector.shape_cast %49 : vector<1x256xf32> to vector<1x256xf32>
    %479 = vector.broadcast %478 : vector<1x256xf32> to vector<2x256xf32>
    %480 = vector.broadcast %cst_125 : f32 to vector<2x256xf32>
    %481 = arith.select %477, %479, %480 : vector<2x256xi1>, vector<2x256xf32>
    %482 = vector.shape_cast %481 : vector<2x256xf32> to vector<1x2x256xf32>
    %cst_126 = arith.constant dense<0.000000e+00> : vector<1xf32>
    %483 = vector.multi_reduction <add>, %482, %cst_126 [1, 2] : vector<1x2x256xf32> to vector<1xf32>
    %484 = vector.shape_cast %483 : vector<1xf32> to vector<1x1x1xf32>
    %485 = vector.extract %484[0, 0, 0] : f32 from vector<1x1x1xf32>
    %c25_i32_127 = arith.constant 25 : i32
    %486 = vector.broadcast %c25_i32_127 : i32 to vector<1x128xi32>
    %487 = arith.cmpi eq, %74, %486 : vector<1x128xi32>
    %cst_128 = arith.constant 0.000000e+00 : f32
    %488 = vector.broadcast %485 : f32 to vector<1x128xf32>
    %489 = vector.broadcast %cst_128 : f32 to vector<1x128xf32>
    %490 = arith.select %487, %488, %489 : vector<1x128xi1>, vector<1x128xf32>
    %491 = arith.addf %475, %490 : vector<1x128xf32>
    %c26_i32 = arith.constant 26 : i32
    %492 = vector.broadcast %c26_i32 : i32 to vector<2x256xi32>
    %493 = arith.cmpi eq, %73, %492 : vector<2x256xi32>
    %cst_129 = arith.constant 0.000000e+00 : f32
    %494 = vector.shape_cast %49 : vector<1x256xf32> to vector<1x256xf32>
    %495 = vector.broadcast %494 : vector<1x256xf32> to vector<2x256xf32>
    %496 = vector.broadcast %cst_129 : f32 to vector<2x256xf32>
    %497 = arith.select %493, %495, %496 : vector<2x256xi1>, vector<2x256xf32>
    %498 = vector.shape_cast %497 : vector<2x256xf32> to vector<1x2x256xf32>
    %cst_130 = arith.constant dense<0.000000e+00> : vector<1xf32>
    %499 = vector.multi_reduction <add>, %498, %cst_130 [1, 2] : vector<1x2x256xf32> to vector<1xf32>
    %500 = vector.shape_cast %499 : vector<1xf32> to vector<1x1x1xf32>
    %501 = vector.extract %500[0, 0, 0] : f32 from vector<1x1x1xf32>
    %c26_i32_131 = arith.constant 26 : i32
    %502 = vector.broadcast %c26_i32_131 : i32 to vector<1x128xi32>
    %503 = arith.cmpi eq, %74, %502 : vector<1x128xi32>
    %cst_132 = arith.constant 0.000000e+00 : f32
    %504 = vector.broadcast %501 : f32 to vector<1x128xf32>
    %505 = vector.broadcast %cst_132 : f32 to vector<1x128xf32>
    %506 = arith.select %503, %504, %505 : vector<1x128xi1>, vector<1x128xf32>
    %507 = arith.addf %491, %506 : vector<1x128xf32>
    %c27_i32_133 = arith.constant 27 : i32
    %508 = vector.broadcast %c27_i32_133 : i32 to vector<2x256xi32>
    %509 = arith.cmpi eq, %73, %508 : vector<2x256xi32>
    %cst_134 = arith.constant 0.000000e+00 : f32
    %510 = vector.shape_cast %49 : vector<1x256xf32> to vector<1x256xf32>
    %511 = vector.broadcast %510 : vector<1x256xf32> to vector<2x256xf32>
    %512 = vector.broadcast %cst_134 : f32 to vector<2x256xf32>
    %513 = arith.select %509, %511, %512 : vector<2x256xi1>, vector<2x256xf32>
    %514 = vector.shape_cast %513 : vector<2x256xf32> to vector<1x2x256xf32>
    %cst_135 = arith.constant dense<0.000000e+00> : vector<1xf32>
    %515 = vector.multi_reduction <add>, %514, %cst_135 [1, 2] : vector<1x2x256xf32> to vector<1xf32>
    %516 = vector.shape_cast %515 : vector<1xf32> to vector<1x1x1xf32>
    %517 = vector.extract %516[0, 0, 0] : f32 from vector<1x1x1xf32>
    %c27_i32_136 = arith.constant 27 : i32
    %518 = vector.broadcast %c27_i32_136 : i32 to vector<1x128xi32>
    %519 = arith.cmpi eq, %74, %518 : vector<1x128xi32>
    %cst_137 = arith.constant 0.000000e+00 : f32
    %520 = vector.broadcast %517 : f32 to vector<1x128xf32>
    %521 = vector.broadcast %cst_137 : f32 to vector<1x128xf32>
    %522 = arith.select %519, %520, %521 : vector<1x128xi1>, vector<1x128xf32>
    %523 = arith.addf %507, %522 : vector<1x128xf32>
    %c120_i32 = arith.constant 120 : i32
    %524 = vector.broadcast %c120_i32 : i32 to vector<1x128xi32>
    %525 = arith.cmpi eq, %74, %524 : vector<1x128xi32>
    %cst_138 = arith.constant 0.000000e+00 : f32
    %526 = vector.broadcast %55 : f32 to vector<1x128xf32>
    %527 = vector.broadcast %cst_138 : f32 to vector<1x128xf32>
    %528 = arith.select %525, %526, %527 : vector<1x128xi1>, vector<1x128xf32>
    %529 = arith.addf %523, %528 : vector<1x128xf32>
    %c121_i32 = arith.constant 121 : i32
    %530 = vector.broadcast %c121_i32 : i32 to vector<1x128xi32>
    %531 = arith.cmpi eq, %74, %530 : vector<1x128xi32>
    %cst_139 = arith.constant 0.000000e+00 : f32
    %532 = vector.broadcast %59 : f32 to vector<1x128xf32>
    %533 = vector.broadcast %cst_139 : f32 to vector<1x128xf32>
    %534 = arith.select %531, %532, %533 : vector<1x128xi1>, vector<1x128xf32>
    %535 = arith.addf %529, %534 : vector<1x128xf32>
    %c122_i32 = arith.constant 122 : i32
    %536 = vector.broadcast %c122_i32 : i32 to vector<1x128xi32>
    %537 = arith.cmpi eq, %74, %536 : vector<1x128xi32>
    %cst_140 = arith.constant 0.000000e+00 : f32
    %538 = vector.broadcast %64 : f32 to vector<1x128xf32>
    %539 = vector.broadcast %cst_140 : f32 to vector<1x128xf32>
    %540 = arith.select %537, %538, %539 : vector<1x128xi1>, vector<1x128xf32>
    %541 = arith.addf %535, %540 : vector<1x128xf32>
    %542 = tpu.iota {dimensions = array<i32: 0>} : vector<8x128xi32>
    %c0_i32_141 = arith.constant 0 : i32
    %543 = vector.broadcast %c0_i32_141 : i32 to vector<8x128xi32>
    %544 = arith.cmpi eq, %542, %543 : vector<8x128xi32>
    %cst_142 = arith.constant 0.000000e+00 : f32
    %545 = vector.shape_cast %541 : vector<1x128xf32> to vector<1x128xf32>
    %546 = vector.broadcast %545 : vector<1x128xf32> to vector<8x128xf32>
    %547 = vector.broadcast %cst_142 : f32 to vector<8x128xf32>
    %548 = arith.select %544, %546, %547 : vector<8x128xi1>, vector<8x128xf32>
    %c0_143 = arith.constant 0 : index
    %c0_144 = arith.constant 0 : index
    %549 = vector.load %arg4[%c0_143, %c0_144] : memref<8x128xf32, #tpu.memory_space<vmem>>, vector<8x128xf32>
    tpu.vector_store %arg4[%c0_143, %c0_144], %548 {strides = array<i32>} : memref<8x128xf32, #tpu.memory_space<vmem>>, vector<8x128xf32>,
    return
  }
  func.func @transform_0(%arg0: i32) -> (i32, i32) {
    %c0_i32 = arith.constant 0 : i32
    %c0_i32_0 = arith.constant 0 : i32
    return %c0_i32, %arg0 : i32, i32
  }
  func.func @transform_1(%arg0: i32) -> (i32, i32) {
    %c0_i32 = arith.constant 0 : i32
    %c0_i32_0 = arith.constant 0 : i32
    return %c0_i32, %arg0 : i32, i32
  }
  func.func @transform_2(%arg0: i32) -> (i32, i32) {
    %c0_i32 = arith.constant 0 : i32
    %c0_i32_0 = arith.constant 0 : i32
    return %c0_i32, %arg0 : i32, i32
  }
  func.func @transform_3(%arg0: i32) -> (i32, i32) {
    %c0_i32 = arith.constant 0 : i32
    %c0_i32_0 = arith.constant 0 : i32
    return %arg0, %c0_i32 : i32, i32
  }
}

module attributes {stable_mosaic.version = 11 : i64} {
  func.func @_select_kernel(%arg0: i32, %arg1: memref<4xf32, #tpu.memory_space<smem>>, %arg2: memref<2x256xf32, #tpu.memory_space<vmem>>, %arg3: memref<2x256xf32, #tpu.memory_space<vmem>>, %arg4: memref<2x256xf32, #tpu.memory_space<vmem>>, %arg5: memref<8x128xf32, #tpu.memory_space<vmem>>) attributes {dimension_semantics = [#tpu.dimension_semantics<parallel>], iteration_bounds = array<i64: 1>, scalar_prefetch = 0 : i64, scratch_operands = 0 : i64, tpu.core_type = #tpu.core_type<tc>, window_params = [{transform_indices = @transform_0, window_bounds = array<i64: 4>}, {transform_indices = @transform_1, window_bounds = array<i64: 2, 256>}, {transform_indices = @transform_2, window_bounds = array<i64: 2, 256>}, {transform_indices = @transform_3, window_bounds = array<i64: 2, 256>}, {transform_indices = @transform_4, window_bounds = array<i64: 8, 128>}]} {
    %c0 = arith.constant 0 : index
    %0 = memref.load %arg1[%c0] : memref<4xf32, #tpu.memory_space<smem>>
    %c1 = arith.constant 1 : index
    %1 = memref.load %arg1[%c1] : memref<4xf32, #tpu.memory_space<smem>>
    %c2 = arith.constant 2 : index
    %2 = memref.load %arg1[%c2] : memref<4xf32, #tpu.memory_space<smem>>
    %c0_0 = arith.constant 0 : index
    %c0_1 = arith.constant 0 : index
    %3 = vector.load %arg2[%c0_0, %c0_1] : memref<2x256xf32, #tpu.memory_space<vmem>>, vector<2x256xf32>
    %cst = arith.constant 0.000000e+00 : f32
    %cst_2 = arith.constant 1.000000e+00 : f32
    %4 = vector.broadcast %cst : f32 to vector<2x256xf32>
    %5 = arith.maximumf %4, %3 : vector<2x256xf32>
    %6 = vector.broadcast %cst_2 : f32 to vector<2x256xf32>
    %7 = arith.minimumf %6, %5 : vector<2x256xf32>
    %c0_3 = arith.constant 0 : index
    %c0_4 = arith.constant 0 : index
    %8 = vector.load %arg3[%c0_3, %c0_4] : memref<2x256xf32, #tpu.memory_space<vmem>>, vector<2x256xf32>
    %c0_5 = arith.constant 0 : index
    %c0_6 = arith.constant 0 : index
    %9 = vector.load %arg4[%c0_5, %c0_6] : memref<2x256xf32, #tpu.memory_space<vmem>>, vector<2x256xf32>
    %c256_i32 = arith.constant 256 : i32
    %10 = arith.muli %arg0, %c256_i32 : i32
    %11 = tpu.iota {dimensions = array<i32: 1>} : vector<1x256xi32>
    %12 = vector.broadcast %10 : i32 to vector<1x256xi32>
    %13 = arith.addi %12, %11 : vector<1x256xi32>
    %c256_i32_7 = arith.constant 256 : i32
    %14 = vector.broadcast %c256_i32_7 : i32 to vector<1x256xi32>
    %15 = arith.cmpi slt, %13, %14 : vector<1x256xi32>
    %16 = math.log %7 : vector<2x256xf32>
    %cst_8 = arith.constant -1.000000e+02 : f32
    %17 = vector.broadcast %cst_8 : f32 to vector<2x256xf32>
    %18 = arith.maximumf %16, %17 : vector<2x256xf32>
    %cst_9 = arith.constant 1.000000e+00 : f32
    %19 = vector.broadcast %cst_9 : f32 to vector<2x256xf32>
    %20 = arith.subf %19, %7 : vector<2x256xf32>
    %21 = math.log %20 : vector<2x256xf32>
    %cst_10 = arith.constant -1.000000e+02 : f32
    %22 = vector.broadcast %cst_10 : f32 to vector<2x256xf32>
    %23 = arith.maximumf %21, %22 : vector<2x256xf32>
    %24 = arith.mulf %8, %18 : vector<2x256xf32>
    %cst_11 = arith.constant 1.000000e+00 : f32
    %25 = vector.broadcast %cst_11 : f32 to vector<2x256xf32>
    %26 = arith.subf %25, %8 : vector<2x256xf32>
    %27 = arith.mulf %26, %23 : vector<2x256xf32>
    %28 = arith.addf %24, %27 : vector<2x256xf32>
    %cst_12 = arith.constant 0.000000e+00 : f32
    %29 = vector.broadcast %cst_12 : f32 to vector<2x256xf32>
    %30 = arith.subf %29, %28 : vector<2x256xf32>
    %cst_13 = arith.constant 0.000000e+00 : f32
    %31 = vector.shape_cast %15 : vector<1x256xi1> to vector<1x256xi1>
    %32 = vector.broadcast %31 : vector<1x256xi1> to vector<2x256xi1>
    %33 = vector.broadcast %cst_13 : f32 to vector<2x256xf32>
    %34 = arith.select %32, %30, %33 : vector<2x256xi1>, vector<2x256xf32>
    %cst_14 = arith.constant 1.000000e+00 : f32
    %35 = vector.broadcast %cst_14 : f32 to vector<2x256xf32>
    %36 = arith.subf %35, %8 : vector<2x256xf32>
    %37 = arith.mulf %36, %9 : vector<2x256xf32>
    %38 = math.floor %37 : vector<2x256xf32>
    %cst_15 = arith.constant 0.000000e+00 : f32
    %39 = vector.shape_cast %15 : vector<1x256xi1> to vector<1x256xi1>
    %40 = vector.broadcast %39 : vector<1x256xi1> to vector<2x256xi1>
    %41 = vector.broadcast %cst_15 : f32 to vector<2x256xf32>
    %42 = arith.select %40, %38, %41 : vector<2x256xi1>, vector<2x256xf32>
    %cst_16 = arith.constant dense<0.000000e+00> : vector<256xf32>
    %43 = vector.multi_reduction <add>, %42, %cst_16 [0] : vector<2x256xf32> to vector<256xf32>
    %44 = vector.shape_cast %43 : vector<256xf32> to vector<1x256xf32>
    %45 = vector.broadcast %1 : f32 to vector<2x256xf32>
    %46 = arith.cmpf oge, %34, %45 : vector<2x256xf32>
    %cst_17 = arith.constant 0.000000e+00 : f32
    %47 = vector.shape_cast %44 : vector<1x256xf32> to vector<1x256xf32>
    %48 = vector.broadcast %47 : vector<1x256xf32> to vector<2x256xf32>
    %49 = vector.broadcast %cst_17 : f32 to vector<2x256xf32>
    %50 = arith.select %46, %48, %49 : vector<2x256xi1>, vector<2x256xf32>
    %51 = vector.shape_cast %50 : vector<2x256xf32> to vector<1x2x256xf32>
    %cst_18 = arith.constant dense<0.000000e+00> : vector<1xf32>
    %52 = vector.multi_reduction <add>, %51, %cst_18 [1, 2] : vector<1x2x256xf32> to vector<1xf32>
    %53 = vector.shape_cast %52 : vector<1xf32> to vector<1x1x1xf32>
    %54 = vector.extract %53[0, 0, 0] : f32 from vector<1x1x1xf32>
    %55 = vector.broadcast %44 : vector<1x256xf32> to vector<2x256xf32>
    %56 = arith.mulf %55, %34 : vector<2x256xf32>
    %cst_19 = arith.constant 0.000000e+00 : f32
    %57 = vector.broadcast %cst_19 : f32 to vector<2x256xf32>
    %58 = arith.select %46, %56, %57 : vector<2x256xi1>, vector<2x256xf32>
    %59 = vector.shape_cast %58 : vector<2x256xf32> to vector<1x2x256xf32>
    %cst_20 = arith.constant dense<0.000000e+00> : vector<1xf32>
    %60 = vector.multi_reduction <add>, %59, %cst_20 [1, 2] : vector<1x2x256xf32> to vector<1xf32>
    %61 = vector.shape_cast %60 : vector<1xf32> to vector<1x1x1xf32>
    %62 = vector.extract %61[0, 0, 0] : f32 from vector<1x1x1xf32>
    %63 = vector.broadcast %0 : f32 to vector<2x256xf32>
    %64 = arith.cmpf oge, %34, %63 : vector<2x256xf32>
    %65 = vector.broadcast %1 : f32 to vector<2x256xf32>
    %66 = arith.cmpf olt, %34, %65 : vector<2x256xf32>
    %67 = arith.andi %64, %66 : vector<2x256xi1>
    %cst_21 = arith.constant 0.000000e+00 : f32
    %68 = vector.shape_cast %44 : vector<1x256xf32> to vector<1x256xf32>
    %69 = vector.broadcast %68 : vector<1x256xf32> to vector<2x256xf32>
    %70 = vector.broadcast %cst_21 : f32 to vector<2x256xf32>
    %71 = arith.select %67, %69, %70 : vector<2x256xi1>, vector<2x256xf32>
    %72 = vector.broadcast %0 : f32 to vector<2x256xf32>
    %73 = arith.subf %34, %72 : vector<2x256xf32>
    %74 = vector.broadcast %2 : f32 to vector<2x256xf32>
    %75 = arith.mulf %73, %74 : vector<2x256xf32>
    %76 = arith.fptosi %75 : vector<2x256xf32> to vector<2x256xi32>
    %c0_i32 = arith.constant 0 : i32
    %c31_i32 = arith.constant 31 : i32
    %77 = vector.broadcast %c0_i32 : i32 to vector<2x256xi32>
    %78 = arith.maxsi %77, %76 : vector<2x256xi32>
    %79 = vector.broadcast %c31_i32 : i32 to vector<2x256xi32>
    %80 = arith.minsi %79, %78 : vector<2x256xi32>
    %81 = tpu.iota {dimensions = array<i32: 1>} : vector<1x128xi32>
    %cst_22 = arith.constant 0.000000e+00 : f32
    %82 = vector.broadcast %cst_22 : f32 to vector<1x128xf32>
    %c0_i32_23 = arith.constant 0 : i32
    %83 = vector.broadcast %c0_i32_23 : i32 to vector<2x256xi32>
    %84 = arith.cmpi eq, %80, %83 : vector<2x256xi32>
    %cst_24 = arith.constant 0.000000e+00 : f32
    %85 = vector.broadcast %cst_24 : f32 to vector<2x256xf32>
    %86 = arith.select %84, %71, %85 : vector<2x256xi1>, vector<2x256xf32>
    %c0_i32_25 = arith.constant 0 : i32
    %87 = vector.broadcast %c0_i32_25 : i32 to vector<1x128xi32>
    %88 = arith.cmpi eq, %81, %87 : vector<1x128xi32>
    %89 = vector.shape_cast %86 : vector<2x256xf32> to vector<1x2x256xf32>
    %cst_26 = arith.constant dense<0.000000e+00> : vector<1xf32>
    %90 = vector.multi_reduction <add>, %89, %cst_26 [1, 2] : vector<1x2x256xf32> to vector<1xf32>
    %91 = vector.shape_cast %90 : vector<1xf32> to vector<1x1x1xf32>
    %92 = vector.extract %91[0, 0, 0] : f32 from vector<1x1x1xf32>
    %cst_27 = arith.constant 0.000000e+00 : f32
    %93 = vector.broadcast %92 : f32 to vector<1x128xf32>
    %94 = vector.broadcast %cst_27 : f32 to vector<1x128xf32>
    %95 = arith.select %88, %93, %94 : vector<1x128xi1>, vector<1x128xf32>
    %96 = arith.addf %82, %95 : vector<1x128xf32>
    %c32_i32 = arith.constant 32 : i32
    %97 = vector.broadcast %c32_i32 : i32 to vector<1x128xi32>
    %98 = arith.cmpi eq, %81, %97 : vector<1x128xi32>
    %99 = arith.mulf %86, %34 : vector<2x256xf32>
    %100 = vector.shape_cast %99 : vector<2x256xf32> to vector<1x2x256xf32>
    %cst_28 = arith.constant dense<0.000000e+00> : vector<1xf32>
    %101 = vector.multi_reduction <add>, %100, %cst_28 [1, 2] : vector<1x2x256xf32> to vector<1xf32>
    %102 = vector.shape_cast %101 : vector<1xf32> to vector<1x1x1xf32>
    %103 = vector.extract %102[0, 0, 0] : f32 from vector<1x1x1xf32>
    %cst_29 = arith.constant 0.000000e+00 : f32
    %104 = vector.broadcast %103 : f32 to vector<1x128xf32>
    %105 = vector.broadcast %cst_29 : f32 to vector<1x128xf32>
    %106 = arith.select %98, %104, %105 : vector<1x128xi1>, vector<1x128xf32>
    %107 = arith.addf %96, %106 : vector<1x128xf32>
    %c1_i32 = arith.constant 1 : i32
    %108 = vector.broadcast %c1_i32 : i32 to vector<2x256xi32>
    %109 = arith.cmpi eq, %80, %108 : vector<2x256xi32>
    %cst_30 = arith.constant 0.000000e+00 : f32
    %110 = vector.broadcast %cst_30 : f32 to vector<2x256xf32>
    %111 = arith.select %109, %71, %110 : vector<2x256xi1>, vector<2x256xf32>
    %c1_i32_31 = arith.constant 1 : i32
    %112 = vector.broadcast %c1_i32_31 : i32 to vector<1x128xi32>
    %113 = arith.cmpi eq, %81, %112 : vector<1x128xi32>
    %114 = vector.shape_cast %111 : vector<2x256xf32> to vector<1x2x256xf32>
    %cst_32 = arith.constant dense<0.000000e+00> : vector<1xf32>
    %115 = vector.multi_reduction <add>, %114, %cst_32 [1, 2] : vector<1x2x256xf32> to vector<1xf32>
    %116 = vector.shape_cast %115 : vector<1xf32> to vector<1x1x1xf32>
    %117 = vector.extract %116[0, 0, 0] : f32 from vector<1x1x1xf32>
    %cst_33 = arith.constant 0.000000e+00 : f32
    %118 = vector.broadcast %117 : f32 to vector<1x128xf32>
    %119 = vector.broadcast %cst_33 : f32 to vector<1x128xf32>
    %120 = arith.select %113, %118, %119 : vector<1x128xi1>, vector<1x128xf32>
    %121 = arith.addf %107, %120 : vector<1x128xf32>
    %c33_i32 = arith.constant 33 : i32
    %122 = vector.broadcast %c33_i32 : i32 to vector<1x128xi32>
    %123 = arith.cmpi eq, %81, %122 : vector<1x128xi32>
    %124 = arith.mulf %111, %34 : vector<2x256xf32>
    %125 = vector.shape_cast %124 : vector<2x256xf32> to vector<1x2x256xf32>
    %cst_34 = arith.constant dense<0.000000e+00> : vector<1xf32>
    %126 = vector.multi_reduction <add>, %125, %cst_34 [1, 2] : vector<1x2x256xf32> to vector<1xf32>
    %127 = vector.shape_cast %126 : vector<1xf32> to vector<1x1x1xf32>
    %128 = vector.extract %127[0, 0, 0] : f32 from vector<1x1x1xf32>
    %cst_35 = arith.constant 0.000000e+00 : f32
    %129 = vector.broadcast %128 : f32 to vector<1x128xf32>
    %130 = vector.broadcast %cst_35 : f32 to vector<1x128xf32>
    %131 = arith.select %123, %129, %130 : vector<1x128xi1>, vector<1x128xf32>
    %132 = arith.addf %121, %131 : vector<1x128xf32>
    %c2_i32 = arith.constant 2 : i32
    %133 = vector.broadcast %c2_i32 : i32 to vector<2x256xi32>
    %134 = arith.cmpi eq, %80, %133 : vector<2x256xi32>
    %cst_36 = arith.constant 0.000000e+00 : f32
    %135 = vector.broadcast %cst_36 : f32 to vector<2x256xf32>
    %136 = arith.select %134, %71, %135 : vector<2x256xi1>, vector<2x256xf32>
    %c2_i32_37 = arith.constant 2 : i32
    %137 = vector.broadcast %c2_i32_37 : i32 to vector<1x128xi32>
    %138 = arith.cmpi eq, %81, %137 : vector<1x128xi32>
    %139 = vector.shape_cast %136 : vector<2x256xf32> to vector<1x2x256xf32>
    %cst_38 = arith.constant dense<0.000000e+00> : vector<1xf32>
    %140 = vector.multi_reduction <add>, %139, %cst_38 [1, 2] : vector<1x2x256xf32> to vector<1xf32>
    %141 = vector.shape_cast %140 : vector<1xf32> to vector<1x1x1xf32>
    %142 = vector.extract %141[0, 0, 0] : f32 from vector<1x1x1xf32>
    %cst_39 = arith.constant 0.000000e+00 : f32
    %143 = vector.broadcast %142 : f32 to vector<1x128xf32>
    %144 = vector.broadcast %cst_39 : f32 to vector<1x128xf32>
    %145 = arith.select %138, %143, %144 : vector<1x128xi1>, vector<1x128xf32>
    %146 = arith.addf %132, %145 : vector<1x128xf32>
    %c34_i32 = arith.constant 34 : i32
    %147 = vector.broadcast %c34_i32 : i32 to vector<1x128xi32>
    %148 = arith.cmpi eq, %81, %147 : vector<1x128xi32>
    %149 = arith.mulf %136, %34 : vector<2x256xf32>
    %150 = vector.shape_cast %149 : vector<2x256xf32> to vector<1x2x256xf32>
    %cst_40 = arith.constant dense<0.000000e+00> : vector<1xf32>
    %151 = vector.multi_reduction <add>, %150, %cst_40 [1, 2] : vector<1x2x256xf32> to vector<1xf32>
    %152 = vector.shape_cast %151 : vector<1xf32> to vector<1x1x1xf32>
    %153 = vector.extract %152[0, 0, 0] : f32 from vector<1x1x1xf32>
    %cst_41 = arith.constant 0.000000e+00 : f32
    %154 = vector.broadcast %153 : f32 to vector<1x128xf32>
    %155 = vector.broadcast %cst_41 : f32 to vector<1x128xf32>
    %156 = arith.select %148, %154, %155 : vector<1x128xi1>, vector<1x128xf32>
    %157 = arith.addf %146, %156 : vector<1x128xf32>
    %c3_i32 = arith.constant 3 : i32
    %158 = vector.broadcast %c3_i32 : i32 to vector<2x256xi32>
    %159 = arith.cmpi eq, %80, %158 : vector<2x256xi32>
    %cst_42 = arith.constant 0.000000e+00 : f32
    %160 = vector.broadcast %cst_42 : f32 to vector<2x256xf32>
    %161 = arith.select %159, %71, %160 : vector<2x256xi1>, vector<2x256xf32>
    %c3_i32_43 = arith.constant 3 : i32
    %162 = vector.broadcast %c3_i32_43 : i32 to vector<1x128xi32>
    %163 = arith.cmpi eq, %81, %162 : vector<1x128xi32>
    %164 = vector.shape_cast %161 : vector<2x256xf32> to vector<1x2x256xf32>
    %cst_44 = arith.constant dense<0.000000e+00> : vector<1xf32>
    %165 = vector.multi_reduction <add>, %164, %cst_44 [1, 2] : vector<1x2x256xf32> to vector<1xf32>
    %166 = vector.shape_cast %165 : vector<1xf32> to vector<1x1x1xf32>
    %167 = vector.extract %166[0, 0, 0] : f32 from vector<1x1x1xf32>
    %cst_45 = arith.constant 0.000000e+00 : f32
    %168 = vector.broadcast %167 : f32 to vector<1x128xf32>
    %169 = vector.broadcast %cst_45 : f32 to vector<1x128xf32>
    %170 = arith.select %163, %168, %169 : vector<1x128xi1>, vector<1x128xf32>
    %171 = arith.addf %157, %170 : vector<1x128xf32>
    %c35_i32 = arith.constant 35 : i32
    %172 = vector.broadcast %c35_i32 : i32 to vector<1x128xi32>
    %173 = arith.cmpi eq, %81, %172 : vector<1x128xi32>
    %174 = arith.mulf %161, %34 : vector<2x256xf32>
    %175 = vector.shape_cast %174 : vector<2x256xf32> to vector<1x2x256xf32>
    %cst_46 = arith.constant dense<0.000000e+00> : vector<1xf32>
    %176 = vector.multi_reduction <add>, %175, %cst_46 [1, 2] : vector<1x2x256xf32> to vector<1xf32>
    %177 = vector.shape_cast %176 : vector<1xf32> to vector<1x1x1xf32>
    %178 = vector.extract %177[0, 0, 0] : f32 from vector<1x1x1xf32>
    %cst_47 = arith.constant 0.000000e+00 : f32
    %179 = vector.broadcast %178 : f32 to vector<1x128xf32>
    %180 = vector.broadcast %cst_47 : f32 to vector<1x128xf32>
    %181 = arith.select %173, %179, %180 : vector<1x128xi1>, vector<1x128xf32>
    %182 = arith.addf %171, %181 : vector<1x128xf32>
    %c4_i32 = arith.constant 4 : i32
    %183 = vector.broadcast %c4_i32 : i32 to vector<2x256xi32>
    %184 = arith.cmpi eq, %80, %183 : vector<2x256xi32>
    %cst_48 = arith.constant 0.000000e+00 : f32
    %185 = vector.broadcast %cst_48 : f32 to vector<2x256xf32>
    %186 = arith.select %184, %71, %185 : vector<2x256xi1>, vector<2x256xf32>
    %c4_i32_49 = arith.constant 4 : i32
    %187 = vector.broadcast %c4_i32_49 : i32 to vector<1x128xi32>
    %188 = arith.cmpi eq, %81, %187 : vector<1x128xi32>
    %189 = vector.shape_cast %186 : vector<2x256xf32> to vector<1x2x256xf32>
    %cst_50 = arith.constant dense<0.000000e+00> : vector<1xf32>
    %190 = vector.multi_reduction <add>, %189, %cst_50 [1, 2] : vector<1x2x256xf32> to vector<1xf32>
    %191 = vector.shape_cast %190 : vector<1xf32> to vector<1x1x1xf32>
    %192 = vector.extract %191[0, 0, 0] : f32 from vector<1x1x1xf32>
    %cst_51 = arith.constant 0.000000e+00 : f32
    %193 = vector.broadcast %192 : f32 to vector<1x128xf32>
    %194 = vector.broadcast %cst_51 : f32 to vector<1x128xf32>
    %195 = arith.select %188, %193, %194 : vector<1x128xi1>, vector<1x128xf32>
    %196 = arith.addf %182, %195 : vector<1x128xf32>
    %c36_i32 = arith.constant 36 : i32
    %197 = vector.broadcast %c36_i32 : i32 to vector<1x128xi32>
    %198 = arith.cmpi eq, %81, %197 : vector<1x128xi32>
    %199 = arith.mulf %186, %34 : vector<2x256xf32>
    %200 = vector.shape_cast %199 : vector<2x256xf32> to vector<1x2x256xf32>
    %cst_52 = arith.constant dense<0.000000e+00> : vector<1xf32>
    %201 = vector.multi_reduction <add>, %200, %cst_52 [1, 2] : vector<1x2x256xf32> to vector<1xf32>
    %202 = vector.shape_cast %201 : vector<1xf32> to vector<1x1x1xf32>
    %203 = vector.extract %202[0, 0, 0] : f32 from vector<1x1x1xf32>
    %cst_53 = arith.constant 0.000000e+00 : f32
    %204 = vector.broadcast %203 : f32 to vector<1x128xf32>
    %205 = vector.broadcast %cst_53 : f32 to vector<1x128xf32>
    %206 = arith.select %198, %204, %205 : vector<1x128xi1>, vector<1x128xf32>
    %207 = arith.addf %196, %206 : vector<1x128xf32>
    %c5_i32 = arith.constant 5 : i32
    %208 = vector.broadcast %c5_i32 : i32 to vector<2x256xi32>
    %209 = arith.cmpi eq, %80, %208 : vector<2x256xi32>
    %cst_54 = arith.constant 0.000000e+00 : f32
    %210 = vector.broadcast %cst_54 : f32 to vector<2x256xf32>
    %211 = arith.select %209, %71, %210 : vector<2x256xi1>, vector<2x256xf32>
    %c5_i32_55 = arith.constant 5 : i32
    %212 = vector.broadcast %c5_i32_55 : i32 to vector<1x128xi32>
    %213 = arith.cmpi eq, %81, %212 : vector<1x128xi32>
    %214 = vector.shape_cast %211 : vector<2x256xf32> to vector<1x2x256xf32>
    %cst_56 = arith.constant dense<0.000000e+00> : vector<1xf32>
    %215 = vector.multi_reduction <add>, %214, %cst_56 [1, 2] : vector<1x2x256xf32> to vector<1xf32>
    %216 = vector.shape_cast %215 : vector<1xf32> to vector<1x1x1xf32>
    %217 = vector.extract %216[0, 0, 0] : f32 from vector<1x1x1xf32>
    %cst_57 = arith.constant 0.000000e+00 : f32
    %218 = vector.broadcast %217 : f32 to vector<1x128xf32>
    %219 = vector.broadcast %cst_57 : f32 to vector<1x128xf32>
    %220 = arith.select %213, %218, %219 : vector<1x128xi1>, vector<1x128xf32>
    %221 = arith.addf %207, %220 : vector<1x128xf32>
    %c37_i32 = arith.constant 37 : i32
    %222 = vector.broadcast %c37_i32 : i32 to vector<1x128xi32>
    %223 = arith.cmpi eq, %81, %222 : vector<1x128xi32>
    %224 = arith.mulf %211, %34 : vector<2x256xf32>
    %225 = vector.shape_cast %224 : vector<2x256xf32> to vector<1x2x256xf32>
    %cst_58 = arith.constant dense<0.000000e+00> : vector<1xf32>
    %226 = vector.multi_reduction <add>, %225, %cst_58 [1, 2] : vector<1x2x256xf32> to vector<1xf32>
    %227 = vector.shape_cast %226 : vector<1xf32> to vector<1x1x1xf32>
    %228 = vector.extract %227[0, 0, 0] : f32 from vector<1x1x1xf32>
    %cst_59 = arith.constant 0.000000e+00 : f32
    %229 = vector.broadcast %228 : f32 to vector<1x128xf32>
    %230 = vector.broadcast %cst_59 : f32 to vector<1x128xf32>
    %231 = arith.select %223, %229, %230 : vector<1x128xi1>, vector<1x128xf32>
    %232 = arith.addf %221, %231 : vector<1x128xf32>
    %c6_i32 = arith.constant 6 : i32
    %233 = vector.broadcast %c6_i32 : i32 to vector<2x256xi32>
    %234 = arith.cmpi eq, %80, %233 : vector<2x256xi32>
    %cst_60 = arith.constant 0.000000e+00 : f32
    %235 = vector.broadcast %cst_60 : f32 to vector<2x256xf32>
    %236 = arith.select %234, %71, %235 : vector<2x256xi1>, vector<2x256xf32>
    %c6_i32_61 = arith.constant 6 : i32
    %237 = vector.broadcast %c6_i32_61 : i32 to vector<1x128xi32>
    %238 = arith.cmpi eq, %81, %237 : vector<1x128xi32>
    %239 = vector.shape_cast %236 : vector<2x256xf32> to vector<1x2x256xf32>
    %cst_62 = arith.constant dense<0.000000e+00> : vector<1xf32>
    %240 = vector.multi_reduction <add>, %239, %cst_62 [1, 2] : vector<1x2x256xf32> to vector<1xf32>
    %241 = vector.shape_cast %240 : vector<1xf32> to vector<1x1x1xf32>
    %242 = vector.extract %241[0, 0, 0] : f32 from vector<1x1x1xf32>
    %cst_63 = arith.constant 0.000000e+00 : f32
    %243 = vector.broadcast %242 : f32 to vector<1x128xf32>
    %244 = vector.broadcast %cst_63 : f32 to vector<1x128xf32>
    %245 = arith.select %238, %243, %244 : vector<1x128xi1>, vector<1x128xf32>
    %246 = arith.addf %232, %245 : vector<1x128xf32>
    %c38_i32 = arith.constant 38 : i32
    %247 = vector.broadcast %c38_i32 : i32 to vector<1x128xi32>
    %248 = arith.cmpi eq, %81, %247 : vector<1x128xi32>
    %249 = arith.mulf %236, %34 : vector<2x256xf32>
    %250 = vector.shape_cast %249 : vector<2x256xf32> to vector<1x2x256xf32>
    %cst_64 = arith.constant dense<0.000000e+00> : vector<1xf32>
    %251 = vector.multi_reduction <add>, %250, %cst_64 [1, 2] : vector<1x2x256xf32> to vector<1xf32>
    %252 = vector.shape_cast %251 : vector<1xf32> to vector<1x1x1xf32>
    %253 = vector.extract %252[0, 0, 0] : f32 from vector<1x1x1xf32>
    %cst_65 = arith.constant 0.000000e+00 : f32
    %254 = vector.broadcast %253 : f32 to vector<1x128xf32>
    %255 = vector.broadcast %cst_65 : f32 to vector<1x128xf32>
    %256 = arith.select %248, %254, %255 : vector<1x128xi1>, vector<1x128xf32>
    %257 = arith.addf %246, %256 : vector<1x128xf32>
    %c7_i32 = arith.constant 7 : i32
    %258 = vector.broadcast %c7_i32 : i32 to vector<2x256xi32>
    %259 = arith.cmpi eq, %80, %258 : vector<2x256xi32>
    %cst_66 = arith.constant 0.000000e+00 : f32
    %260 = vector.broadcast %cst_66 : f32 to vector<2x256xf32>
    %261 = arith.select %259, %71, %260 : vector<2x256xi1>, vector<2x256xf32>
    %c7_i32_67 = arith.constant 7 : i32
    %262 = vector.broadcast %c7_i32_67 : i32 to vector<1x128xi32>
    %263 = arith.cmpi eq, %81, %262 : vector<1x128xi32>
    %264 = vector.shape_cast %261 : vector<2x256xf32> to vector<1x2x256xf32>
    %cst_68 = arith.constant dense<0.000000e+00> : vector<1xf32>
    %265 = vector.multi_reduction <add>, %264, %cst_68 [1, 2] : vector<1x2x256xf32> to vector<1xf32>
    %266 = vector.shape_cast %265 : vector<1xf32> to vector<1x1x1xf32>
    %267 = vector.extract %266[0, 0, 0] : f32 from vector<1x1x1xf32>
    %cst_69 = arith.constant 0.000000e+00 : f32
    %268 = vector.broadcast %267 : f32 to vector<1x128xf32>
    %269 = vector.broadcast %cst_69 : f32 to vector<1x128xf32>
    %270 = arith.select %263, %268, %269 : vector<1x128xi1>, vector<1x128xf32>
    %271 = arith.addf %257, %270 : vector<1x128xf32>
    %c39_i32 = arith.constant 39 : i32
    %272 = vector.broadcast %c39_i32 : i32 to vector<1x128xi32>
    %273 = arith.cmpi eq, %81, %272 : vector<1x128xi32>
    %274 = arith.mulf %261, %34 : vector<2x256xf32>
    %275 = vector.shape_cast %274 : vector<2x256xf32> to vector<1x2x256xf32>
    %cst_70 = arith.constant dense<0.000000e+00> : vector<1xf32>
    %276 = vector.multi_reduction <add>, %275, %cst_70 [1, 2] : vector<1x2x256xf32> to vector<1xf32>
    %277 = vector.shape_cast %276 : vector<1xf32> to vector<1x1x1xf32>
    %278 = vector.extract %277[0, 0, 0] : f32 from vector<1x1x1xf32>
    %cst_71 = arith.constant 0.000000e+00 : f32
    %279 = vector.broadcast %278 : f32 to vector<1x128xf32>
    %280 = vector.broadcast %cst_71 : f32 to vector<1x128xf32>
    %281 = arith.select %273, %279, %280 : vector<1x128xi1>, vector<1x128xf32>
    %282 = arith.addf %271, %281 : vector<1x128xf32>
    %c8_i32 = arith.constant 8 : i32
    %283 = vector.broadcast %c8_i32 : i32 to vector<2x256xi32>
    %284 = arith.cmpi eq, %80, %283 : vector<2x256xi32>
    %cst_72 = arith.constant 0.000000e+00 : f32
    %285 = vector.broadcast %cst_72 : f32 to vector<2x256xf32>
    %286 = arith.select %284, %71, %285 : vector<2x256xi1>, vector<2x256xf32>
    %c8_i32_73 = arith.constant 8 : i32
    %287 = vector.broadcast %c8_i32_73 : i32 to vector<1x128xi32>
    %288 = arith.cmpi eq, %81, %287 : vector<1x128xi32>
    %289 = vector.shape_cast %286 : vector<2x256xf32> to vector<1x2x256xf32>
    %cst_74 = arith.constant dense<0.000000e+00> : vector<1xf32>
    %290 = vector.multi_reduction <add>, %289, %cst_74 [1, 2] : vector<1x2x256xf32> to vector<1xf32>
    %291 = vector.shape_cast %290 : vector<1xf32> to vector<1x1x1xf32>
    %292 = vector.extract %291[0, 0, 0] : f32 from vector<1x1x1xf32>
    %cst_75 = arith.constant 0.000000e+00 : f32
    %293 = vector.broadcast %292 : f32 to vector<1x128xf32>
    %294 = vector.broadcast %cst_75 : f32 to vector<1x128xf32>
    %295 = arith.select %288, %293, %294 : vector<1x128xi1>, vector<1x128xf32>
    %296 = arith.addf %282, %295 : vector<1x128xf32>
    %c40_i32 = arith.constant 40 : i32
    %297 = vector.broadcast %c40_i32 : i32 to vector<1x128xi32>
    %298 = arith.cmpi eq, %81, %297 : vector<1x128xi32>
    %299 = arith.mulf %286, %34 : vector<2x256xf32>
    %300 = vector.shape_cast %299 : vector<2x256xf32> to vector<1x2x256xf32>
    %cst_76 = arith.constant dense<0.000000e+00> : vector<1xf32>
    %301 = vector.multi_reduction <add>, %300, %cst_76 [1, 2] : vector<1x2x256xf32> to vector<1xf32>
    %302 = vector.shape_cast %301 : vector<1xf32> to vector<1x1x1xf32>
    %303 = vector.extract %302[0, 0, 0] : f32 from vector<1x1x1xf32>
    %cst_77 = arith.constant 0.000000e+00 : f32
    %304 = vector.broadcast %303 : f32 to vector<1x128xf32>
    %305 = vector.broadcast %cst_77 : f32 to vector<1x128xf32>
    %306 = arith.select %298, %304, %305 : vector<1x128xi1>, vector<1x128xf32>
    %307 = arith.addf %296, %306 : vector<1x128xf32>
    %c9_i32 = arith.constant 9 : i32
    %308 = vector.broadcast %c9_i32 : i32 to vector<2x256xi32>
    %309 = arith.cmpi eq, %80, %308 : vector<2x256xi32>
    %cst_78 = arith.constant 0.000000e+00 : f32
    %310 = vector.broadcast %cst_78 : f32 to vector<2x256xf32>
    %311 = arith.select %309, %71, %310 : vector<2x256xi1>, vector<2x256xf32>
    %c9_i32_79 = arith.constant 9 : i32
    %312 = vector.broadcast %c9_i32_79 : i32 to vector<1x128xi32>
    %313 = arith.cmpi eq, %81, %312 : vector<1x128xi32>
    %314 = vector.shape_cast %311 : vector<2x256xf32> to vector<1x2x256xf32>
    %cst_80 = arith.constant dense<0.000000e+00> : vector<1xf32>
    %315 = vector.multi_reduction <add>, %314, %cst_80 [1, 2] : vector<1x2x256xf32> to vector<1xf32>
    %316 = vector.shape_cast %315 : vector<1xf32> to vector<1x1x1xf32>
    %317 = vector.extract %316[0, 0, 0] : f32 from vector<1x1x1xf32>
    %cst_81 = arith.constant 0.000000e+00 : f32
    %318 = vector.broadcast %317 : f32 to vector<1x128xf32>
    %319 = vector.broadcast %cst_81 : f32 to vector<1x128xf32>
    %320 = arith.select %313, %318, %319 : vector<1x128xi1>, vector<1x128xf32>
    %321 = arith.addf %307, %320 : vector<1x128xf32>
    %c41_i32 = arith.constant 41 : i32
    %322 = vector.broadcast %c41_i32 : i32 to vector<1x128xi32>
    %323 = arith.cmpi eq, %81, %322 : vector<1x128xi32>
    %324 = arith.mulf %311, %34 : vector<2x256xf32>
    %325 = vector.shape_cast %324 : vector<2x256xf32> to vector<1x2x256xf32>
    %cst_82 = arith.constant dense<0.000000e+00> : vector<1xf32>
    %326 = vector.multi_reduction <add>, %325, %cst_82 [1, 2] : vector<1x2x256xf32> to vector<1xf32>
    %327 = vector.shape_cast %326 : vector<1xf32> to vector<1x1x1xf32>
    %328 = vector.extract %327[0, 0, 0] : f32 from vector<1x1x1xf32>
    %cst_83 = arith.constant 0.000000e+00 : f32
    %329 = vector.broadcast %328 : f32 to vector<1x128xf32>
    %330 = vector.broadcast %cst_83 : f32 to vector<1x128xf32>
    %331 = arith.select %323, %329, %330 : vector<1x128xi1>, vector<1x128xf32>
    %332 = arith.addf %321, %331 : vector<1x128xf32>
    %c10_i32 = arith.constant 10 : i32
    %333 = vector.broadcast %c10_i32 : i32 to vector<2x256xi32>
    %334 = arith.cmpi eq, %80, %333 : vector<2x256xi32>
    %cst_84 = arith.constant 0.000000e+00 : f32
    %335 = vector.broadcast %cst_84 : f32 to vector<2x256xf32>
    %336 = arith.select %334, %71, %335 : vector<2x256xi1>, vector<2x256xf32>
    %c10_i32_85 = arith.constant 10 : i32
    %337 = vector.broadcast %c10_i32_85 : i32 to vector<1x128xi32>
    %338 = arith.cmpi eq, %81, %337 : vector<1x128xi32>
    %339 = vector.shape_cast %336 : vector<2x256xf32> to vector<1x2x256xf32>
    %cst_86 = arith.constant dense<0.000000e+00> : vector<1xf32>
    %340 = vector.multi_reduction <add>, %339, %cst_86 [1, 2] : vector<1x2x256xf32> to vector<1xf32>
    %341 = vector.shape_cast %340 : vector<1xf32> to vector<1x1x1xf32>
    %342 = vector.extract %341[0, 0, 0] : f32 from vector<1x1x1xf32>
    %cst_87 = arith.constant 0.000000e+00 : f32
    %343 = vector.broadcast %342 : f32 to vector<1x128xf32>
    %344 = vector.broadcast %cst_87 : f32 to vector<1x128xf32>
    %345 = arith.select %338, %343, %344 : vector<1x128xi1>, vector<1x128xf32>
    %346 = arith.addf %332, %345 : vector<1x128xf32>
    %c42_i32 = arith.constant 42 : i32
    %347 = vector.broadcast %c42_i32 : i32 to vector<1x128xi32>
    %348 = arith.cmpi eq, %81, %347 : vector<1x128xi32>
    %349 = arith.mulf %336, %34 : vector<2x256xf32>
    %350 = vector.shape_cast %349 : vector<2x256xf32> to vector<1x2x256xf32>
    %cst_88 = arith.constant dense<0.000000e+00> : vector<1xf32>
    %351 = vector.multi_reduction <add>, %350, %cst_88 [1, 2] : vector<1x2x256xf32> to vector<1xf32>
    %352 = vector.shape_cast %351 : vector<1xf32> to vector<1x1x1xf32>
    %353 = vector.extract %352[0, 0, 0] : f32 from vector<1x1x1xf32>
    %cst_89 = arith.constant 0.000000e+00 : f32
    %354 = vector.broadcast %353 : f32 to vector<1x128xf32>
    %355 = vector.broadcast %cst_89 : f32 to vector<1x128xf32>
    %356 = arith.select %348, %354, %355 : vector<1x128xi1>, vector<1x128xf32>
    %357 = arith.addf %346, %356 : vector<1x128xf32>
    %c11_i32 = arith.constant 11 : i32
    %358 = vector.broadcast %c11_i32 : i32 to vector<2x256xi32>
    %359 = arith.cmpi eq, %80, %358 : vector<2x256xi32>
    %cst_90 = arith.constant 0.000000e+00 : f32
    %360 = vector.broadcast %cst_90 : f32 to vector<2x256xf32>
    %361 = arith.select %359, %71, %360 : vector<2x256xi1>, vector<2x256xf32>
    %c11_i32_91 = arith.constant 11 : i32
    %362 = vector.broadcast %c11_i32_91 : i32 to vector<1x128xi32>
    %363 = arith.cmpi eq, %81, %362 : vector<1x128xi32>
    %364 = vector.shape_cast %361 : vector<2x256xf32> to vector<1x2x256xf32>
    %cst_92 = arith.constant dense<0.000000e+00> : vector<1xf32>
    %365 = vector.multi_reduction <add>, %364, %cst_92 [1, 2] : vector<1x2x256xf32> to vector<1xf32>
    %366 = vector.shape_cast %365 : vector<1xf32> to vector<1x1x1xf32>
    %367 = vector.extract %366[0, 0, 0] : f32 from vector<1x1x1xf32>
    %cst_93 = arith.constant 0.000000e+00 : f32
    %368 = vector.broadcast %367 : f32 to vector<1x128xf32>
    %369 = vector.broadcast %cst_93 : f32 to vector<1x128xf32>
    %370 = arith.select %363, %368, %369 : vector<1x128xi1>, vector<1x128xf32>
    %371 = arith.addf %357, %370 : vector<1x128xf32>
    %c43_i32 = arith.constant 43 : i32
    %372 = vector.broadcast %c43_i32 : i32 to vector<1x128xi32>
    %373 = arith.cmpi eq, %81, %372 : vector<1x128xi32>
    %374 = arith.mulf %361, %34 : vector<2x256xf32>
    %375 = vector.shape_cast %374 : vector<2x256xf32> to vector<1x2x256xf32>
    %cst_94 = arith.constant dense<0.000000e+00> : vector<1xf32>
    %376 = vector.multi_reduction <add>, %375, %cst_94 [1, 2] : vector<1x2x256xf32> to vector<1xf32>
    %377 = vector.shape_cast %376 : vector<1xf32> to vector<1x1x1xf32>
    %378 = vector.extract %377[0, 0, 0] : f32 from vector<1x1x1xf32>
    %cst_95 = arith.constant 0.000000e+00 : f32
    %379 = vector.broadcast %378 : f32 to vector<1x128xf32>
    %380 = vector.broadcast %cst_95 : f32 to vector<1x128xf32>
    %381 = arith.select %373, %379, %380 : vector<1x128xi1>, vector<1x128xf32>
    %382 = arith.addf %371, %381 : vector<1x128xf32>
    %c12_i32 = arith.constant 12 : i32
    %383 = vector.broadcast %c12_i32 : i32 to vector<2x256xi32>
    %384 = arith.cmpi eq, %80, %383 : vector<2x256xi32>
    %cst_96 = arith.constant 0.000000e+00 : f32
    %385 = vector.broadcast %cst_96 : f32 to vector<2x256xf32>
    %386 = arith.select %384, %71, %385 : vector<2x256xi1>, vector<2x256xf32>
    %c12_i32_97 = arith.constant 12 : i32
    %387 = vector.broadcast %c12_i32_97 : i32 to vector<1x128xi32>
    %388 = arith.cmpi eq, %81, %387 : vector<1x128xi32>
    %389 = vector.shape_cast %386 : vector<2x256xf32> to vector<1x2x256xf32>
    %cst_98 = arith.constant dense<0.000000e+00> : vector<1xf32>
    %390 = vector.multi_reduction <add>, %389, %cst_98 [1, 2] : vector<1x2x256xf32> to vector<1xf32>
    %391 = vector.shape_cast %390 : vector<1xf32> to vector<1x1x1xf32>
    %392 = vector.extract %391[0, 0, 0] : f32 from vector<1x1x1xf32>
    %cst_99 = arith.constant 0.000000e+00 : f32
    %393 = vector.broadcast %392 : f32 to vector<1x128xf32>
    %394 = vector.broadcast %cst_99 : f32 to vector<1x128xf32>
    %395 = arith.select %388, %393, %394 : vector<1x128xi1>, vector<1x128xf32>
    %396 = arith.addf %382, %395 : vector<1x128xf32>
    %c44_i32 = arith.constant 44 : i32
    %397 = vector.broadcast %c44_i32 : i32 to vector<1x128xi32>
    %398 = arith.cmpi eq, %81, %397 : vector<1x128xi32>
    %399 = arith.mulf %386, %34 : vector<2x256xf32>
    %400 = vector.shape_cast %399 : vector<2x256xf32> to vector<1x2x256xf32>
    %cst_100 = arith.constant dense<0.000000e+00> : vector<1xf32>
    %401 = vector.multi_reduction <add>, %400, %cst_100 [1, 2] : vector<1x2x256xf32> to vector<1xf32>
    %402 = vector.shape_cast %401 : vector<1xf32> to vector<1x1x1xf32>
    %403 = vector.extract %402[0, 0, 0] : f32 from vector<1x1x1xf32>
    %cst_101 = arith.constant 0.000000e+00 : f32
    %404 = vector.broadcast %403 : f32 to vector<1x128xf32>
    %405 = vector.broadcast %cst_101 : f32 to vector<1x128xf32>
    %406 = arith.select %398, %404, %405 : vector<1x128xi1>, vector<1x128xf32>
    %407 = arith.addf %396, %406 : vector<1x128xf32>
    %c13_i32 = arith.constant 13 : i32
    %408 = vector.broadcast %c13_i32 : i32 to vector<2x256xi32>
    %409 = arith.cmpi eq, %80, %408 : vector<2x256xi32>
    %cst_102 = arith.constant 0.000000e+00 : f32
    %410 = vector.broadcast %cst_102 : f32 to vector<2x256xf32>
    %411 = arith.select %409, %71, %410 : vector<2x256xi1>, vector<2x256xf32>
    %c13_i32_103 = arith.constant 13 : i32
    %412 = vector.broadcast %c13_i32_103 : i32 to vector<1x128xi32>
    %413 = arith.cmpi eq, %81, %412 : vector<1x128xi32>
    %414 = vector.shape_cast %411 : vector<2x256xf32> to vector<1x2x256xf32>
    %cst_104 = arith.constant dense<0.000000e+00> : vector<1xf32>
    %415 = vector.multi_reduction <add>, %414, %cst_104 [1, 2] : vector<1x2x256xf32> to vector<1xf32>
    %416 = vector.shape_cast %415 : vector<1xf32> to vector<1x1x1xf32>
    %417 = vector.extract %416[0, 0, 0] : f32 from vector<1x1x1xf32>
    %cst_105 = arith.constant 0.000000e+00 : f32
    %418 = vector.broadcast %417 : f32 to vector<1x128xf32>
    %419 = vector.broadcast %cst_105 : f32 to vector<1x128xf32>
    %420 = arith.select %413, %418, %419 : vector<1x128xi1>, vector<1x128xf32>
    %421 = arith.addf %407, %420 : vector<1x128xf32>
    %c45_i32 = arith.constant 45 : i32
    %422 = vector.broadcast %c45_i32 : i32 to vector<1x128xi32>
    %423 = arith.cmpi eq, %81, %422 : vector<1x128xi32>
    %424 = arith.mulf %411, %34 : vector<2x256xf32>
    %425 = vector.shape_cast %424 : vector<2x256xf32> to vector<1x2x256xf32>
    %cst_106 = arith.constant dense<0.000000e+00> : vector<1xf32>
    %426 = vector.multi_reduction <add>, %425, %cst_106 [1, 2] : vector<1x2x256xf32> to vector<1xf32>
    %427 = vector.shape_cast %426 : vector<1xf32> to vector<1x1x1xf32>
    %428 = vector.extract %427[0, 0, 0] : f32 from vector<1x1x1xf32>
    %cst_107 = arith.constant 0.000000e+00 : f32
    %429 = vector.broadcast %428 : f32 to vector<1x128xf32>
    %430 = vector.broadcast %cst_107 : f32 to vector<1x128xf32>
    %431 = arith.select %423, %429, %430 : vector<1x128xi1>, vector<1x128xf32>
    %432 = arith.addf %421, %431 : vector<1x128xf32>
    %c14_i32 = arith.constant 14 : i32
    %433 = vector.broadcast %c14_i32 : i32 to vector<2x256xi32>
    %434 = arith.cmpi eq, %80, %433 : vector<2x256xi32>
    %cst_108 = arith.constant 0.000000e+00 : f32
    %435 = vector.broadcast %cst_108 : f32 to vector<2x256xf32>
    %436 = arith.select %434, %71, %435 : vector<2x256xi1>, vector<2x256xf32>
    %c14_i32_109 = arith.constant 14 : i32
    %437 = vector.broadcast %c14_i32_109 : i32 to vector<1x128xi32>
    %438 = arith.cmpi eq, %81, %437 : vector<1x128xi32>
    %439 = vector.shape_cast %436 : vector<2x256xf32> to vector<1x2x256xf32>
    %cst_110 = arith.constant dense<0.000000e+00> : vector<1xf32>
    %440 = vector.multi_reduction <add>, %439, %cst_110 [1, 2] : vector<1x2x256xf32> to vector<1xf32>
    %441 = vector.shape_cast %440 : vector<1xf32> to vector<1x1x1xf32>
    %442 = vector.extract %441[0, 0, 0] : f32 from vector<1x1x1xf32>
    %cst_111 = arith.constant 0.000000e+00 : f32
    %443 = vector.broadcast %442 : f32 to vector<1x128xf32>
    %444 = vector.broadcast %cst_111 : f32 to vector<1x128xf32>
    %445 = arith.select %438, %443, %444 : vector<1x128xi1>, vector<1x128xf32>
    %446 = arith.addf %432, %445 : vector<1x128xf32>
    %c46_i32 = arith.constant 46 : i32
    %447 = vector.broadcast %c46_i32 : i32 to vector<1x128xi32>
    %448 = arith.cmpi eq, %81, %447 : vector<1x128xi32>
    %449 = arith.mulf %436, %34 : vector<2x256xf32>
    %450 = vector.shape_cast %449 : vector<2x256xf32> to vector<1x2x256xf32>
    %cst_112 = arith.constant dense<0.000000e+00> : vector<1xf32>
    %451 = vector.multi_reduction <add>, %450, %cst_112 [1, 2] : vector<1x2x256xf32> to vector<1xf32>
    %452 = vector.shape_cast %451 : vector<1xf32> to vector<1x1x1xf32>
    %453 = vector.extract %452[0, 0, 0] : f32 from vector<1x1x1xf32>
    %cst_113 = arith.constant 0.000000e+00 : f32
    %454 = vector.broadcast %453 : f32 to vector<1x128xf32>
    %455 = vector.broadcast %cst_113 : f32 to vector<1x128xf32>
    %456 = arith.select %448, %454, %455 : vector<1x128xi1>, vector<1x128xf32>
    %457 = arith.addf %446, %456 : vector<1x128xf32>
    %c15_i32 = arith.constant 15 : i32
    %458 = vector.broadcast %c15_i32 : i32 to vector<2x256xi32>
    %459 = arith.cmpi eq, %80, %458 : vector<2x256xi32>
    %cst_114 = arith.constant 0.000000e+00 : f32
    %460 = vector.broadcast %cst_114 : f32 to vector<2x256xf32>
    %461 = arith.select %459, %71, %460 : vector<2x256xi1>, vector<2x256xf32>
    %c15_i32_115 = arith.constant 15 : i32
    %462 = vector.broadcast %c15_i32_115 : i32 to vector<1x128xi32>
    %463 = arith.cmpi eq, %81, %462 : vector<1x128xi32>
    %464 = vector.shape_cast %461 : vector<2x256xf32> to vector<1x2x256xf32>
    %cst_116 = arith.constant dense<0.000000e+00> : vector<1xf32>
    %465 = vector.multi_reduction <add>, %464, %cst_116 [1, 2] : vector<1x2x256xf32> to vector<1xf32>
    %466 = vector.shape_cast %465 : vector<1xf32> to vector<1x1x1xf32>
    %467 = vector.extract %466[0, 0, 0] : f32 from vector<1x1x1xf32>
    %cst_117 = arith.constant 0.000000e+00 : f32
    %468 = vector.broadcast %467 : f32 to vector<1x128xf32>
    %469 = vector.broadcast %cst_117 : f32 to vector<1x128xf32>
    %470 = arith.select %463, %468, %469 : vector<1x128xi1>, vector<1x128xf32>
    %471 = arith.addf %457, %470 : vector<1x128xf32>
    %c47_i32 = arith.constant 47 : i32
    %472 = vector.broadcast %c47_i32 : i32 to vector<1x128xi32>
    %473 = arith.cmpi eq, %81, %472 : vector<1x128xi32>
    %474 = arith.mulf %461, %34 : vector<2x256xf32>
    %475 = vector.shape_cast %474 : vector<2x256xf32> to vector<1x2x256xf32>
    %cst_118 = arith.constant dense<0.000000e+00> : vector<1xf32>
    %476 = vector.multi_reduction <add>, %475, %cst_118 [1, 2] : vector<1x2x256xf32> to vector<1xf32>
    %477 = vector.shape_cast %476 : vector<1xf32> to vector<1x1x1xf32>
    %478 = vector.extract %477[0, 0, 0] : f32 from vector<1x1x1xf32>
    %cst_119 = arith.constant 0.000000e+00 : f32
    %479 = vector.broadcast %478 : f32 to vector<1x128xf32>
    %480 = vector.broadcast %cst_119 : f32 to vector<1x128xf32>
    %481 = arith.select %473, %479, %480 : vector<1x128xi1>, vector<1x128xf32>
    %482 = arith.addf %471, %481 : vector<1x128xf32>
    %c16_i32 = arith.constant 16 : i32
    %483 = vector.broadcast %c16_i32 : i32 to vector<2x256xi32>
    %484 = arith.cmpi eq, %80, %483 : vector<2x256xi32>
    %cst_120 = arith.constant 0.000000e+00 : f32
    %485 = vector.broadcast %cst_120 : f32 to vector<2x256xf32>
    %486 = arith.select %484, %71, %485 : vector<2x256xi1>, vector<2x256xf32>
    %c16_i32_121 = arith.constant 16 : i32
    %487 = vector.broadcast %c16_i32_121 : i32 to vector<1x128xi32>
    %488 = arith.cmpi eq, %81, %487 : vector<1x128xi32>
    %489 = vector.shape_cast %486 : vector<2x256xf32> to vector<1x2x256xf32>
    %cst_122 = arith.constant dense<0.000000e+00> : vector<1xf32>
    %490 = vector.multi_reduction <add>, %489, %cst_122 [1, 2] : vector<1x2x256xf32> to vector<1xf32>
    %491 = vector.shape_cast %490 : vector<1xf32> to vector<1x1x1xf32>
    %492 = vector.extract %491[0, 0, 0] : f32 from vector<1x1x1xf32>
    %cst_123 = arith.constant 0.000000e+00 : f32
    %493 = vector.broadcast %492 : f32 to vector<1x128xf32>
    %494 = vector.broadcast %cst_123 : f32 to vector<1x128xf32>
    %495 = arith.select %488, %493, %494 : vector<1x128xi1>, vector<1x128xf32>
    %496 = arith.addf %482, %495 : vector<1x128xf32>
    %c48_i32 = arith.constant 48 : i32
    %497 = vector.broadcast %c48_i32 : i32 to vector<1x128xi32>
    %498 = arith.cmpi eq, %81, %497 : vector<1x128xi32>
    %499 = arith.mulf %486, %34 : vector<2x256xf32>
    %500 = vector.shape_cast %499 : vector<2x256xf32> to vector<1x2x256xf32>
    %cst_124 = arith.constant dense<0.000000e+00> : vector<1xf32>
    %501 = vector.multi_reduction <add>, %500, %cst_124 [1, 2] : vector<1x2x256xf32> to vector<1xf32>
    %502 = vector.shape_cast %501 : vector<1xf32> to vector<1x1x1xf32>
    %503 = vector.extract %502[0, 0, 0] : f32 from vector<1x1x1xf32>
    %cst_125 = arith.constant 0.000000e+00 : f32
    %504 = vector.broadcast %503 : f32 to vector<1x128xf32>
    %505 = vector.broadcast %cst_125 : f32 to vector<1x128xf32>
    %506 = arith.select %498, %504, %505 : vector<1x128xi1>, vector<1x128xf32>
    %507 = arith.addf %496, %506 : vector<1x128xf32>
    %c17_i32 = arith.constant 17 : i32
    %508 = vector.broadcast %c17_i32 : i32 to vector<2x256xi32>
    %509 = arith.cmpi eq, %80, %508 : vector<2x256xi32>
    %cst_126 = arith.constant 0.000000e+00 : f32
    %510 = vector.broadcast %cst_126 : f32 to vector<2x256xf32>
    %511 = arith.select %509, %71, %510 : vector<2x256xi1>, vector<2x256xf32>
    %c17_i32_127 = arith.constant 17 : i32
    %512 = vector.broadcast %c17_i32_127 : i32 to vector<1x128xi32>
    %513 = arith.cmpi eq, %81, %512 : vector<1x128xi32>
    %514 = vector.shape_cast %511 : vector<2x256xf32> to vector<1x2x256xf32>
    %cst_128 = arith.constant dense<0.000000e+00> : vector<1xf32>
    %515 = vector.multi_reduction <add>, %514, %cst_128 [1, 2] : vector<1x2x256xf32> to vector<1xf32>
    %516 = vector.shape_cast %515 : vector<1xf32> to vector<1x1x1xf32>
    %517 = vector.extract %516[0, 0, 0] : f32 from vector<1x1x1xf32>
    %cst_129 = arith.constant 0.000000e+00 : f32
    %518 = vector.broadcast %517 : f32 to vector<1x128xf32>
    %519 = vector.broadcast %cst_129 : f32 to vector<1x128xf32>
    %520 = arith.select %513, %518, %519 : vector<1x128xi1>, vector<1x128xf32>
    %521 = arith.addf %507, %520 : vector<1x128xf32>
    %c49_i32 = arith.constant 49 : i32
    %522 = vector.broadcast %c49_i32 : i32 to vector<1x128xi32>
    %523 = arith.cmpi eq, %81, %522 : vector<1x128xi32>
    %524 = arith.mulf %511, %34 : vector<2x256xf32>
    %525 = vector.shape_cast %524 : vector<2x256xf32> to vector<1x2x256xf32>
    %cst_130 = arith.constant dense<0.000000e+00> : vector<1xf32>
    %526 = vector.multi_reduction <add>, %525, %cst_130 [1, 2] : vector<1x2x256xf32> to vector<1xf32>
    %527 = vector.shape_cast %526 : vector<1xf32> to vector<1x1x1xf32>
    %528 = vector.extract %527[0, 0, 0] : f32 from vector<1x1x1xf32>
    %cst_131 = arith.constant 0.000000e+00 : f32
    %529 = vector.broadcast %528 : f32 to vector<1x128xf32>
    %530 = vector.broadcast %cst_131 : f32 to vector<1x128xf32>
    %531 = arith.select %523, %529, %530 : vector<1x128xi1>, vector<1x128xf32>
    %532 = arith.addf %521, %531 : vector<1x128xf32>
    %c18_i32 = arith.constant 18 : i32
    %533 = vector.broadcast %c18_i32 : i32 to vector<2x256xi32>
    %534 = arith.cmpi eq, %80, %533 : vector<2x256xi32>
    %cst_132 = arith.constant 0.000000e+00 : f32
    %535 = vector.broadcast %cst_132 : f32 to vector<2x256xf32>
    %536 = arith.select %534, %71, %535 : vector<2x256xi1>, vector<2x256xf32>
    %c18_i32_133 = arith.constant 18 : i32
    %537 = vector.broadcast %c18_i32_133 : i32 to vector<1x128xi32>
    %538 = arith.cmpi eq, %81, %537 : vector<1x128xi32>
    %539 = vector.shape_cast %536 : vector<2x256xf32> to vector<1x2x256xf32>
    %cst_134 = arith.constant dense<0.000000e+00> : vector<1xf32>
    %540 = vector.multi_reduction <add>, %539, %cst_134 [1, 2] : vector<1x2x256xf32> to vector<1xf32>
    %541 = vector.shape_cast %540 : vector<1xf32> to vector<1x1x1xf32>
    %542 = vector.extract %541[0, 0, 0] : f32 from vector<1x1x1xf32>
    %cst_135 = arith.constant 0.000000e+00 : f32
    %543 = vector.broadcast %542 : f32 to vector<1x128xf32>
    %544 = vector.broadcast %cst_135 : f32 to vector<1x128xf32>
    %545 = arith.select %538, %543, %544 : vector<1x128xi1>, vector<1x128xf32>
    %546 = arith.addf %532, %545 : vector<1x128xf32>
    %c50_i32 = arith.constant 50 : i32
    %547 = vector.broadcast %c50_i32 : i32 to vector<1x128xi32>
    %548 = arith.cmpi eq, %81, %547 : vector<1x128xi32>
    %549 = arith.mulf %536, %34 : vector<2x256xf32>
    %550 = vector.shape_cast %549 : vector<2x256xf32> to vector<1x2x256xf32>
    %cst_136 = arith.constant dense<0.000000e+00> : vector<1xf32>
    %551 = vector.multi_reduction <add>, %550, %cst_136 [1, 2] : vector<1x2x256xf32> to vector<1xf32>
    %552 = vector.shape_cast %551 : vector<1xf32> to vector<1x1x1xf32>
    %553 = vector.extract %552[0, 0, 0] : f32 from vector<1x1x1xf32>
    %cst_137 = arith.constant 0.000000e+00 : f32
    %554 = vector.broadcast %553 : f32 to vector<1x128xf32>
    %555 = vector.broadcast %cst_137 : f32 to vector<1x128xf32>
    %556 = arith.select %548, %554, %555 : vector<1x128xi1>, vector<1x128xf32>
    %557 = arith.addf %546, %556 : vector<1x128xf32>
    %c19_i32 = arith.constant 19 : i32
    %558 = vector.broadcast %c19_i32 : i32 to vector<2x256xi32>
    %559 = arith.cmpi eq, %80, %558 : vector<2x256xi32>
    %cst_138 = arith.constant 0.000000e+00 : f32
    %560 = vector.broadcast %cst_138 : f32 to vector<2x256xf32>
    %561 = arith.select %559, %71, %560 : vector<2x256xi1>, vector<2x256xf32>
    %c19_i32_139 = arith.constant 19 : i32
    %562 = vector.broadcast %c19_i32_139 : i32 to vector<1x128xi32>
    %563 = arith.cmpi eq, %81, %562 : vector<1x128xi32>
    %564 = vector.shape_cast %561 : vector<2x256xf32> to vector<1x2x256xf32>
    %cst_140 = arith.constant dense<0.000000e+00> : vector<1xf32>
    %565 = vector.multi_reduction <add>, %564, %cst_140 [1, 2] : vector<1x2x256xf32> to vector<1xf32>
    %566 = vector.shape_cast %565 : vector<1xf32> to vector<1x1x1xf32>
    %567 = vector.extract %566[0, 0, 0] : f32 from vector<1x1x1xf32>
    %cst_141 = arith.constant 0.000000e+00 : f32
    %568 = vector.broadcast %567 : f32 to vector<1x128xf32>
    %569 = vector.broadcast %cst_141 : f32 to vector<1x128xf32>
    %570 = arith.select %563, %568, %569 : vector<1x128xi1>, vector<1x128xf32>
    %571 = arith.addf %557, %570 : vector<1x128xf32>
    %c51_i32 = arith.constant 51 : i32
    %572 = vector.broadcast %c51_i32 : i32 to vector<1x128xi32>
    %573 = arith.cmpi eq, %81, %572 : vector<1x128xi32>
    %574 = arith.mulf %561, %34 : vector<2x256xf32>
    %575 = vector.shape_cast %574 : vector<2x256xf32> to vector<1x2x256xf32>
    %cst_142 = arith.constant dense<0.000000e+00> : vector<1xf32>
    %576 = vector.multi_reduction <add>, %575, %cst_142 [1, 2] : vector<1x2x256xf32> to vector<1xf32>
    %577 = vector.shape_cast %576 : vector<1xf32> to vector<1x1x1xf32>
    %578 = vector.extract %577[0, 0, 0] : f32 from vector<1x1x1xf32>
    %cst_143 = arith.constant 0.000000e+00 : f32
    %579 = vector.broadcast %578 : f32 to vector<1x128xf32>
    %580 = vector.broadcast %cst_143 : f32 to vector<1x128xf32>
    %581 = arith.select %573, %579, %580 : vector<1x128xi1>, vector<1x128xf32>
    %582 = arith.addf %571, %581 : vector<1x128xf32>
    %c20_i32 = arith.constant 20 : i32
    %583 = vector.broadcast %c20_i32 : i32 to vector<2x256xi32>
    %584 = arith.cmpi eq, %80, %583 : vector<2x256xi32>
    %cst_144 = arith.constant 0.000000e+00 : f32
    %585 = vector.broadcast %cst_144 : f32 to vector<2x256xf32>
    %586 = arith.select %584, %71, %585 : vector<2x256xi1>, vector<2x256xf32>
    %c20_i32_145 = arith.constant 20 : i32
    %587 = vector.broadcast %c20_i32_145 : i32 to vector<1x128xi32>
    %588 = arith.cmpi eq, %81, %587 : vector<1x128xi32>
    %589 = vector.shape_cast %586 : vector<2x256xf32> to vector<1x2x256xf32>
    %cst_146 = arith.constant dense<0.000000e+00> : vector<1xf32>
    %590 = vector.multi_reduction <add>, %589, %cst_146 [1, 2] : vector<1x2x256xf32> to vector<1xf32>
    %591 = vector.shape_cast %590 : vector<1xf32> to vector<1x1x1xf32>
    %592 = vector.extract %591[0, 0, 0] : f32 from vector<1x1x1xf32>
    %cst_147 = arith.constant 0.000000e+00 : f32
    %593 = vector.broadcast %592 : f32 to vector<1x128xf32>
    %594 = vector.broadcast %cst_147 : f32 to vector<1x128xf32>
    %595 = arith.select %588, %593, %594 : vector<1x128xi1>, vector<1x128xf32>
    %596 = arith.addf %582, %595 : vector<1x128xf32>
    %c52_i32 = arith.constant 52 : i32
    %597 = vector.broadcast %c52_i32 : i32 to vector<1x128xi32>
    %598 = arith.cmpi eq, %81, %597 : vector<1x128xi32>
    %599 = arith.mulf %586, %34 : vector<2x256xf32>
    %600 = vector.shape_cast %599 : vector<2x256xf32> to vector<1x2x256xf32>
    %cst_148 = arith.constant dense<0.000000e+00> : vector<1xf32>
    %601 = vector.multi_reduction <add>, %600, %cst_148 [1, 2] : vector<1x2x256xf32> to vector<1xf32>
    %602 = vector.shape_cast %601 : vector<1xf32> to vector<1x1x1xf32>
    %603 = vector.extract %602[0, 0, 0] : f32 from vector<1x1x1xf32>
    %cst_149 = arith.constant 0.000000e+00 : f32
    %604 = vector.broadcast %603 : f32 to vector<1x128xf32>
    %605 = vector.broadcast %cst_149 : f32 to vector<1x128xf32>
    %606 = arith.select %598, %604, %605 : vector<1x128xi1>, vector<1x128xf32>
    %607 = arith.addf %596, %606 : vector<1x128xf32>
    %c21_i32 = arith.constant 21 : i32
    %608 = vector.broadcast %c21_i32 : i32 to vector<2x256xi32>
    %609 = arith.cmpi eq, %80, %608 : vector<2x256xi32>
    %cst_150 = arith.constant 0.000000e+00 : f32
    %610 = vector.broadcast %cst_150 : f32 to vector<2x256xf32>
    %611 = arith.select %609, %71, %610 : vector<2x256xi1>, vector<2x256xf32>
    %c21_i32_151 = arith.constant 21 : i32
    %612 = vector.broadcast %c21_i32_151 : i32 to vector<1x128xi32>
    %613 = arith.cmpi eq, %81, %612 : vector<1x128xi32>
    %614 = vector.shape_cast %611 : vector<2x256xf32> to vector<1x2x256xf32>
    %cst_152 = arith.constant dense<0.000000e+00> : vector<1xf32>
    %615 = vector.multi_reduction <add>, %614, %cst_152 [1, 2] : vector<1x2x256xf32> to vector<1xf32>
    %616 = vector.shape_cast %615 : vector<1xf32> to vector<1x1x1xf32>
    %617 = vector.extract %616[0, 0, 0] : f32 from vector<1x1x1xf32>
    %cst_153 = arith.constant 0.000000e+00 : f32
    %618 = vector.broadcast %617 : f32 to vector<1x128xf32>
    %619 = vector.broadcast %cst_153 : f32 to vector<1x128xf32>
    %620 = arith.select %613, %618, %619 : vector<1x128xi1>, vector<1x128xf32>
    %621 = arith.addf %607, %620 : vector<1x128xf32>
    %c53_i32 = arith.constant 53 : i32
    %622 = vector.broadcast %c53_i32 : i32 to vector<1x128xi32>
    %623 = arith.cmpi eq, %81, %622 : vector<1x128xi32>
    %624 = arith.mulf %611, %34 : vector<2x256xf32>
    %625 = vector.shape_cast %624 : vector<2x256xf32> to vector<1x2x256xf32>
    %cst_154 = arith.constant dense<0.000000e+00> : vector<1xf32>
    %626 = vector.multi_reduction <add>, %625, %cst_154 [1, 2] : vector<1x2x256xf32> to vector<1xf32>
    %627 = vector.shape_cast %626 : vector<1xf32> to vector<1x1x1xf32>
    %628 = vector.extract %627[0, 0, 0] : f32 from vector<1x1x1xf32>
    %cst_155 = arith.constant 0.000000e+00 : f32
    %629 = vector.broadcast %628 : f32 to vector<1x128xf32>
    %630 = vector.broadcast %cst_155 : f32 to vector<1x128xf32>
    %631 = arith.select %623, %629, %630 : vector<1x128xi1>, vector<1x128xf32>
    %632 = arith.addf %621, %631 : vector<1x128xf32>
    %c22_i32 = arith.constant 22 : i32
    %633 = vector.broadcast %c22_i32 : i32 to vector<2x256xi32>
    %634 = arith.cmpi eq, %80, %633 : vector<2x256xi32>
    %cst_156 = arith.constant 0.000000e+00 : f32
    %635 = vector.broadcast %cst_156 : f32 to vector<2x256xf32>
    %636 = arith.select %634, %71, %635 : vector<2x256xi1>, vector<2x256xf32>
    %c22_i32_157 = arith.constant 22 : i32
    %637 = vector.broadcast %c22_i32_157 : i32 to vector<1x128xi32>
    %638 = arith.cmpi eq, %81, %637 : vector<1x128xi32>
    %639 = vector.shape_cast %636 : vector<2x256xf32> to vector<1x2x256xf32>
    %cst_158 = arith.constant dense<0.000000e+00> : vector<1xf32>
    %640 = vector.multi_reduction <add>, %639, %cst_158 [1, 2] : vector<1x2x256xf32> to vector<1xf32>
    %641 = vector.shape_cast %640 : vector<1xf32> to vector<1x1x1xf32>
    %642 = vector.extract %641[0, 0, 0] : f32 from vector<1x1x1xf32>
    %cst_159 = arith.constant 0.000000e+00 : f32
    %643 = vector.broadcast %642 : f32 to vector<1x128xf32>
    %644 = vector.broadcast %cst_159 : f32 to vector<1x128xf32>
    %645 = arith.select %638, %643, %644 : vector<1x128xi1>, vector<1x128xf32>
    %646 = arith.addf %632, %645 : vector<1x128xf32>
    %c54_i32 = arith.constant 54 : i32
    %647 = vector.broadcast %c54_i32 : i32 to vector<1x128xi32>
    %648 = arith.cmpi eq, %81, %647 : vector<1x128xi32>
    %649 = arith.mulf %636, %34 : vector<2x256xf32>
    %650 = vector.shape_cast %649 : vector<2x256xf32> to vector<1x2x256xf32>
    %cst_160 = arith.constant dense<0.000000e+00> : vector<1xf32>
    %651 = vector.multi_reduction <add>, %650, %cst_160 [1, 2] : vector<1x2x256xf32> to vector<1xf32>
    %652 = vector.shape_cast %651 : vector<1xf32> to vector<1x1x1xf32>
    %653 = vector.extract %652[0, 0, 0] : f32 from vector<1x1x1xf32>
    %cst_161 = arith.constant 0.000000e+00 : f32
    %654 = vector.broadcast %653 : f32 to vector<1x128xf32>
    %655 = vector.broadcast %cst_161 : f32 to vector<1x128xf32>
    %656 = arith.select %648, %654, %655 : vector<1x128xi1>, vector<1x128xf32>
    %657 = arith.addf %646, %656 : vector<1x128xf32>
    %c23_i32 = arith.constant 23 : i32
    %658 = vector.broadcast %c23_i32 : i32 to vector<2x256xi32>
    %659 = arith.cmpi eq, %80, %658 : vector<2x256xi32>
    %cst_162 = arith.constant 0.000000e+00 : f32
    %660 = vector.broadcast %cst_162 : f32 to vector<2x256xf32>
    %661 = arith.select %659, %71, %660 : vector<2x256xi1>, vector<2x256xf32>
    %c23_i32_163 = arith.constant 23 : i32
    %662 = vector.broadcast %c23_i32_163 : i32 to vector<1x128xi32>
    %663 = arith.cmpi eq, %81, %662 : vector<1x128xi32>
    %664 = vector.shape_cast %661 : vector<2x256xf32> to vector<1x2x256xf32>
    %cst_164 = arith.constant dense<0.000000e+00> : vector<1xf32>
    %665 = vector.multi_reduction <add>, %664, %cst_164 [1, 2] : vector<1x2x256xf32> to vector<1xf32>
    %666 = vector.shape_cast %665 : vector<1xf32> to vector<1x1x1xf32>
    %667 = vector.extract %666[0, 0, 0] : f32 from vector<1x1x1xf32>
    %cst_165 = arith.constant 0.000000e+00 : f32
    %668 = vector.broadcast %667 : f32 to vector<1x128xf32>
    %669 = vector.broadcast %cst_165 : f32 to vector<1x128xf32>
    %670 = arith.select %663, %668, %669 : vector<1x128xi1>, vector<1x128xf32>
    %671 = arith.addf %657, %670 : vector<1x128xf32>
    %c55_i32 = arith.constant 55 : i32
    %672 = vector.broadcast %c55_i32 : i32 to vector<1x128xi32>
    %673 = arith.cmpi eq, %81, %672 : vector<1x128xi32>
    %674 = arith.mulf %661, %34 : vector<2x256xf32>
    %675 = vector.shape_cast %674 : vector<2x256xf32> to vector<1x2x256xf32>
    %cst_166 = arith.constant dense<0.000000e+00> : vector<1xf32>
    %676 = vector.multi_reduction <add>, %675, %cst_166 [1, 2] : vector<1x2x256xf32> to vector<1xf32>
    %677 = vector.shape_cast %676 : vector<1xf32> to vector<1x1x1xf32>
    %678 = vector.extract %677[0, 0, 0] : f32 from vector<1x1x1xf32>
    %cst_167 = arith.constant 0.000000e+00 : f32
    %679 = vector.broadcast %678 : f32 to vector<1x128xf32>
    %680 = vector.broadcast %cst_167 : f32 to vector<1x128xf32>
    %681 = arith.select %673, %679, %680 : vector<1x128xi1>, vector<1x128xf32>
    %682 = arith.addf %671, %681 : vector<1x128xf32>
    %c24_i32 = arith.constant 24 : i32
    %683 = vector.broadcast %c24_i32 : i32 to vector<2x256xi32>
    %684 = arith.cmpi eq, %80, %683 : vector<2x256xi32>
    %cst_168 = arith.constant 0.000000e+00 : f32
    %685 = vector.broadcast %cst_168 : f32 to vector<2x256xf32>
    %686 = arith.select %684, %71, %685 : vector<2x256xi1>, vector<2x256xf32>
    %c24_i32_169 = arith.constant 24 : i32
    %687 = vector.broadcast %c24_i32_169 : i32 to vector<1x128xi32>
    %688 = arith.cmpi eq, %81, %687 : vector<1x128xi32>
    %689 = vector.shape_cast %686 : vector<2x256xf32> to vector<1x2x256xf32>
    %cst_170 = arith.constant dense<0.000000e+00> : vector<1xf32>
    %690 = vector.multi_reduction <add>, %689, %cst_170 [1, 2] : vector<1x2x256xf32> to vector<1xf32>
    %691 = vector.shape_cast %690 : vector<1xf32> to vector<1x1x1xf32>
    %692 = vector.extract %691[0, 0, 0] : f32 from vector<1x1x1xf32>
    %cst_171 = arith.constant 0.000000e+00 : f32
    %693 = vector.broadcast %692 : f32 to vector<1x128xf32>
    %694 = vector.broadcast %cst_171 : f32 to vector<1x128xf32>
    %695 = arith.select %688, %693, %694 : vector<1x128xi1>, vector<1x128xf32>
    %696 = arith.addf %682, %695 : vector<1x128xf32>
    %c56_i32 = arith.constant 56 : i32
    %697 = vector.broadcast %c56_i32 : i32 to vector<1x128xi32>
    %698 = arith.cmpi eq, %81, %697 : vector<1x128xi32>
    %699 = arith.mulf %686, %34 : vector<2x256xf32>
    %700 = vector.shape_cast %699 : vector<2x256xf32> to vector<1x2x256xf32>
    %cst_172 = arith.constant dense<0.000000e+00> : vector<1xf32>
    %701 = vector.multi_reduction <add>, %700, %cst_172 [1, 2] : vector<1x2x256xf32> to vector<1xf32>
    %702 = vector.shape_cast %701 : vector<1xf32> to vector<1x1x1xf32>
    %703 = vector.extract %702[0, 0, 0] : f32 from vector<1x1x1xf32>
    %cst_173 = arith.constant 0.000000e+00 : f32
    %704 = vector.broadcast %703 : f32 to vector<1x128xf32>
    %705 = vector.broadcast %cst_173 : f32 to vector<1x128xf32>
    %706 = arith.select %698, %704, %705 : vector<1x128xi1>, vector<1x128xf32>
    %707 = arith.addf %696, %706 : vector<1x128xf32>
    %c25_i32 = arith.constant 25 : i32
    %708 = vector.broadcast %c25_i32 : i32 to vector<2x256xi32>
    %709 = arith.cmpi eq, %80, %708 : vector<2x256xi32>
    %cst_174 = arith.constant 0.000000e+00 : f32
    %710 = vector.broadcast %cst_174 : f32 to vector<2x256xf32>
    %711 = arith.select %709, %71, %710 : vector<2x256xi1>, vector<2x256xf32>
    %c25_i32_175 = arith.constant 25 : i32
    %712 = vector.broadcast %c25_i32_175 : i32 to vector<1x128xi32>
    %713 = arith.cmpi eq, %81, %712 : vector<1x128xi32>
    %714 = vector.shape_cast %711 : vector<2x256xf32> to vector<1x2x256xf32>
    %cst_176 = arith.constant dense<0.000000e+00> : vector<1xf32>
    %715 = vector.multi_reduction <add>, %714, %cst_176 [1, 2] : vector<1x2x256xf32> to vector<1xf32>
    %716 = vector.shape_cast %715 : vector<1xf32> to vector<1x1x1xf32>
    %717 = vector.extract %716[0, 0, 0] : f32 from vector<1x1x1xf32>
    %cst_177 = arith.constant 0.000000e+00 : f32
    %718 = vector.broadcast %717 : f32 to vector<1x128xf32>
    %719 = vector.broadcast %cst_177 : f32 to vector<1x128xf32>
    %720 = arith.select %713, %718, %719 : vector<1x128xi1>, vector<1x128xf32>
    %721 = arith.addf %707, %720 : vector<1x128xf32>
    %c57_i32 = arith.constant 57 : i32
    %722 = vector.broadcast %c57_i32 : i32 to vector<1x128xi32>
    %723 = arith.cmpi eq, %81, %722 : vector<1x128xi32>
    %724 = arith.mulf %711, %34 : vector<2x256xf32>
    %725 = vector.shape_cast %724 : vector<2x256xf32> to vector<1x2x256xf32>
    %cst_178 = arith.constant dense<0.000000e+00> : vector<1xf32>
    %726 = vector.multi_reduction <add>, %725, %cst_178 [1, 2] : vector<1x2x256xf32> to vector<1xf32>
    %727 = vector.shape_cast %726 : vector<1xf32> to vector<1x1x1xf32>
    %728 = vector.extract %727[0, 0, 0] : f32 from vector<1x1x1xf32>
    %cst_179 = arith.constant 0.000000e+00 : f32
    %729 = vector.broadcast %728 : f32 to vector<1x128xf32>
    %730 = vector.broadcast %cst_179 : f32 to vector<1x128xf32>
    %731 = arith.select %723, %729, %730 : vector<1x128xi1>, vector<1x128xf32>
    %732 = arith.addf %721, %731 : vector<1x128xf32>
    %c26_i32 = arith.constant 26 : i32
    %733 = vector.broadcast %c26_i32 : i32 to vector<2x256xi32>
    %734 = arith.cmpi eq, %80, %733 : vector<2x256xi32>
    %cst_180 = arith.constant 0.000000e+00 : f32
    %735 = vector.broadcast %cst_180 : f32 to vector<2x256xf32>
    %736 = arith.select %734, %71, %735 : vector<2x256xi1>, vector<2x256xf32>
    %c26_i32_181 = arith.constant 26 : i32
    %737 = vector.broadcast %c26_i32_181 : i32 to vector<1x128xi32>
    %738 = arith.cmpi eq, %81, %737 : vector<1x128xi32>
    %739 = vector.shape_cast %736 : vector<2x256xf32> to vector<1x2x256xf32>
    %cst_182 = arith.constant dense<0.000000e+00> : vector<1xf32>
    %740 = vector.multi_reduction <add>, %739, %cst_182 [1, 2] : vector<1x2x256xf32> to vector<1xf32>
    %741 = vector.shape_cast %740 : vector<1xf32> to vector<1x1x1xf32>
    %742 = vector.extract %741[0, 0, 0] : f32 from vector<1x1x1xf32>
    %cst_183 = arith.constant 0.000000e+00 : f32
    %743 = vector.broadcast %742 : f32 to vector<1x128xf32>
    %744 = vector.broadcast %cst_183 : f32 to vector<1x128xf32>
    %745 = arith.select %738, %743, %744 : vector<1x128xi1>, vector<1x128xf32>
    %746 = arith.addf %732, %745 : vector<1x128xf32>
    %c58_i32 = arith.constant 58 : i32
    %747 = vector.broadcast %c58_i32 : i32 to vector<1x128xi32>
    %748 = arith.cmpi eq, %81, %747 : vector<1x128xi32>
    %749 = arith.mulf %736, %34 : vector<2x256xf32>
    %750 = vector.shape_cast %749 : vector<2x256xf32> to vector<1x2x256xf32>
    %cst_184 = arith.constant dense<0.000000e+00> : vector<1xf32>
    %751 = vector.multi_reduction <add>, %750, %cst_184 [1, 2] : vector<1x2x256xf32> to vector<1xf32>
    %752 = vector.shape_cast %751 : vector<1xf32> to vector<1x1x1xf32>
    %753 = vector.extract %752[0, 0, 0] : f32 from vector<1x1x1xf32>
    %cst_185 = arith.constant 0.000000e+00 : f32
    %754 = vector.broadcast %753 : f32 to vector<1x128xf32>
    %755 = vector.broadcast %cst_185 : f32 to vector<1x128xf32>
    %756 = arith.select %748, %754, %755 : vector<1x128xi1>, vector<1x128xf32>
    %757 = arith.addf %746, %756 : vector<1x128xf32>
    %c27_i32 = arith.constant 27 : i32
    %758 = vector.broadcast %c27_i32 : i32 to vector<2x256xi32>
    %759 = arith.cmpi eq, %80, %758 : vector<2x256xi32>
    %cst_186 = arith.constant 0.000000e+00 : f32
    %760 = vector.broadcast %cst_186 : f32 to vector<2x256xf32>
    %761 = arith.select %759, %71, %760 : vector<2x256xi1>, vector<2x256xf32>
    %c27_i32_187 = arith.constant 27 : i32
    %762 = vector.broadcast %c27_i32_187 : i32 to vector<1x128xi32>
    %763 = arith.cmpi eq, %81, %762 : vector<1x128xi32>
    %764 = vector.shape_cast %761 : vector<2x256xf32> to vector<1x2x256xf32>
    %cst_188 = arith.constant dense<0.000000e+00> : vector<1xf32>
    %765 = vector.multi_reduction <add>, %764, %cst_188 [1, 2] : vector<1x2x256xf32> to vector<1xf32>
    %766 = vector.shape_cast %765 : vector<1xf32> to vector<1x1x1xf32>
    %767 = vector.extract %766[0, 0, 0] : f32 from vector<1x1x1xf32>
    %cst_189 = arith.constant 0.000000e+00 : f32
    %768 = vector.broadcast %767 : f32 to vector<1x128xf32>
    %769 = vector.broadcast %cst_189 : f32 to vector<1x128xf32>
    %770 = arith.select %763, %768, %769 : vector<1x128xi1>, vector<1x128xf32>
    %771 = arith.addf %757, %770 : vector<1x128xf32>
    %c59_i32 = arith.constant 59 : i32
    %772 = vector.broadcast %c59_i32 : i32 to vector<1x128xi32>
    %773 = arith.cmpi eq, %81, %772 : vector<1x128xi32>
    %774 = arith.mulf %761, %34 : vector<2x256xf32>
    %775 = vector.shape_cast %774 : vector<2x256xf32> to vector<1x2x256xf32>
    %cst_190 = arith.constant dense<0.000000e+00> : vector<1xf32>
    %776 = vector.multi_reduction <add>, %775, %cst_190 [1, 2] : vector<1x2x256xf32> to vector<1xf32>
    %777 = vector.shape_cast %776 : vector<1xf32> to vector<1x1x1xf32>
    %778 = vector.extract %777[0, 0, 0] : f32 from vector<1x1x1xf32>
    %cst_191 = arith.constant 0.000000e+00 : f32
    %779 = vector.broadcast %778 : f32 to vector<1x128xf32>
    %780 = vector.broadcast %cst_191 : f32 to vector<1x128xf32>
    %781 = arith.select %773, %779, %780 : vector<1x128xi1>, vector<1x128xf32>
    %782 = arith.addf %771, %781 : vector<1x128xf32>
    %c28_i32 = arith.constant 28 : i32
    %783 = vector.broadcast %c28_i32 : i32 to vector<2x256xi32>
    %784 = arith.cmpi eq, %80, %783 : vector<2x256xi32>
    %cst_192 = arith.constant 0.000000e+00 : f32
    %785 = vector.broadcast %cst_192 : f32 to vector<2x256xf32>
    %786 = arith.select %784, %71, %785 : vector<2x256xi1>, vector<2x256xf32>
    %c28_i32_193 = arith.constant 28 : i32
    %787 = vector.broadcast %c28_i32_193 : i32 to vector<1x128xi32>
    %788 = arith.cmpi eq, %81, %787 : vector<1x128xi32>
    %789 = vector.shape_cast %786 : vector<2x256xf32> to vector<1x2x256xf32>
    %cst_194 = arith.constant dense<0.000000e+00> : vector<1xf32>
    %790 = vector.multi_reduction <add>, %789, %cst_194 [1, 2] : vector<1x2x256xf32> to vector<1xf32>
    %791 = vector.shape_cast %790 : vector<1xf32> to vector<1x1x1xf32>
    %792 = vector.extract %791[0, 0, 0] : f32 from vector<1x1x1xf32>
    %cst_195 = arith.constant 0.000000e+00 : f32
    %793 = vector.broadcast %792 : f32 to vector<1x128xf32>
    %794 = vector.broadcast %cst_195 : f32 to vector<1x128xf32>
    %795 = arith.select %788, %793, %794 : vector<1x128xi1>, vector<1x128xf32>
    %796 = arith.addf %782, %795 : vector<1x128xf32>
    %c60_i32 = arith.constant 60 : i32
    %797 = vector.broadcast %c60_i32 : i32 to vector<1x128xi32>
    %798 = arith.cmpi eq, %81, %797 : vector<1x128xi32>
    %799 = arith.mulf %786, %34 : vector<2x256xf32>
    %800 = vector.shape_cast %799 : vector<2x256xf32> to vector<1x2x256xf32>
    %cst_196 = arith.constant dense<0.000000e+00> : vector<1xf32>
    %801 = vector.multi_reduction <add>, %800, %cst_196 [1, 2] : vector<1x2x256xf32> to vector<1xf32>
    %802 = vector.shape_cast %801 : vector<1xf32> to vector<1x1x1xf32>
    %803 = vector.extract %802[0, 0, 0] : f32 from vector<1x1x1xf32>
    %cst_197 = arith.constant 0.000000e+00 : f32
    %804 = vector.broadcast %803 : f32 to vector<1x128xf32>
    %805 = vector.broadcast %cst_197 : f32 to vector<1x128xf32>
    %806 = arith.select %798, %804, %805 : vector<1x128xi1>, vector<1x128xf32>
    %807 = arith.addf %796, %806 : vector<1x128xf32>
    %c29_i32 = arith.constant 29 : i32
    %808 = vector.broadcast %c29_i32 : i32 to vector<2x256xi32>
    %809 = arith.cmpi eq, %80, %808 : vector<2x256xi32>
    %cst_198 = arith.constant 0.000000e+00 : f32
    %810 = vector.broadcast %cst_198 : f32 to vector<2x256xf32>
    %811 = arith.select %809, %71, %810 : vector<2x256xi1>, vector<2x256xf32>
    %c29_i32_199 = arith.constant 29 : i32
    %812 = vector.broadcast %c29_i32_199 : i32 to vector<1x128xi32>
    %813 = arith.cmpi eq, %81, %812 : vector<1x128xi32>
    %814 = vector.shape_cast %811 : vector<2x256xf32> to vector<1x2x256xf32>
    %cst_200 = arith.constant dense<0.000000e+00> : vector<1xf32>
    %815 = vector.multi_reduction <add>, %814, %cst_200 [1, 2] : vector<1x2x256xf32> to vector<1xf32>
    %816 = vector.shape_cast %815 : vector<1xf32> to vector<1x1x1xf32>
    %817 = vector.extract %816[0, 0, 0] : f32 from vector<1x1x1xf32>
    %cst_201 = arith.constant 0.000000e+00 : f32
    %818 = vector.broadcast %817 : f32 to vector<1x128xf32>
    %819 = vector.broadcast %cst_201 : f32 to vector<1x128xf32>
    %820 = arith.select %813, %818, %819 : vector<1x128xi1>, vector<1x128xf32>
    %821 = arith.addf %807, %820 : vector<1x128xf32>
    %c61_i32 = arith.constant 61 : i32
    %822 = vector.broadcast %c61_i32 : i32 to vector<1x128xi32>
    %823 = arith.cmpi eq, %81, %822 : vector<1x128xi32>
    %824 = arith.mulf %811, %34 : vector<2x256xf32>
    %825 = vector.shape_cast %824 : vector<2x256xf32> to vector<1x2x256xf32>
    %cst_202 = arith.constant dense<0.000000e+00> : vector<1xf32>
    %826 = vector.multi_reduction <add>, %825, %cst_202 [1, 2] : vector<1x2x256xf32> to vector<1xf32>
    %827 = vector.shape_cast %826 : vector<1xf32> to vector<1x1x1xf32>
    %828 = vector.extract %827[0, 0, 0] : f32 from vector<1x1x1xf32>
    %cst_203 = arith.constant 0.000000e+00 : f32
    %829 = vector.broadcast %828 : f32 to vector<1x128xf32>
    %830 = vector.broadcast %cst_203 : f32 to vector<1x128xf32>
    %831 = arith.select %823, %829, %830 : vector<1x128xi1>, vector<1x128xf32>
    %832 = arith.addf %821, %831 : vector<1x128xf32>
    %c30_i32 = arith.constant 30 : i32
    %833 = vector.broadcast %c30_i32 : i32 to vector<2x256xi32>
    %834 = arith.cmpi eq, %80, %833 : vector<2x256xi32>
    %cst_204 = arith.constant 0.000000e+00 : f32
    %835 = vector.broadcast %cst_204 : f32 to vector<2x256xf32>
    %836 = arith.select %834, %71, %835 : vector<2x256xi1>, vector<2x256xf32>
    %c30_i32_205 = arith.constant 30 : i32
    %837 = vector.broadcast %c30_i32_205 : i32 to vector<1x128xi32>
    %838 = arith.cmpi eq, %81, %837 : vector<1x128xi32>
    %839 = vector.shape_cast %836 : vector<2x256xf32> to vector<1x2x256xf32>
    %cst_206 = arith.constant dense<0.000000e+00> : vector<1xf32>
    %840 = vector.multi_reduction <add>, %839, %cst_206 [1, 2] : vector<1x2x256xf32> to vector<1xf32>
    %841 = vector.shape_cast %840 : vector<1xf32> to vector<1x1x1xf32>
    %842 = vector.extract %841[0, 0, 0] : f32 from vector<1x1x1xf32>
    %cst_207 = arith.constant 0.000000e+00 : f32
    %843 = vector.broadcast %842 : f32 to vector<1x128xf32>
    %844 = vector.broadcast %cst_207 : f32 to vector<1x128xf32>
    %845 = arith.select %838, %843, %844 : vector<1x128xi1>, vector<1x128xf32>
    %846 = arith.addf %832, %845 : vector<1x128xf32>
    %c62_i32 = arith.constant 62 : i32
    %847 = vector.broadcast %c62_i32 : i32 to vector<1x128xi32>
    %848 = arith.cmpi eq, %81, %847 : vector<1x128xi32>
    %849 = arith.mulf %836, %34 : vector<2x256xf32>
    %850 = vector.shape_cast %849 : vector<2x256xf32> to vector<1x2x256xf32>
    %cst_208 = arith.constant dense<0.000000e+00> : vector<1xf32>
    %851 = vector.multi_reduction <add>, %850, %cst_208 [1, 2] : vector<1x2x256xf32> to vector<1xf32>
    %852 = vector.shape_cast %851 : vector<1xf32> to vector<1x1x1xf32>
    %853 = vector.extract %852[0, 0, 0] : f32 from vector<1x1x1xf32>
    %cst_209 = arith.constant 0.000000e+00 : f32
    %854 = vector.broadcast %853 : f32 to vector<1x128xf32>
    %855 = vector.broadcast %cst_209 : f32 to vector<1x128xf32>
    %856 = arith.select %848, %854, %855 : vector<1x128xi1>, vector<1x128xf32>
    %857 = arith.addf %846, %856 : vector<1x128xf32>
    %c31_i32_210 = arith.constant 31 : i32
    %858 = vector.broadcast %c31_i32_210 : i32 to vector<2x256xi32>
    %859 = arith.cmpi eq, %80, %858 : vector<2x256xi32>
    %cst_211 = arith.constant 0.000000e+00 : f32
    %860 = vector.broadcast %cst_211 : f32 to vector<2x256xf32>
    %861 = arith.select %859, %71, %860 : vector<2x256xi1>, vector<2x256xf32>
    %c31_i32_212 = arith.constant 31 : i32
    %862 = vector.broadcast %c31_i32_212 : i32 to vector<1x128xi32>
    %863 = arith.cmpi eq, %81, %862 : vector<1x128xi32>
    %864 = vector.shape_cast %861 : vector<2x256xf32> to vector<1x2x256xf32>
    %cst_213 = arith.constant dense<0.000000e+00> : vector<1xf32>
    %865 = vector.multi_reduction <add>, %864, %cst_213 [1, 2] : vector<1x2x256xf32> to vector<1xf32>
    %866 = vector.shape_cast %865 : vector<1xf32> to vector<1x1x1xf32>
    %867 = vector.extract %866[0, 0, 0] : f32 from vector<1x1x1xf32>
    %cst_214 = arith.constant 0.000000e+00 : f32
    %868 = vector.broadcast %867 : f32 to vector<1x128xf32>
    %869 = vector.broadcast %cst_214 : f32 to vector<1x128xf32>
    %870 = arith.select %863, %868, %869 : vector<1x128xi1>, vector<1x128xf32>
    %871 = arith.addf %857, %870 : vector<1x128xf32>
    %c63_i32 = arith.constant 63 : i32
    %872 = vector.broadcast %c63_i32 : i32 to vector<1x128xi32>
    %873 = arith.cmpi eq, %81, %872 : vector<1x128xi32>
    %874 = arith.mulf %861, %34 : vector<2x256xf32>
    %875 = vector.shape_cast %874 : vector<2x256xf32> to vector<1x2x256xf32>
    %cst_215 = arith.constant dense<0.000000e+00> : vector<1xf32>
    %876 = vector.multi_reduction <add>, %875, %cst_215 [1, 2] : vector<1x2x256xf32> to vector<1xf32>
    %877 = vector.shape_cast %876 : vector<1xf32> to vector<1x1x1xf32>
    %878 = vector.extract %877[0, 0, 0] : f32 from vector<1x1x1xf32>
    %cst_216 = arith.constant 0.000000e+00 : f32
    %879 = vector.broadcast %878 : f32 to vector<1x128xf32>
    %880 = vector.broadcast %cst_216 : f32 to vector<1x128xf32>
    %881 = arith.select %873, %879, %880 : vector<1x128xi1>, vector<1x128xf32>
    %882 = arith.addf %871, %881 : vector<1x128xf32>
    %c120_i32 = arith.constant 120 : i32
    %883 = vector.broadcast %c120_i32 : i32 to vector<1x128xi32>
    %884 = arith.cmpi eq, %81, %883 : vector<1x128xi32>
    %cst_217 = arith.constant 0.000000e+00 : f32
    %885 = vector.broadcast %54 : f32 to vector<1x128xf32>
    %886 = vector.broadcast %cst_217 : f32 to vector<1x128xf32>
    %887 = arith.select %884, %885, %886 : vector<1x128xi1>, vector<1x128xf32>
    %888 = arith.addf %882, %887 : vector<1x128xf32>
    %c121_i32 = arith.constant 121 : i32
    %889 = vector.broadcast %c121_i32 : i32 to vector<1x128xi32>
    %890 = arith.cmpi eq, %81, %889 : vector<1x128xi32>
    %cst_218 = arith.constant 0.000000e+00 : f32
    %891 = vector.broadcast %62 : f32 to vector<1x128xf32>
    %892 = vector.broadcast %cst_218 : f32 to vector<1x128xf32>
    %893 = arith.select %890, %891, %892 : vector<1x128xi1>, vector<1x128xf32>
    %894 = arith.addf %888, %893 : vector<1x128xf32>
    %895 = tpu.iota {dimensions = array<i32: 0>} : vector<8x128xi32>
    %c0_i32_219 = arith.constant 0 : i32
    %896 = vector.broadcast %c0_i32_219 : i32 to vector<8x128xi32>
    %897 = arith.cmpi eq, %895, %896 : vector<8x128xi32>
    %cst_220 = arith.constant 0.000000e+00 : f32
    %898 = vector.shape_cast %894 : vector<1x128xf32> to vector<1x128xf32>
    %899 = vector.broadcast %898 : vector<1x128xf32> to vector<8x128xf32>
    %900 = vector.broadcast %cst_220 : f32 to vector<8x128xf32>
    %901 = arith.select %897, %899, %900 : vector<8x128xi1>, vector<8x128xf32>
    %c0_221 = arith.constant 0 : index
    %c0_222 = arith.constant 0 : index
    %902 = vector.load %arg5[%c0_221, %c0_222] : memref<8x128xf32, #tpu.memory_space<vmem>>, vector<8x128xf32>
    tpu.vector_store %arg5[%c0_221, %c0_222], %901 {strides = array<i32>} : memref<8x128xf32, #tpu.memory_space<vmem>>, vector<8x128xf32>,
    return
  }
  func.func @transform_0(%arg0: i32) -> i32 {
    %c0_i32 = arith.constant 0 : i32
    %c0_i32_0 = arith.constant 0 : i32
    return %c0_i32 : i32
  }
  func.func @transform_1(%arg0: i32) -> (i32, i32) {
    %c0_i32 = arith.constant 0 : i32
    %c0_i32_0 = arith.constant 0 : i32
    return %c0_i32, %arg0 : i32, i32
  }
  func.func @transform_2(%arg0: i32) -> (i32, i32) {
    %c0_i32 = arith.constant 0 : i32
    %c0_i32_0 = arith.constant 0 : i32
    return %c0_i32, %arg0 : i32, i32
  }
  func.func @transform_3(%arg0: i32) -> (i32, i32) {
    %c0_i32 = arith.constant 0 : i32
    %c0_i32_0 = arith.constant 0 : i32
    return %c0_i32, %arg0 : i32, i32
  }
  func.func @transform_4(%arg0: i32) -> (i32, i32) {
    %c0_i32 = arith.constant 0 : i32
    %c0_i32_0 = arith.constant 0 : i32
    return %arg0, %c0_i32 : i32, i32
  }
}

</mosaic_0001>

<bundles_post_ra>
// kernel: squeeze.11
= control target key start
LH: loop header
LB: loop body
LE: loop exit
PB: predicated region body
PF: predicated region fallthrough
CT: control target
= control target key end

     0   :  { %s8_s6 = smov 3  ;;  %s11_s7 = smov 12  ;;  %vm13_vm0 = vcmask 1043458   ;;  %vm3_vm1 = vcmask 130048   ;;  %vm17_vm2 = vcmask 1048448   ;;  %vm31_vm3 = vcmask 917248   ;;  %s213_s0 = inlined_call_operand.vmem [shape: f32[2,1,16,16], index: 0, kind: input, shape index: {}]   ;;  %s214_s1 = inlined_call_operand.vmem [shape: f32[2,256], index: 1, kind: output, shape index: {}]  }
   0x1   :  { %v116_v0 = vld [vmem:[%s213_s0 + $0x7] ss:$16 sm:%s8_s6]   ;;  %v117_v1 = vld [vmem:[%s213_s0 - $0x11] ss:$16 sm:%s11_s7]   ;;  %s36_s12 = smov 3  ;;  %s39_s15 = smov 12 }
   0x2   :  { %v14_v2 = vsel %vm13_vm0, %v117_v1, %v116_v0  ;;  %v120_v3 = vld [vmem:[%s213_s0 + $0x5] ss:$16 sm:%s36_s12]   ;;  %s138_s16 = smov 112   ;;  %v121_v4 = vld [vmem:[%s213_s0 - $0x13] ss:$16 sm:%s39_s15]   ;;  %s22_s19 = smov 3 }
   0x3   :  { %15 = vrot.lane.b32.xlu0 %v14_v2, %s138_s16  ;;  %s25_s20 = smov 12  ;;  %v42_v5 = vsel %vm13_vm0, %v121_v4, %v120_v3  ;;  %v118_v6 = vld [vmem:[%s213_s0 + $0x6] ss:$16 sm:%s22_s19]   ;;  %s50_s25 = smov 3  ;;  %vm45_vm4 = vcmask 786048   ;;  %vm59_vm5 = vcmask 654848  }
   0x4   :  { %v119_v7 = vld [vmem:[%s213_s0 - $0x12] ss:$16 sm:%s25_s20]   ;;  %s139_s26 = smov 80   ;;  %v122_v9 = vld [vmem:[%s213_s0 + $0x4] ss:$16 sm:%s50_s25]   ;;  %s53_s29 = smov 12 }
   0x5   :  { %43 = vrot.lane.b32.xlu1 %v42_v5, %s139_s26  ;;  %v28_v8 = vsel %vm13_vm0, %v119_v7, %v118_v6  ;;  %v123_v10 = vld [vmem:[%s213_s0 - $0x14] ss:$16 sm:%s53_s29]   ;;  %s64_s3 = smov 3  ;;  %s67_s4 = smov 12  ;;  %vm73_vm6 = vcmask 523648   ;;  %vm87_vm7 = vcmask 392448  }
   0x6   :  { %s140_s5 = smov 96   ;;  %v56_v11 = vsel %vm13_vm0, %v123_v10, %v122_v9  ;;  %v124_v12 = vld [vmem:[%s213_s0 + $0x3] ss:$16 sm:%s64_s3]   ;;  %s78_s8 = smov 3  ;;  %v125_v13 = vld [vmem:[%s213_s0 - $0x15] ss:$16 sm:%s67_s4]  }
   0x7   :  { %29 = vrot.lane.b32.xlu0 %v28_v8, %s140_s5  ;;  %v126_v14 = vld [vmem:[%s213_s0 + $0x2] ss:$16 sm:%s78_s8]   ;;  %s81_s13 = smov 12  ;;  %s141_s14 = smov 64   ;;  %v70_v15 = vsel %vm13_vm0, %v125_v13, %v124_v12  ;;  %vm101_vm8 = vcmask 261248  }
   0x8   :  { %v127_v16 = vld [vmem:[%s213_s0 - $0x16] ss:$16 sm:%s81_s13]   ;;  %s92_s17 = smov 3  ;;  %s95_s18 = smov 12 }
   0x9   :  { %57 = vrot.lane.b32.xlu1 %v56_v11, %s141_s14  ;;  %v84_v17 = vsel %vm13_vm0, %v127_v16, %v126_v14  ;;  %v128_v18 = vld [vmem:[%s213_s0 + $0x1] ss:$16 sm:%s92_s17]   ;;  %s142_s23 = smov 48   ;;  %v2_v20 = vld [vmem:[%s213_s0] ss:$8 sm:$0xf]  }
   0xa   :  { %v129_v19 = vld [vmem:[%s213_s0 - $0x17] ss:$16 sm:%s95_s18]   ;;  %4 = vst.msk [vmem:[#allocation0] ss:$8 sm:$0x3] %vm3_vm1, %v2_v20   ;;  %s143_s0 = smov 32  }
   0xb   :  { %71 = vrot.lane.b32.xlu0 %v70_v15, %s142_s23  ;;  %v98_v21 = vsel %vm13_vm0, %v129_v19, %v128_v18  ;;  %6 = vst.msk [vmem:[#allocation0 - $0xf] ss:$8 sm:$0xc] %vm3_vm1, %v2_v20   ;;  %s144_s26 = smov 16  }
   0xd   :  { %85 = vrot.lane.b32.xlu1 %v84_v17, %s143_s0 }
   0xf   :  { %99 = vrot.lane.b32.xlu0 %v98_v21, %s144_s26 }
  0x75   :  { %v16_v22 = vpop.permute.xlu0 %15  }
  0x76   :  { %18 = vst.msk [vmem:[#allocation0] sm:$0x3] %vm17_vm2, %v16_v22   ;;  %20 = vst.msk [vmem:[#allocation0 + $0x6] sm:$0xc] %vm17_vm2, %v16_v22  }
  0x77   :  { %v44_v23 = vpop.permute.xlu1 %43  }
  0x79   :  { %v30_v24 = vpop.permute.xlu0 %29  }
  0x7a   :  { %32 = vst.msk [vmem:[#allocation0] sm:$0x3] %vm31_vm3, %v30_v24   ;;  %34 = vst.msk [vmem:[#allocation0 + $0x6] sm:$0xc] %vm31_vm3, %v30_v24  }
  0x7b   :  { %46 = vst.msk [vmem:[#allocation0] sm:$0x3] %vm45_vm4, %v44_v23   ;;  %48 = vst.msk [vmem:[#allocation0 + $0x6] sm:$0xc] %vm45_vm4, %v44_v23   ;;  %v58_v25 = vpop.permute.xlu1 %57  }
  0x7c   :  { %60 = vst.msk [vmem:[#allocation0] sm:$0x3] %vm59_vm5, %v58_v25   ;;  %62 = vst.msk [vmem:[#allocation0 + $0x6] sm:$0xc] %vm59_vm5, %v58_v25  }
  0x7d   :  { %v72_v26 = vpop.permute.xlu0 %71  }
  0x7e   :  { %74 = vst.msk [vmem:[#allocation0] sm:$0x3] %vm73_vm6, %v72_v26   ;;  %76 = vst.msk [vmem:[#allocation0 + $0x6] sm:$0xc] %vm73_vm6, %v72_v26  }
  0x7f   :  { %v86_v27 = vpop.permute.xlu1 %85  }
  0x80   :  { %88 = vst.msk [vmem:[#allocation0] sm:$0x3] %vm87_vm7, %v86_v27   ;;  %90 = vst.msk [vmem:[#allocation0 + $0x6] sm:$0xc] %vm87_vm7, %v86_v27  }
  0x81   :  { %v100_v28 = vpop.permute.xlu0 %99  }
  0x82   :  { %102 = vst.msk [vmem:[#allocation0] sm:$0x3] %vm101_vm8, %v100_v28   ;;  %104 = vst.msk [vmem:[#allocation0 + $0x6] sm:$0xc] %vm101_vm8, %v100_v28  }
  0x89   :  { %v108_v29 = vld [vmem:[#allocation0] sm:$0x3]  ;;  %v112_v30 = vld [vmem:[#allocation0 + $0x8] sm:$0x3] }
  0x8a   :  { %110 = vst [vmem:[%s214_s1] sm:$0x3] %v108_v29  ;;  %130 = vst [vmem:[%s214_s1 + $0x2] sm:$0x3] %v112_v30 }

// kernel: squeeze.10
= control target key start
LH: loop header
LB: loop body
LE: loop exit
PB: predicated region body
PF: predicated region fallthrough
CT: control target
= control target key end

     0   :  { %2 = vsyncpa [#allocation1], 0  ;;  %s160_s6 = smov [#allocation0]   ;;  %s205_s0 = inlined_call_operand.hbm [shape: f32[2,1,16,16], index: 0, kind: input, shape index: {}]   ;;  %s206_s1 = inlined_call_operand.vmem [shape: f32[2,256], index: 1, kind: output, shape index: {}]  }
   0x1   :  { %s7_s7 = sshll.u32 %s160_s6, 4  ;;  %s136_s10 = scalar_lea.hbm %s205_s0, 512  ;;  %s8_s7 = int_to_ptr.vmem [resolvable:$true] %s7_s7 }
   0x2   :  { %p137_p0 = scmp.ne.s32.totalorder %s205_s0, %s136_s10  ;;  %p140_p1 = scmp.lt.u32.totalorder %s136_s10, %s205_s0 }
   0x4   :  { %p142_p2 = pnand %p140_p1, %p137_p0 }
   0x6   :  { %145 = shalt.err (!%p142_p2)
}
   0x7   :  { %s146_s15 = scalar_lea.vmem %s8_s7, 512  ;;  %p151_p4 = scmp.lt.s32.totalorder %s8_s7, %s8_s7 }
   0x8   :  { %p147_p3 = scmp.ne.s32.totalorder %s8_s7, %s146_s15  ;;  %p152_p5 = scmp.lt.s32.totalorder %s146_s15, %s146_s15 }
   0xa   :  { %p153_p6 = por %p152_p5, %p151_p4 }
   0xc   :  { %p154_p7 = pnand %p153_p6, %p147_p3 }
   0xe   :  { %157 = shalt.err (!%p154_p7)
}
   0xf   :  { %10 = dma.hbm_to_vmem [thread:$0]  %s205_s0, 512, %s8_s7, [#allocation1]  }
  0x10   :  { %158 = dma.done.wait [#allocation1], 512  }
  0x11   :  { %159 = vsyncadd [#allocation1], 4294966784  ;;  %s18_s0 = smov 3  ;;  %s21_s18 = smov 12  ;;  %vm23_vm0 = vcmask 1043458   ;;  %vm13_vm1 = vcmask 130048  }
  0x12   :  { %s46_s19 = smov 3  ;;  %s49_s20 = smov 12  ;;  %v19_v0 = vld [vmem:[#allocation0 + $0x7] ss:$16 sm:%s18_s0]   ;;  %v22_v1 = vld [vmem:[#allocation0 - $0x11] ss:$16 sm:%s21_s18]  }
  0x13   :  { %s32_s21 = smov 3  ;;  %s35_s22 = smov 12  ;;  %v47_v2 = vld [vmem:[#allocation0 + $0x5] ss:$16 sm:%s46_s19]   ;;  %v24_v3 = vsel %vm23_vm0, %v22_v1, %v19_v0  ;;  %v50_v4 = vld [vmem:[#allocation0 - $0x13] ss:$16 sm:%s49_s20]  }
  0x14   :  { %s60_s23 = smov 3  ;;  %s63_s24 = smov 12  ;;  %v33_v5 = vld [vmem:[#allocation0 + $0x6] ss:$16 sm:%s32_s21]   ;;  %v36_v6 = vld [vmem:[#allocation0 - $0x12] ss:$16 sm:%s35_s22]   ;;  %v52_v7 = vsel %vm23_vm0, %v50_v4, %v47_v2 }
  0x15   :  { %s74_s25 = smov 3  ;;  %s77_s26 = smov 12  ;;  %v61_v8 = vld [vmem:[#allocation0 + $0x4] ss:$16 sm:%s60_s23]   ;;  %v64_v9 = vld [vmem:[#allocation0 - $0x14] ss:$16 sm:%s63_s24]   ;;  %v38_v10 = vsel %vm23_vm0, %v36_v6, %v33_v5 }
  0x16   :  { %s161_s27 = smov 112   ;;  %s162_s28 = smov 80   ;;  %v66_v11 = vsel %vm23_vm0, %v64_v9, %v61_v8  ;;  %v75_v12 = vld [vmem:[#allocation0 + $0x3] ss:$16 sm:%s74_s25]   ;;  %v78_v13 = vld [vmem:[#allocation0 - $0x15] ss:$16 sm:%s77_s26]  }
  0x17   :  { %25 = vrot.lane.b32.xlu0 %v24_v3, %s161_s27  ;;  %53 = vrot.lane.b32.xlu1 %v52_v7, %s162_s28  ;;  %s88_s29 = smov 3  ;;  %s91_s30 = smov 12  ;;  %v80_v16 = vsel %vm23_vm0, %v78_v13, %v75_v12  ;;  %v12_v17 = vld [vmem:[#allocation0] ss:$8 sm:$0xf]   ;;  %vm27_vm2 = vcmask 1048448  }
  0x18   :  { %v89_v14 = vld [vmem:[#allocation0 + $0x2] ss:$16 sm:%s88_s29]   ;;  %v92_v15 = vld [vmem:[#allocation0 - $0x16] ss:$16 sm:%s91_s30]   ;;  %s102_s2 = smov 3  ;;  %s105_s3 = smov 12 }
  0x19   :  { %s163_s4 = smov 96   ;;  %s164_s5 = smov 64   ;;  %v94_v18 = vsel %vm23_vm0, %v92_v15, %v89_v14  ;;  %v103_v19 = vld [vmem:[#allocation0 + $0x1] ss:$16 sm:%s102_s2]   ;;  %v106_v20 = vld [vmem:[#allocation0 - $0x17] ss:$16 sm:%s105_s3]  }
  0x1a   :  { %14 = vst.msk [vmem:[#allocation2] ss:$8 sm:$0x3] %vm13_vm1, %v12_v17   ;;  %16 = vst.msk [vmem:[#allocation2 - $0xf] ss:$8 sm:$0xc] %vm13_vm1, %v12_v17   ;;  %v108_v21 = vsel %vm23_vm0, %v106_v20, %v103_v19 }
  0x1b   :  { %39 = vrot.lane.b32.xlu0 %v38_v10, %s163_s4  ;;  %67 = vrot.lane.b32.xlu1 %v66_v11, %s164_s5  ;;  %s165_s6 = smov 48   ;;  %s166_s7 = smov 32   ;;  %vm41_vm3 = vcmask 917248   ;;  %vm55_vm4 = vcmask 786048   ;;  %vm69_vm5 = vcmask 654848   ;;  %vm83_vm6 = vcmask 523648  }
  0x1c   :  { %s167_s8 = smov 16   ;;  %vm97_vm7 = vcmask 392448   ;;  %vm111_vm8 = vcmask 261248  }
  0x1f   :  { %81 = vrot.lane.b32.xlu0 %v80_v16, %s165_s6  ;;  %95 = vrot.lane.b32.xlu1 %v94_v18, %s166_s7 }
  0x23   :  { %109 = vrot.lane.b32.xlu0 %v108_v21, %s167_s8 }
  0x89   :  { %v26_v22 = vpop.permute.xlu0 %25   ;;  %v54_v23 = vpop.permute.xlu1 %53  }
  0x8a   :  { %28 = vst.msk [vmem:[#allocation2] sm:$0x3] %vm27_vm2, %v26_v22   ;;  %30 = vst.msk [vmem:[#allocation2 + $0x6] sm:$0xc] %vm27_vm2, %v26_v22  }
  0x8d   :  { %v40_v24 = vpop.permute.xlu0 %39   ;;  %v68_v25 = vpop.permute.xlu1 %67  }
  0x8e   :  { %42 = vst.msk [vmem:[#allocation2] sm:$0x3] %vm41_vm3, %v40_v24   ;;  %44 = vst.msk [vmem:[#allocation2 + $0x6] sm:$0xc] %vm41_vm3, %v40_v24  }
  0x8f   :  { %56 = vst.msk [vmem:[#allocation2] sm:$0x3] %vm55_vm4, %v54_v23   ;;  %58 = vst.msk [vmem:[#allocation2 + $0x6] sm:$0xc] %vm55_vm4, %v54_v23  }
  0x90   :  { %70 = vst.msk [vmem:[#allocation2] sm:$0x3] %vm69_vm5, %v68_v25   ;;  %72 = vst.msk [vmem:[#allocation2 + $0x6] sm:$0xc] %vm69_vm5, %v68_v25  }
  0x91   :  { %v82_v26 = vpop.permute.xlu0 %81   ;;  %v96_v27 = vpop.permute.xlu1 %95  }
  0x92   :  { %84 = vst.msk [vmem:[#allocation2] sm:$0x3] %vm83_vm6, %v82_v26   ;;  %86 = vst.msk [vmem:[#allocation2 + $0x6] sm:$0xc] %vm83_vm6, %v82_v26  }
  0x93   :  { %98 = vst.msk [vmem:[#allocation2] sm:$0x3] %vm97_vm7, %v96_v27   ;;  %100 = vst.msk [vmem:[#allocation2 + $0x6] sm:$0xc] %vm97_vm7, %v96_v27  }
  0x95   :  { %v110_v28 = vpop.permute.xlu0 %109  }
  0x96   :  { %112 = vst.msk [vmem:[#allocation2] sm:$0x3] %vm111_vm8, %v110_v28   ;;  %114 = vst.msk [vmem:[#allocation2 + $0x6] sm:$0xc] %vm111_vm8, %v110_v28  }
  0x9d   :  { %v118_v29 = vld [vmem:[#allocation2] sm:$0x3]  ;;  %v122_v30 = vld [vmem:[#allocation2 + $0x8] sm:$0x3] }
  0x9e   :  { %120 = vst [vmem:[%s206_s1] sm:$0x3] %v118_v29  ;;  %127 = vst [vmem:[%s206_s1 + $0x2] sm:$0x3] %v122_v30 }
  0x9f   :  { %126 = vsyncpa [#allocation1], 1 }

// kernel: reverse
= control target key start
LH: loop header
LB: loop body
LE: loop exit
PB: predicated region body
PF: predicated region fallthrough
CT: control target
= control target key end

     0   :  { %v2_v0 = vlaneseq  ;;  %s123_s0 = inlined_call_operand.vmem [shape: f32[31], index: 0, kind: input, shape index: {}]   ;;  %s124_s1 = inlined_call_operand.vmem [shape: f32[31], index: 1, kind: output, shape index: {}]  }
   0x2   :  { %v3_v1 = vsub.s32 30, %v2_v0 }
   0x4   :  { %4 = vset.pattern.permute.xlu0 %v3_v1 }
   0x5   :  { %v43_v2 = vld [vmem:[#allocation1] sm:$0x1]  ;;  %v21_v3 = vld [vmem:[%s123_s0] sm:$0x1]  ;;  %v58_v10 = vshrl.u32 %v2_v0, 7 }
   0x6   :  { %44 = vst [vmem:[#allocation0] sm:$0x1] %v43_v2  ;;  %22 = vst [vmem:[#allocation1 + $0x1] sm:$0x1] %v21_v3 }
   0x7   :  { %vm59_vm0 = vcmp.lt.s32.totalorder %v58_v10, 1 }
   0xd   :  { %v46_v4 = vld [vmem:[#allocation0 + $0x7] ss:$-1 sm:$0xff]  ;;  %v40_v5 = vld [vmem:[#allocation1 + $0x1] sm:$0x1] }
   0xe   :  { %v47_v6 = vrot.slane %v46_v4, 7  ;;  %42 = vst [vmem:[#allocation0 + $0x8] sm:$0x1] %v40_v5 }
  0x10   :  { %48 = vperm.xlu0 %4, %v47_v6  }
  0x15   :  { %v53_v7 = vld [vmem:[#allocation0 + $0xf] ss:$-1 sm:$0xff] }
  0x16   :  { %v54_v8 = vrot.slane %v53_v7, 7 }
  0x18   :  { %55 = vperm.xlu0 %4, %v54_v8  }
  0x8f   :  { %v49_v9 = vpop.permute.xlu0 %48 }
  0x90   :  { %50 = vst [vmem:[#allocation2] sm:$0xff] %v49_v9 }
  0x97   :  { %v56_v11 = vpop.permute.xlu0 %55 }
  0x98   :  { %60 = vst.msk [vmem:[#allocation2] sm:$0xff] %vm59_vm0, %v56_v11 }
  0x9f   :  { %v64_v12 = vld [vmem:[#allocation2] sm:$0x1] }
  0xa0   :  { %66 = vst [vmem:[#allocation3] sm:$0x1] %v64_v12 }
  0xa7   :  { %v82_v13 = vld [vmem:[#allocation3] sm:$0x1] }
  0xa8   :  { %83 = vst [vmem:[%s124_s1] sm:$0x1] %v82_v13 }

// kernel: hard_bce_loss.2
= control target key start
LH: loop header
LB: loop body
LE: loop exit
PB: predicated region body
PF: predicated region fallthrough
CT: control target
= control target key end

     0   :  { %v20_v0 = vlaneseq  ;;  %v829_v3 = vmov 1983009808   ;;  %vm87_vm0 = vcmask 1041408   ;;  %vm152_vm8 = vcmask 1040384   ;;  %s1094_s1 = inlined_call_operand.vmem [shape: f32[2,256], index: 1, kind: input, shape index: {}]   ;;  %s1095_s2 = inlined_call_operand.vmem [shape: f32[2,256], index: 2, kind: input, shape index: {}]   ;;  %s1096_s0 = inlined_call_operand.vmem [shape: f32[2,256], index: 0, kind: input, shape index: {}]   ;;  %s1097_s3 = inlined_call_operand.vmem [shape: f32[8,128], index: 3, kind: output, shape index: {}]  }
   0x1   :  { %v17_v1 = vld [vmem:[%s1094_s1] sm:$0xf]  ;;  %v46_v4 = vunpack.c.l.s4 %v829_v3 }
   0x2   :  { %v18_v2 = vld [vmem:[%s1095_s2] sm:$0xf]  ;;  %v860_v6 = vshrl.u32 %v20_v0, 7  ;;  %v36_v10 = vsub.f32 1.0, %v17_v1 }
   0x3   :  { %v14_v5 = vld [vmem:[%s1096_s0] sm:$0xf]  ;;  %v57_v7 = vmul.f32 %v18_v2, %v17_v1  ;;  %v47_v9 = vunpack.c.0.s8 %v46_v4 }
   0x4   :  { %v15_v8 = vmax.f32 %v14_v5, 0.0  ;;  %v72_v14 = vmul.f32 %v36_v10, %v18_v2 }
   0x5   :  { %v58_v11 = vfloor.f32 %v57_v7  ;;  %v50_v13 = vsub.s32 %v47_v9, %v860_v6 }
   0x6   :  { %v16_v12 = vmin.f32 %v15_v8, 1.0  ;;  %v73_v17 = vfloor.f32 %v72_v14 }
   0x7   :  { %v66_v16 = vrot.slane %v58_v11, %v50_v13 }
   0x8   :  { %825 = vlog2.f32 %v16_v12  ;;  %v31_v15 = vsub.f32 1.0, %v16_v12  ;;  %v81_v19 = vrot.slane %v73_v17, %v50_v13 }
   0x9   :  { %v67_v18 = vcombine.high %v66_v16, %v66_v16  ;;  %v88_v20 = vsel %vm87_vm0, %v66_v16, 0.0 }
   0xa   :  { %827 = vlog2.f32 %v31_v15  ;;  %v82_v22 = vcombine.high %v81_v19, %v81_v19  ;;  %v102_v24 = vsel %vm87_vm0, %v81_v19, 0.0  ;;  %v89_v27 = vrot.slane %v88_v20, 4 }
   0xb   :  { %v95_v21 = vsel %vm87_vm0, %v67_v18, 0.0  ;;  %v103_v30 = vrot.slane %v102_v24, 4 }
   0xc   :  { %v130_v23 = vadd.f32 %v95_v21, %v88_v20  ;;  %v109_v25 = vsel %vm87_vm0, %v82_v22, 0.0  ;;  %v96_v29 = vrot.slane %v95_v21, 4  ;;  %v90_v34 = vadd.f32 %v89_v27, %v88_v20 }
   0xd   :  { %v140_v26 = vadd.f32 %v109_v25, %v102_v24  ;;  %v110_v32 = vrot.slane %v109_v25, 4  ;;  %v104_v38 = vadd.f32 %v103_v30, %v102_v24 }
   0xe   :  { %131 = vadd.xlane.f32.xlu0 %v130_v23  ;;  %v97_v37 = vadd.f32 %v96_v29, %v95_v21  ;;  %v91_v42 = vrot.slane %v90_v34, 2 }
   0xf   :  { %v111_v41 = vadd.f32 %v110_v32, %v109_v25  ;;  %v105_v45 = vrot.slane %v104_v38, 2 }
  0x10   :  { %v98_v44 = vrot.slane %v97_v37, 2  ;;  %v92_v48 = vadd.f32 %v91_v42, %v90_v34 }
  0x11   :  { %v112_v47 = vrot.slane %v111_v41, 2  ;;  %v106_v51 = vadd.f32 %v105_v45, %v104_v38 }
  0x12   :  { %v826_v28 = vpop.eup %825  ;;  %141 = vadd.xlane.f32.xlu0 %v140_v26  ;;  %v99_v50 = vadd.f32 %v98_v44, %v97_v37  ;;  %v93_v56 = vrot.slane %v92_v48, 1 }
  0x13   :  { %v29_v31 = vmul.f32 0.6931472, %v826_v28  ;;  %v113_v53 = vadd.f32 %v112_v47, %v111_v41  ;;  %v107_v58 = vrot.slane %v106_v51, 1 }
  0x14   :  { %v828_v33 = vpop.eup %827  ;;  %v100_v59 = vrot.slane %v99_v50, 1  ;;  %v94_v5 = vadd.f32 %v93_v56, %v92_v48 }
  0x15   :  { %v30_v35 = vmax.f32 %v29_v31, -100.0  ;;  %v33_v36 = vmul.f32 0.6931472, %v828_v33  ;;  %v114_v61 = vrot.slane %v113_v53, 1  ;;  %v869_v7 = vadd.f32 %v107_v58, %v106_v51 }
  0x16   :  { %v101_v12 = vadd.f32 %v100_v59, %v99_v50 }
  0x17   :  { %v35_v39 = vmul.f32 %v30_v35, %v17_v1  ;;  %v34_v40 = vmax.f32 %v33_v36, -100.0  ;;  %v871_v11 = vadd.f32 %v114_v61, %v113_v53 }
  0x19   :  { %v37_v43 = vmul.f32 %v36_v10, %v34_v40 }
  0x1b   :  { %v38_v46 = vadd.f32 %v37_v43, %v35_v39 }
  0x1d   :  { %v39_v49 = vsub.f32 0.0, %v38_v46 }
  0x1f   :  { %v51_v52 = vrot.slane %v39_v49, %v50_v13 }
  0x21   :  { %v52_v54 = vcombine.high %v51_v52, %v51_v52  ;;  %v167_v55 = vshra.s32 %v51_v52, 23  ;;  %v116_v57 = vsel %vm87_vm0, %v51_v52, 0.0 }
  0x22   :  { %v117_v60 = vrot.slane %v116_v57, 4 }
  0x23   :  { %v168_v62 = vshra.s32 %v52_v54, 23  ;;  %v760_v63 = vadd.s32 4294967189, %v167_v55  ;;  %v123_v1 = vsel %vm87_vm0, %v52_v54, 0.0 }
  0x24   :  { %v118_v2 = vadd.f32 %v117_v60, %v116_v57  ;;  %v124_v3 = vrot.slane %v123_v1, 4 }
  0x25   :  { %v761_v4 = vadd.s32 4294967189, %v168_v62  ;;  %vm171_vm1 = vcmp.gt.s32.totalorder %v760_v63, 0 }
  0x26   :  { %v172_v8 = vsel %vm171_vm1, %v760_v63, 0  ;;  %v119_v9 = vrot.slane %v118_v2, 2  ;;  %v125_v10 = vadd.f32 %v124_v3, %v123_v1 }
  0x27   :  { %vm173_vm2 = vcmp.gt.s32.totalorder %v761_v4, 0  ;;  %vm175_vm3 = vcmp.lt.s32.totalorder %v172_v8, 27 }
  0x28   :  { %v174_v13 = vsel %vm173_vm2, %v761_v4, 0  ;;  %v873_v14 = vsel %vm175_vm3, %v172_v8, 27  ;;  %v120_v15 = vadd.f32 %v119_v9, %v118_v2  ;;  %v126_v16 = vrot.slane %v125_v10, 2 }
  0x29   :  { %vm177_vm4 = vcmp.lt.s32.totalorder %v174_v13, 27  ;;  %vm179_vm5 = vcmp.eq.s32.totalorder %v873_v14, 0  ;;  %vm199_vm6 = vcmp.eq.s32.totalorder %v873_v14, 1  ;;  %vm239_vm7 = vcmp.eq.s32.totalorder %v873_v14, 3 }
  0x2a   :  { %v878_v17 = vsel %vm177_vm4, %v174_v13, 27  ;;  %v181_v18 = vsel %vm179_vm5, %v869_v7, 0.0  ;;  %v201_v19 = vsel %vm199_vm6, %v869_v7, 0.0  ;;  %v241_v20 = vsel %vm239_vm7, %v869_v7, 0.0 }
  0x2b   :  { %vm180_vm9 = vcmp.eq.s32.totalorder %v878_v17, 0  ;;  %v183_v21 = vsel %vm87_vm0, %v181_v18, 0.0  ;;  %vm200_vm10 = vcmp.eq.s32.totalorder %v878_v17, 1  ;;  %v203_v22 = vsel %vm87_vm0, %v201_v19, 0.0 }
  0x2c   :  { %v182_v23 = vsel %vm180_vm9, %v871_v11, 0.0  ;;  %v202_v24 = vsel %vm200_vm10, %v871_v11, 0.0  ;;  %vm240_vm11 = vcmp.eq.s32.totalorder %v878_v17, 3  ;;  %v243_v25 = vsel %vm87_vm0, %v241_v20, 0.0 }
  0x2d   :  { %v184_v26 = vsel %vm87_vm0, %v182_v23, 0.0  ;;  %v204_v27 = vsel %vm87_vm0, %v202_v24, 0.0  ;;  %v242_v28 = vsel %vm240_vm11, %v871_v11, 0.0  ;;  %v121_v29 = vrot.slane %v120_v15, 1 }
  0x2e   :  { %v185_v30 = vadd.f32 %v184_v26, %v183_v21  ;;  %v205_v31 = vadd.f32 %v204_v27, %v203_v22  ;;  %v244_v32 = vsel %vm87_vm0, %v242_v28, 0.0  ;;  %v127_v33 = vadd.f32 %v126_v16, %v125_v10 }
  0x2f   :  { %v245_v34 = vadd.f32 %v244_v32, %v243_v25  ;;  %v122_v35 = vadd.f32 %v121_v29, %v120_v15  ;;  %vm279_vm12 = vcmp.eq.s32.totalorder %v873_v14, 5  ;;  %vm280_vm13 = vcmp.eq.s32.totalorder %v878_v17, 5 }
  0x30   :  { %186 = vadd.xlane.f32.xlu1 %v185_v30  ;;  %206 = vadd.xlane.f32.xlu0 %v205_v31  ;;  %v128_v36 = vrot.slane %v127_v33, 1  ;;  %v281_v37 = vsel %vm279_vm12, %v869_v7, 0.0  ;;  %v282_v38 = vsel %vm280_vm13, %v871_v11, 0.0  ;;  %vm219_vm14 = vcmp.eq.s32.totalorder %v873_v14, 2 }
  0x31   :  { %v150_v39 = vmul.f32 %v122_v35, %v94_v5  ;;  %v283_v40 = vsel %vm87_vm0, %v281_v37, 0.0  ;;  %v284_v41 = vsel %vm87_vm0, %v282_v38, 0.0  ;;  %vm220_vm15 = vcmp.eq.s32.totalorder %v878_v17, 2 }
  0x32   :  { %v129_v42 = vadd.f32 %v128_v36, %v127_v33  ;;  %v285_v43 = vadd.f32 %v284_v41, %v283_v40  ;;  %v221_v44 = vsel %vm219_vm14, %v869_v7, 0.0  ;;  %v222_v45 = vsel %vm220_vm15, %v871_v11, 0.0 }
  0x33   :  { %vm319_vm1 = vcmp.eq.s32.totalorder %v873_v14, 7  ;;  %v153_v47 = vsel %vm152_vm8, %v150_v39, 0.0  ;;  %vm320_vm2 = vcmp.eq.s32.totalorder %v878_v17, 7  ;;  %vm259_vm3 = vcmp.eq.s32.totalorder %v873_v14, 4 }
  0x34   :  { %246 = vadd.xlane.f32.xlu0 %v245_v34  ;;  %v151_v46 = vmul.f32 %v129_v42, %v101_v12  ;;  %v321_v48 = vsel %vm319_vm1, %v869_v7, 0.0  ;;  %v322_v49 = vsel %vm320_vm2, %v871_v11, 0.0  ;;  %vm260_vm4 = vcmp.eq.s32.totalorder %v878_v17, 4 }
  0x35   :  { %v323_v50 = vsel %vm87_vm0, %v321_v48, 0.0  ;;  %v223_v52 = vsel %vm87_vm0, %v221_v44, 0.0  ;;  %v224_v53 = vsel %vm87_vm0, %v222_v45, 0.0  ;;  %v324_v54 = vsel %vm87_vm0, %v322_v49, 0.0 }
  0x36   :  { %v154_v51 = vsel %vm152_vm8, %v151_v46, 0.0  ;;  %v261_v56 = vsel %vm259_vm3, %v869_v7, 0.0  ;;  %v262_v57 = vsel %vm260_vm4, %v871_v11, 0.0  ;;  %v325_v58 = vadd.f32 %v324_v54, %v323_v50 }
  0x37   :  { %v155_v55 = vadd.f32 %v154_v51, %v153_v47  ;;  %vm359_vm5 = vcmp.eq.s32.totalorder %v873_v14, 9  ;;  %vm360_vm6 = vcmp.eq.s32.totalorder %v878_v17, 9  ;;  %vm299_vm7 = vcmp.eq.s32.totalorder %v873_v14, 6 }
  0x38   :  { %286 = vadd.xlane.f32.xlu0 %v285_v43  ;;  %v225_v59 = vadd.f32 %v224_v53, %v223_v52  ;;  %v361_v60 = vsel %vm359_vm5, %v869_v7, 0.0  ;;  %v362_v61 = vsel %vm360_vm6, %v871_v11, 0.0  ;;  %vm300_vm8 = vcmp.eq.s32.totalorder %v878_v17, 6 }
  0x39   :  { %156 = vadd.xlane.f32.xlu1 %v155_v55  ;;  %v263_v62 = vsel %vm87_vm0, %v261_v56, 0.0  ;;  %v264_v63 = vsel %vm87_vm0, %v262_v57, 0.0  ;;  %v363_v1 = vsel %vm87_vm0, %v361_v60, 0.0  ;;  %v364_v2 = vsel %vm87_vm0, %v362_v61, 0.0 }
  0x3a   :  { %v301_v3 = vsel %vm299_vm7, %v869_v7, 0.0  ;;  %v302_v4 = vsel %vm300_vm8, %v871_v11, 0.0  ;;  %vm399_vm9 = vcmp.eq.s32.totalorder %v873_v14, 11  ;;  %vm400_vm10 = vcmp.eq.s32.totalorder %v878_v17, 11 }
  0x3b   :  { %v365_v5 = vadd.f32 %v364_v2, %v363_v1  ;;  %v401_v8 = vsel %vm399_vm9, %v869_v7, 0.0  ;;  %v402_v9 = vsel %vm400_vm10, %v871_v11, 0.0  ;;  %vm339_vm11 = vcmp.eq.s32.totalorder %v873_v14, 8 }
  0x3c   :  { %326 = vadd.xlane.f32.xlu0 %v325_v58  ;;  %v265_v10 = vadd.f32 %v264_v63, %v263_v62  ;;  %v403_v12 = vsel %vm87_vm0, %v401_v8, 0.0  ;;  %v404_v13 = vsel %vm87_vm0, %v402_v9, 0.0  ;;  %vm340_vm12 = vcmp.eq.s32.totalorder %v878_v17, 8 }
  0x3d   :  { %226 = vadd.xlane.f32.xlu1 %v225_v59  ;;  %v303_v15 = vsel %vm87_vm0, %v301_v3, 0.0  ;;  %v304_v16 = vsel %vm87_vm0, %v302_v4, 0.0  ;;  %vm439_vm13 = vcmp.eq.s32.totalorder %v873_v14, 13  ;;  %v341_v18 = vsel %vm339_vm11, %v869_v7, 0.0 }
  0x3e   :  { %v342_v19 = vsel %vm340_vm12, %v871_v11, 0.0  ;;  %vm440_vm14 = vcmp.eq.s32.totalorder %v878_v17, 13  ;;  %v441_v20 = vsel %vm439_vm13, %v869_v7, 0.0  ;;  %v405_v21 = vadd.f32 %v404_v13, %v403_v12 }
  0x3f   :  { %v442_v22 = vsel %vm440_vm14, %v871_v11, 0.0  ;;  %vm379_vm15 = vcmp.eq.s32.totalorder %v873_v14, 10  ;;  %vm380_vm1 = vcmp.eq.s32.totalorder %v878_v17, 10  ;;  %v305_v23 = vadd.f32 %v304_v16, %v303_v15 }
  0x40   :  { %366 = vadd.xlane.f32.xlu0 %v365_v5  ;;  %v443_v24 = vsel %vm87_vm0, %v441_v20, 0.0  ;;  %v444_v25 = vsel %vm87_vm0, %v442_v22, 0.0  ;;  %vm479_vm2 = vcmp.eq.s32.totalorder %v873_v14, 15  ;;  %v343_v26 = vsel %vm87_vm0, %v341_v18, 0.0 }
  0x41   :  { %266 = vadd.xlane.f32.xlu1 %v265_v10  ;;  %v344_v27 = vsel %vm87_vm0, %v342_v19, 0.0  ;;  %vm480_vm3 = vcmp.eq.s32.totalorder %v878_v17, 15  ;;  %v381_v28 = vsel %vm379_vm15, %v869_v7, 0.0  ;;  %v382_v29 = vsel %vm380_vm1, %v871_v11, 0.0 }
  0x42   :  { %v481_v30 = vsel %vm479_vm2, %v869_v7, 0.0  ;;  %v482_v31 = vsel %vm480_vm3, %v871_v11, 0.0  ;;  %v445_v32 = vadd.f32 %v444_v25, %v443_v24  ;;  %vm419_vm4 = vcmp.eq.s32.totalorder %v873_v14, 12 }
  0x43   :  { %vm420_vm5 = vcmp.eq.s32.totalorder %v878_v17, 12  ;;  %v345_v33 = vadd.f32 %v344_v27, %v343_v26  ;;  %v483_v34 = vsel %vm87_vm0, %v481_v30, 0.0  ;;  %v484_v35 = vsel %vm87_vm0, %v482_v31, 0.0 }
  0x44   :  { %406 = vadd.xlane.f32.xlu0 %v405_v21  ;;  %vm519_vm6 = vcmp.eq.s32.totalorder %v873_v14, 17  ;;  %v383_v36 = vsel %vm87_vm0, %v381_v28, 0.0  ;;  %v384_v37 = vsel %vm87_vm0, %v382_v29, 0.0  ;;  %vm520_vm7 = vcmp.eq.s32.totalorder %v878_v17, 17 }
  0x45   :  { %306 = vadd.xlane.f32.xlu1 %v305_v23  ;;  %v521_v38 = vsel %vm519_vm6, %v869_v7, 0.0  ;;  %v421_v39 = vsel %vm419_vm4, %v869_v7, 0.0  ;;  %v422_v40 = vsel %vm420_vm5, %v871_v11, 0.0  ;;  %v522_v41 = vsel %vm520_vm7, %v871_v11, 0.0 }
  0x46   :  { %v485_v42 = vadd.f32 %v484_v35, %v483_v34  ;;  %vm459_vm8 = vcmp.eq.s32.totalorder %v873_v14, 14  ;;  %vm460_vm9 = vcmp.eq.s32.totalorder %v878_v17, 14  ;;  %vm559_vm10 = vcmp.eq.s32.totalorder %v873_v14, 19 }
  0x47   :  { %v385_v43 = vadd.f32 %v384_v37, %v383_v36  ;;  %v523_v44 = vsel %vm87_vm0, %v521_v38, 0.0  ;;  %v524_v45 = vsel %vm87_vm0, %v522_v41, 0.0  ;;  %vm560_vm11 = vcmp.eq.s32.totalorder %v878_v17, 19 }
  0x48   :  { %446 = vadd.xlane.f32.xlu0 %v445_v32  ;;  %v423_v46 = vsel %vm87_vm0, %v421_v39, 0.0  ;;  %v424_v47 = vsel %vm87_vm0, %v422_v40, 0.0  ;;  %v561_v48 = vsel %vm559_vm10, %v869_v7, 0.0  ;;  %v562_v49 = vsel %vm560_vm11, %v871_v11, 0.0 }
  0x49   :  { %346 = vadd.xlane.f32.xlu1 %v345_v33  ;;  %v461_v50 = vsel %vm459_vm8, %v869_v7, 0.0  ;;  %v462_v51 = vsel %vm460_vm9, %v871_v11, 0.0  ;;  %v525_v52 = vadd.f32 %v524_v45, %v523_v44  ;;  %vm499_vm12 = vcmp.eq.s32.totalorder %v873_v14, 16 }
  0x4a   :  { %vm500_vm13 = vcmp.eq.s32.totalorder %v878_v17, 16  ;;  %vm599_vm14 = vcmp.eq.s32.totalorder %v873_v14, 21  ;;  %v425_v53 = vadd.f32 %v424_v47, %v423_v46  ;;  %v563_v54 = vsel %vm87_vm0, %v561_v48, 0.0 }
  0x4b   :  { %v564_v55 = vsel %vm87_vm0, %v562_v49, 0.0  ;;  %vm600_vm15 = vcmp.eq.s32.totalorder %v878_v17, 21  ;;  %v463_v56 = vsel %vm87_vm0, %v461_v50, 0.0  ;;  %v464_v57 = vsel %vm87_vm0, %v462_v51, 0.0 }
  0x4c   :  { %486 = vadd.xlane.f32.xlu0 %v485_v42  ;;  %v601_v58 = vsel %vm599_vm14, %v869_v7, 0.0  ;;  %v602_v59 = vsel %vm600_vm15, %v871_v11, 0.0  ;;  %v501_v60 = vsel %vm499_vm12, %v869_v7, 0.0  ;;  %v502_v61 = vsel %vm500_vm13, %v871_v11, 0.0 }
  0x4d   :  { %386 = vadd.xlane.f32.xlu1 %v385_v43  ;;  %vm639_vm1 = vcmp.eq.s32.totalorder %v873_v14, 23  ;;  %v565_v62 = vadd.f32 %v564_v55, %v563_v54  ;;  %vm539_vm2 = vcmp.eq.s32.totalorder %v873_v14, 18  ;;  %vm540_vm3 = vcmp.eq.s32.totalorder %v878_v17, 18 }
  0x4e   :  { %vm640_vm4 = vcmp.eq.s32.totalorder %v878_v17, 23  ;;  %v465_v63 = vadd.f32 %v464_v57, %v463_v56  ;;  %v603_v1 = vsel %vm87_vm0, %v601_v58, 0.0  ;;  %v604_v2 = vsel %vm87_vm0, %v602_v59, 0.0 }
  0x4f   :  { %v503_v3 = vsel %vm87_vm0, %v501_v60, 0.0  ;;  %v504_v4 = vsel %vm87_vm0, %v502_v61, 0.0  ;;  %v641_v5 = vsel %vm639_vm1, %v869_v7, 0.0  ;;  %v642_v8 = vsel %vm640_vm4, %v871_v11, 0.0 }
  0x50   :  { %526 = vadd.xlane.f32.xlu0 %v525_v52  ;;  %v541_v9 = vsel %vm539_vm2, %v869_v7, 0.0  ;;  %v542_v10 = vsel %vm540_vm3, %v871_v11, 0.0  ;;  %vm679_vm5 = vcmp.eq.s32.totalorder %v873_v14, 25  ;;  %v605_v12 = vadd.f32 %v604_v2, %v603_v1 }
  0x51   :  { %426 = vadd.xlane.f32.xlu1 %v425_v53  ;;  %vm579_vm6 = vcmp.eq.s32.totalorder %v873_v14, 20  ;;  %vm580_vm7 = vcmp.eq.s32.totalorder %v878_v17, 20  ;;  %vm680_vm8 = vcmp.eq.s32.totalorder %v878_v17, 25  ;;  %v505_v13 = vadd.f32 %v504_v4, %v503_v3 }
  0x52   :  { %v643_v15 = vsel %vm87_vm0, %v641_v5, 0.0  ;;  %v644_v16 = vsel %vm87_vm0, %v642_v8, 0.0  ;;  %v543_v18 = vsel %vm87_vm0, %v541_v9, 0.0  ;;  %v544_v19 = vsel %vm87_vm0, %v542_v10, 0.0 }
  0x53   :  { %v681_v20 = vsel %vm679_vm5, %v869_v7, 0.0  ;;  %v682_v21 = vsel %vm680_vm8, %v871_v11, 0.0  ;;  %v581_v22 = vsel %vm579_vm6, %v869_v7, 0.0  ;;  %v582_v23 = vsel %vm580_vm7, %v871_v11, 0.0 }
  0x54   :  { %566 = vadd.xlane.f32.xlu0 %v565_v62  ;;  %vm719_vm9 = vcmp.eq.s32.totalorder %v873_v14, 27  ;;  %vm720_vm10 = vcmp.eq.s32.totalorder %v878_v17, 27  ;;  %v645_v24 = vadd.f32 %v644_v16, %v643_v15  ;;  %vm619_vm11 = vcmp.eq.s32.totalorder %v873_v14, 22 }
  0x55   :  { %466 = vadd.xlane.f32.xlu1 %v465_v63  ;;  %vm620_vm12 = vcmp.eq.s32.totalorder %v878_v17, 22  ;;  %v545_v25 = vadd.f32 %v544_v19, %v543_v18  ;;  %v683_v26 = vsel %vm87_vm0, %v681_v20, 0.0  ;;  %v684_v27 = vsel %vm87_vm0, %v682_v21, 0.0 }
  0x56   :  { %v583_v28 = vsel %vm87_vm0, %v581_v22, 0.0  ;;  %v584_v29 = vsel %vm87_vm0, %v582_v23, 0.0  ;;  %v721_v30 = vsel %vm719_vm9, %v869_v7, 0.0  ;;  %v722_v31 = vsel %vm720_vm10, %v871_v11, 0.0 }
  0x57   :  { %v621_v32 = vsel %vm619_vm11, %v869_v7, 0.0  ;;  %v622_v33 = vsel %vm620_vm12, %v871_v11, 0.0  ;;  %v685_v34 = vadd.f32 %v684_v27, %v683_v26  ;;  %vm659_vm13 = vcmp.eq.s32.totalorder %v873_v14, 24 }
  0x58   :  { %606 = vadd.xlane.f32.xlu0 %v605_v12  ;;  %vm660_vm14 = vcmp.eq.s32.totalorder %v878_v17, 24  ;;  %v585_v35 = vadd.f32 %v584_v29, %v583_v28  ;;  %v723_v36 = vsel %vm87_vm0, %v721_v30, 0.0  ;;  %v724_v37 = vsel %vm87_vm0, %v722_v31, 0.0 }
  0x59   :  { %506 = vadd.xlane.f32.xlu1 %v505_v13  ;;  %v623_v38 = vsel %vm87_vm0, %v621_v32, 0.0  ;;  %v624_v39 = vsel %vm87_vm0, %v622_v33, 0.0  ;;  %v661_v40 = vsel %vm659_vm13, %v869_v7, 0.0  ;;  %v662_v41 = vsel %vm660_vm14, %v871_v11, 0.0 }
  0x5a   :  { %v725_v42 = vadd.f32 %v724_v37, %v723_v36  ;;  %vm699_vm15 = vcmp.eq.s32.totalorder %v873_v14, 26  ;;  %vm700_vm1 = vcmp.eq.s32.totalorder %v878_v17, 26  ;;  %v625_v43 = vadd.f32 %v624_v39, %v623_v38 }
  0x5b   :  { %v663_v44 = vsel %vm87_vm0, %v661_v40, 0.0  ;;  %v664_v45 = vsel %vm87_vm0, %v662_v41, 0.0  ;;  %v701_v46 = vsel %vm699_vm15, %v869_v7, 0.0  ;;  %v702_v47 = vsel %vm700_vm1, %v871_v11, 0.0 }
  0x5c   :  { %646 = vadd.xlane.f32.xlu0 %v645_v24  ;;  %v665_v48 = vadd.f32 %v664_v45, %v663_v44  ;;  %v703_v49 = vsel %vm87_vm0, %v701_v46, 0.0  ;;  %v704_v50 = vsel %vm87_vm0, %v702_v47, 0.0 }
  0x5d   :  { %546 = vadd.xlane.f32.xlu1 %v545_v25  ;;  %v705_v14 = vadd.f32 %v704_v50, %v703_v49 }
  0x60   :  { %686 = vadd.xlane.f32.xlu0 %v685_v34 }
  0x61   :  { %586 = vadd.xlane.f32.xlu1 %v585_v35 }
  0x64   :  { %726 = vadd.xlane.f32.xlu0 %v725_v42 }
  0x65   :  { %626 = vadd.xlane.f32.xlu1 %v625_v43 }
  0x69   :  { %666 = vadd.xlane.f32.xlu1 %v665_v48 }
  0x6d   :  { %706 = vadd.xlane.f32.xlu1 %v705_v14 }
  0x9b   :  { %v132_v17 = vpop.xlane.xlu0 %131 }
  0x9c   :  { %v133_v51 = vrot.slane %v132_v17, 4 }
  0x9e   :  { %v134_v52 = vadd.f32 %v133_v51, %v132_v17 }
  0x9f   :  { %v142_v53 = vpop.xlane.xlu0 %141 }
  0xa0   :  { %v135_v54 = vrot.slane %v134_v52, 2  ;;  %v143_v55 = vrot.slane %v142_v53, 4 }
  0xa2   :  { %v144_v56 = vadd.f32 %v143_v55, %v142_v53  ;;  %v136_v7 = vadd.f32 %v135_v54, %v134_v52 }
  0xa4   :  { %v145_v57 = vrot.slane %v144_v56, 2  ;;  %v137_v11 = vrot.slane %v136_v7, 1 }
  0xa6   :  { %v138_v58 = vadd.f32 %v137_v11, %v136_v7  ;;  %v146_v59 = vadd.f32 %v145_v57, %v144_v56 }
  0xa8   :  { %762 = vpush %v138_v58  ;;  %v147_v60 = vrot.slane %v146_v59, 1 }
  0xaa   :  { %v148_v61 = vadd.f32 %v147_v60, %v146_v59 }
  0xac   :  { %764 = vpush %v148_v61 }
  0xbd   :  { %v187_v62 = vpop.xlane.xlu1 %186  ;;  %v207_v63 = vpop.xlane.xlu0 %206 }
  0xbe   :  { %v188_v1 = vrot.slane %v187_v62, 4  ;;  %v208_v2 = vrot.slane %v207_v63, 4 }
  0xc0   :  { %v189_v4 = vadd.f32 %v188_v1, %v187_v62  ;;  %v209_v8 = vadd.f32 %v208_v2, %v207_v63 }
  0xc1   :  { %v247_v3 = vpop.xlane.xlu0 %246 }
  0xc2   :  { %v248_v5 = vrot.slane %v247_v3, 4  ;;  %v190_v10 = vrot.slane %v189_v4, 2  ;;  %v210_v16 = vrot.slane %v209_v8, 2 }
  0xc4   :  { %v249_v12 = vadd.f32 %v248_v5, %v247_v3  ;;  %v191_v25 = vadd.f32 %v190_v10, %v189_v4  ;;  %v211_v28 = vadd.f32 %v210_v16, %v209_v8 }
  0xc5   :  { %v287_v9 = vpop.xlane.xlu0 %286 }
  0xc6   :  { %v157_v13 = vpop.xlane.xlu1 %156  ;;  %v288_v15 = vrot.slane %v287_v9, 4  ;;  %v250_v21 = vrot.slane %v249_v12, 2  ;;  %v192_v36 = vrot.slane %v191_v25, 1  ;;  %v212_v41 = vrot.slane %v211_v28, 1 }
  0xc7   :  { %v158_v18 = vrot.slane %v157_v13, 4 }
  0xc8   :  { %v289_v22 = vadd.f32 %v288_v15, %v287_v9  ;;  %v251_v37 = vadd.f32 %v250_v21, %v249_v12  ;;  %v193_v49 = vadd.f32 %v192_v36, %v191_v25  ;;  %v213_v53 = vadd.f32 %v212_v41, %v211_v28 }
  0xc9   :  { %v159_v19 = vadd.f32 %v158_v18, %v157_v13  ;;  %v327_v20 = vpop.xlane.xlu0 %326 }
  0xca   :  { %v227_v23 = vpop.xlane.xlu1 %226  ;;  %v328_v24 = vrot.slane %v327_v20, 4  ;;  %v290_v33 = vrot.slane %v289_v22, 2  ;;  %v252_v14 = vrot.slane %v251_v37, 1 }
  0xcb   :  { %v160_v26 = vrot.slane %v159_v19, 2  ;;  %v228_v27 = vrot.slane %v227_v23, 4 }
  0xcc   :  { %v329_v29 = vadd.f32 %v328_v24, %v327_v20  ;;  %v291_v17 = vadd.f32 %v290_v33, %v289_v22  ;;  %v253_v61 = vadd.f32 %v252_v14, %v251_v37 }
  0xcd   :  { %v229_v30 = vadd.f32 %v228_v27, %v227_v23  ;;  %v367_v31 = vpop.xlane.xlu0 %366  ;;  %v161_v32 = vadd.f32 %v160_v26, %v159_v19 }
  0xce   :  { %v267_v34 = vpop.xlane.xlu1 %266  ;;  %v368_v35 = vrot.slane %v367_v31, 4  ;;  %v330_v42 = vrot.slane %v329_v29, 2  ;;  %v292_v63 = vrot.slane %v291_v17, 1 }
  0xcf   :  { %v230_v38 = vrot.slane %v229_v30, 2  ;;  %v268_v39 = vrot.slane %v267_v34, 4  ;;  %v162_v40 = vrot.slane %v161_v32, 1 }
  0xd0   :  { %v369_v44 = vadd.f32 %v368_v35, %v367_v31  ;;  %v331_v55 = vadd.f32 %v330_v42, %v329_v29  ;;  %v293_v18 = vadd.f32 %v292_v63, %v291_v17 }
  0xd1   :  { %v269_v43 = vadd.f32 %v268_v39, %v267_v34  ;;  %v163_v45 = vadd.f32 %v162_v40, %v161_v32  ;;  %v407_v46 = vpop.xlane.xlu0 %406  ;;  %v231_v47 = vadd.f32 %v230_v38, %v229_v30 }
  0xd2   :  { %v307_v48 = vpop.xlane.xlu1 %306  ;;  %v408_v50 = vrot.slane %v407_v46, 4  ;;  %v370_v56 = vrot.slane %v369_v44, 2  ;;  %v332_v4 = vrot.slane %v331_v55, 1 }
  0xd3   :  { %v270_v51 = vrot.slane %v269_v43, 2  ;;  %v308_v52 = vrot.slane %v307_v48, 4  ;;  %766 = vpush %v163_v45  ;;  %v232_v54 = vrot.slane %v231_v47, 1 }
  0xd4   :  { %768 = vpush %v193_v49  ;;  %v409_v59 = vadd.f32 %v408_v50, %v407_v46  ;;  %v371_v12 = vadd.f32 %v370_v56, %v369_v44  ;;  %v333_v23 = vadd.f32 %v332_v4, %v331_v55 }
  0xd5   :  { %v309_v7 = vadd.f32 %v308_v52, %v307_v48  ;;  %770 = vpush %v213_v53  ;;  %v233_v57 = vadd.f32 %v232_v54, %v231_v47  ;;  %v447_v11 = vpop.xlane.xlu0 %446  ;;  %v271_v58 = vadd.f32 %v270_v51, %v269_v43 }
  0xd6   :  { %v347_v60 = vpop.xlane.xlu1 %346  ;;  %v448_v62 = vrot.slane %v447_v11, 4  ;;  %v410_v13 = vrot.slane %v409_v59, 2  ;;  %v372_v28 = vrot.slane %v371_v12, 1 }
  0xd7   :  { %v310_v1 = vrot.slane %v309_v7, 2  ;;  %v348_v2 = vrot.slane %v347_v60, 4  ;;  %772 = vpush %v233_v57  ;;  %v272_v3 = vrot.slane %v271_v58, 1 }
  0xd8   :  { %774 = vpush %v253_v61  ;;  %v449_v15 = vadd.f32 %v448_v62, %v447_v11  ;;  %v411_v33 = vadd.f32 %v410_v13, %v409_v59  ;;  %v373_v40 = vadd.f32 %v372_v28, %v371_v12 }
  0xd9   :  { %v349_v5 = vadd.f32 %v348_v2, %v347_v60  ;;  %v273_v8 = vadd.f32 %v272_v3, %v271_v58  ;;  %v487_v9 = vpop.xlane.xlu0 %486  ;;  %v311_v10 = vadd.f32 %v310_v1, %v309_v7  ;;  %s1050_s0 = spop %762 }
  0xda   :  { %v387_v16 = vpop.xlane.xlu1 %386  ;;  %v488_v19 = vrot.slane %v487_v9, 4  ;;  %v450_v29 = vrot.slane %v449_v15, 2  ;;  %v412_v46 = vrot.slane %v411_v33, 1 }
  0xdb   :  { %v350_v20 = vrot.slane %v349_v5, 2  ;;  %v388_v21 = vrot.slane %v387_v16, 4  ;;  %776 = vpush %v273_v8  ;;  %v312_v22 = vrot.slane %v311_v10, 1 }
  0xdc   :  { %778 = vpush %v293_v18  ;;  %v489_v30 = vadd.f32 %v488_v19, %v487_v9  ;;  %v451_v47 = vadd.f32 %v450_v29, %v449_v15  ;;  %v413_v56 = vadd.f32 %v412_v46, %v411_v33 }
  0xdd   :  { %v389_v24 = vadd.f32 %v388_v21, %v387_v16  ;;  %v313_v25 = vadd.f32 %v312_v22, %v311_v10  ;;  %v527_v26 = vpop.xlane.xlu0 %526  ;;  %v351_v27 = vadd.f32 %v350_v20, %v349_v5  ;;  %s1052_s1 = spop %764 }
  0xde   :  { %v427_v31 = vpop.xlane.xlu1 %426  ;;  %v528_v32 = vrot.slane %v527_v26, 4  ;;  %v490_v43 = vrot.slane %v489_v30, 2  ;;  %v452_v57 = vrot.slane %v451_v47, 1 }
  0xdf   :  { %v390_v34 = vrot.slane %v389_v24, 2  ;;  %v428_v35 = vrot.slane %v427_v31, 4  ;;  %780 = vpush %v313_v25  ;;  %v352_v36 = vrot.slane %v351_v27, 1 }
  0xe0   :  { %782 = vpush %v333_v23  ;;  %v529_v37 = vadd.f32 %v528_v32, %v527_v26  ;;  %v491_v11 = vadd.f32 %v490_v43, %v489_v30  ;;  %v453_v8 = vadd.f32 %v452_v57, %v451_v47 }
  0xe1   :  { %v429_v38 = vadd.f32 %v428_v35, %v427_v31  ;;  %v353_v39 = vadd.f32 %v352_v36, %v351_v27  ;;  %v567_v41 = vpop.xlane.xlu0 %566  ;;  %v391_v42 = vadd.f32 %v390_v34, %v389_v24 }
  0xe2   :  { %v467_v44 = vpop.xlane.xlu1 %466  ;;  %v568_v45 = vrot.slane %v567_v41, 4  ;;  %v530_v14 = vrot.slane %v529_v37, 2  ;;  %v492_v10 = vrot.slane %v491_v11, 1 }
  0xe3   :  { %v430_v48 = vrot.slane %v429_v38, 2  ;;  %v468_v49 = vrot.slane %v467_v44, 4  ;;  %784 = vpush %v353_v39  ;;  %v392_v50 = vrot.slane %v391_v42, 1 }
  0xe4   :  { %786 = vpush %v373_v40  ;;  %v569_v51 = vadd.f32 %v568_v45, %v567_v41  ;;  %v531_v61 = vadd.f32 %v530_v14, %v529_v37  ;;  %v493_v26 = vadd.f32 %v492_v10, %v491_v11 }
  0xe5   :  { %v469_v17 = vadd.f32 %v468_v49, %v467_v44  ;;  %v393_v52 = vadd.f32 %v392_v50, %v391_v42  ;;  %v607_v53 = vpop.xlane.xlu0 %606  ;;  %v431_v54 = vadd.f32 %v430_v48, %v429_v38 }
  0xe6   :  { %v507_v55 = vpop.xlane.xlu1 %506  ;;  %v608_v7 = vrot.slane %v607_v53, 4  ;;  %v570_v62 = vrot.slane %v569_v51, 2  ;;  %v532_v16 = vrot.slane %v531_v61, 1 }
  0xe7   :  { %v470_v58 = vrot.slane %v469_v17, 2  ;;  %v508_v59 = vrot.slane %v507_v55, 4  ;;  %788 = vpush %v393_v52  ;;  %v432_v60 = vrot.slane %v431_v54, 1 }
  0xe8   :  { %790 = vpush %v413_v56  ;;  %v609_v4 = vadd.f32 %v608_v7, %v607_v53  ;;  %v571_v22 = vadd.f32 %v570_v62, %v569_v51  ;;  %v533_v31 = vadd.f32 %v532_v16, %v531_v61 }
  0xe9   :  { %v509_v63 = vadd.f32 %v508_v59, %v507_v55  ;;  %v433_v1 = vadd.f32 %v432_v60, %v431_v54  ;;  %v647_v2 = vpop.xlane.xlu0 %646  ;;  %v471_v3 = vadd.f32 %v470_v58, %v469_v17 }
  0xea   :  { %v547_v5 = vpop.xlane.xlu1 %546  ;;  %v648_v9 = vrot.slane %v647_v2, 4  ;;  %v610_v23 = vrot.slane %v609_v4, 2  ;;  %v572_v36 = vrot.slane %v571_v22, 1 }
  0xeb   :  { %v510_v12 = vrot.slane %v509_v63, 2  ;;  %v548_v13 = vrot.slane %v547_v5, 4  ;;  %792 = vpush %v433_v1  ;;  %v472_v15 = vrot.slane %v471_v3, 1 }
  0xec   :  { %794 = vpush %v453_v8  ;;  %v649_v24 = vadd.f32 %v648_v9, %v647_v2  ;;  %v611_v41 = vadd.f32 %v610_v23, %v609_v4  ;;  %v573_v47 = vadd.f32 %v572_v36, %v571_v22 }
  0xed   :  { %v549_v18 = vadd.f32 %v548_v13, %v547_v5  ;;  %v473_v19 = vadd.f32 %v472_v15, %v471_v3  ;;  %v687_v20 = vpop.xlane.xlu0 %686  ;;  %v511_v21 = vadd.f32 %v510_v12, %v509_v63  ;;  %v1048_v15 = vand.u32 127, %v20_v0 }
  0xee   :  { %v587_v25 = vpop.xlane.xlu1 %586  ;;  %v688_v27 = vrot.slane %v687_v20, 4  ;;  %v650_v37 = vrot.slane %v649_v24, 2  ;;  %v612_v17 = vrot.slane %v611_v41, 1 }
  0xef   :  { %v550_v28 = vrot.slane %v549_v18, 2  ;;  %v588_v29 = vrot.slane %v587_v25, 4  ;;  %796 = vpush %v473_v19  ;;  %v512_v30 = vrot.slane %v511_v21, 1  ;;  %vm195_vm0 = vcmp.eq.s32.totalorder %v1048_v15, 0 }
  0xf0   :  { %798 = vpush %v493_v26  ;;  %v689_v38 = vadd.f32 %v688_v27, %v687_v20  ;;  %v651_v51 = vadd.f32 %v650_v37, %v649_v24  ;;  %v613_v58 = vadd.f32 %v612_v17, %v611_v41  ;;  %vm215_vm2 = vcmp.eq.s32.totalorder %v1048_v15, 1 }
  0xf1   :  { %v589_v32 = vadd.f32 %v588_v29, %v587_v25  ;;  %v513_v33 = vadd.f32 %v512_v30, %v511_v21  ;;  %v727_v34 = vpop.xlane.xlu0 %726  ;;  %v551_v35 = vadd.f32 %v550_v28, %v549_v18  ;;  %vm235_vm3 = vcmp.eq.s32.totalorder %v1048_v15, 2 }
  0xf2   :  { %v627_v39 = vpop.xlane.xlu1 %626  ;;  %v728_v40 = vrot.slane %v727_v34, 4  ;;  %v690_v49 = vrot.slane %v689_v38, 2  ;;  %v652_v59 = vrot.slane %v651_v51, 1  ;;  %vm255_vm4 = vcmp.eq.s32.totalorder %v1048_v15, 3 }
  0xf3   :  { %v590_v42 = vrot.slane %v589_v32, 2  ;;  %v628_v43 = vrot.slane %v627_v39, 4  ;;  %800 = vpush %v513_v33  ;;  %v552_v44 = vrot.slane %v551_v35, 1  ;;  %vm275_vm5 = vcmp.eq.s32.totalorder %v1048_v15, 4 }
  0xf4   :  { %802 = vpush %v533_v31  ;;  %v729_v50 = vadd.f32 %v728_v40, %v727_v34  ;;  %v691_v60 = vadd.f32 %v690_v49, %v689_v38  ;;  %v653_v5 = vadd.f32 %v652_v59, %v651_v51  ;;  %vm295_vm6 = vcmp.eq.s32.totalorder %v1048_v15, 5 }
  0xf5   :  { %v629_v45 = vadd.f32 %v628_v43, %v627_v39  ;;  %v553_v46 = vadd.f32 %v552_v44, %v551_v35  ;;  %v591_v48 = vadd.f32 %v590_v42, %v589_v32  ;;  %vm315_vm7 = vcmp.eq.s32.totalorder %v1048_v15, 6 }
  0xf6   :  { %v667_v14 = vpop.xlane.xlu1 %666  ;;  %v730_v57 = vrot.slane %v729_v50, 2  ;;  %v692_v8 = vrot.slane %v691_v60, 1  ;;  %vm335_vm8 = vcmp.eq.s32.totalorder %v1048_v15, 7  ;;  %vm355_vm9 = vcmp.eq.s32.totalorder %v1048_v15, 8 }
  0xf7   :  { %v630_v52 = vrot.slane %v629_v45, 2  ;;  %v668_v53 = vrot.slane %v667_v14, 4  ;;  %804 = vpush %v553_v46  ;;  %v592_v54 = vrot.slane %v591_v48, 1  ;;  %vm375_vm10 = vcmp.eq.s32.totalorder %v1048_v15, 9 }
  0xf8   :  { %806 = vpush %v573_v47  ;;  %v731_v4 = vadd.f32 %v730_v57, %v729_v50  ;;  %v693_v16 = vadd.f32 %v692_v8, %v691_v60  ;;  %vm395_vm11 = vcmp.eq.s32.totalorder %v1048_v15, 10  ;;  %vm415_vm12 = vcmp.eq.s32.totalorder %v1048_v15, 11 }
  0xf9   :  { %v669_v55 = vadd.f32 %v668_v53, %v667_v14  ;;  %v593_v56 = vadd.f32 %v592_v54, %v591_v48  ;;  %v631_v7 = vadd.f32 %v630_v52, %v629_v45  ;;  %vm435_vm13 = vcmp.eq.s32.totalorder %v1048_v15, 12 }
  0xfa   :  { %v707_v11 = vpop.xlane.xlu1 %706  ;;  %v732_v18 = vrot.slane %v731_v4, 1  ;;  %vm455_vm14 = vcmp.eq.s32.totalorder %v1048_v15, 13  ;;  %vm475_vm15 = vcmp.eq.s32.totalorder %v1048_v15, 14  ;;  %vm495_vm1 = vcmp.eq.s32.totalorder %v1048_v15, 15 }
  0xfb   :  { %v670_v61 = vrot.slane %v669_v55, 2  ;;  %v708_v62 = vrot.slane %v707_v11, 4  ;;  %808 = vpush %v593_v56  ;;  %v632_v63 = vrot.slane %v631_v7, 1 }
  0xfc   :  { %810 = vpush %v613_v58  ;;  %v733_v0 = vadd.f32 %v732_v18, %v731_v4 }
  0xfd   :  { %v709_v1 = vadd.f32 %v708_v62, %v707_v11  ;;  %v633_v2 = vadd.f32 %v632_v63, %v631_v7  ;;  %v671_v3 = vadd.f32 %v670_v61, %v669_v55 }
  0xff   :  { %v710_v9 = vrot.slane %v709_v1, 2  ;;  %812 = vpush %v633_v2  ;;  %v672_v10 = vrot.slane %v671_v3, 1 }
 0x100   :  { %814 = vpush %v653_v5 }
 0x101   :  { %v711_v12 = vadd.f32 %v710_v9, %v709_v1  ;;  %v673_v13 = vadd.f32 %v672_v10, %v671_v3 }
 0x103   :  { %816 = vpush %v673_v13  ;;  %v712_v19 = vrot.slane %v711_v12, 1 }
 0x104   :  { %818 = vpush %v693_v16  ;;  %s1054_s2 = spop %766 }
 0x105   :  { %s769_s18 = spop %768  ;;  %v713_v20 = vadd.f32 %v712_v19, %v711_v12 }
 0x106   :  { %v196_v21 = vstv %s769_s18  ;;  %s771_s19 = spop %770 }
 0x107   :  { %v197_v22 = vsel %vm195_vm0, %v196_v21, 0.0  ;;  %v216_v23 = vstv %s771_s19  ;;  %820 = vpush %v713_v20  ;;  %vm515_vm0 = vcmp.eq.s32.totalorder %v1048_v15, 16 }
 0x108   :  { %v217_v24 = vsel %vm215_vm2, %v216_v23, 0.0  ;;  %822 = vpush %v733_v0  ;;  %s773_s20 = spop %772  ;;  %vm535_vm2 = vcmp.eq.s32.totalorder %v1048_v15, 17 }
 0x109   :  { %v218_v25 = vadd.f32 %v217_v24, %v197_v22  ;;  %v236_v26 = vstv %s773_s20  ;;  %s775_s21 = spop %774 }
 0x10a   :  { %v237_v27 = vsel %vm235_vm3, %v236_v26, 0.0  ;;  %v256_v28 = vstv %s775_s21  ;;  %vm555_vm3 = vcmp.eq.s32.totalorder %v1048_v15, 18 }
 0x10b   :  { %v238_v29 = vadd.f32 %v237_v27, %v218_v25  ;;  %v257_v30 = vsel %vm255_vm4, %v256_v28, 0.0  ;;  %vm575_vm4 = vcmp.eq.s32.totalorder %v1048_v15, 19 }
 0x10c   :  { %s777_s22 = spop %776 }
 0x10d   :  { %v258_v31 = vadd.f32 %v257_v30, %v238_v29  ;;  %v276_v32 = vstv %s777_s22  ;;  %s779_s23 = spop %778 }
 0x10e   :  { %v277_v33 = vsel %vm275_vm5, %v276_v32, 0.0  ;;  %v296_v34 = vstv %s779_s23  ;;  %vm595_vm5 = vcmp.eq.s32.totalorder %v1048_v15, 20 }
 0x10f   :  { %v278_v35 = vadd.f32 %v277_v33, %v258_v31  ;;  %v297_v36 = vsel %vm295_vm6, %v296_v34, 0.0  ;;  %vm615_vm6 = vcmp.eq.s32.totalorder %v1048_v15, 21 }
 0x110   :  { %s781_s24 = spop %780 }
 0x111   :  { %v298_v37 = vadd.f32 %v297_v36, %v278_v35  ;;  %v316_v38 = vstv %s781_s24  ;;  %s783_s25 = spop %782 }
 0x112   :  { %v317_v39 = vsel %vm315_vm7, %v316_v38, 0.0  ;;  %v336_v40 = vstv %s783_s25  ;;  %vm635_vm7 = vcmp.eq.s32.totalorder %v1048_v15, 22 }
 0x113   :  { %v318_v41 = vadd.f32 %v317_v39, %v298_v37  ;;  %v337_v42 = vsel %vm335_vm8, %v336_v40, 0.0  ;;  %vm655_vm8 = vcmp.eq.s32.totalorder %v1048_v15, 23  ;;  %v740_v39 = vstv %s1050_s0 }
 0x114   :  { %s785_s26 = spop %784 }
 0x115   :  { %v338_v43 = vadd.f32 %v337_v42, %v318_v41  ;;  %v356_v44 = vstv %s785_s26  ;;  %s787_s27 = spop %786  ;;  %v744_v42 = vstv %s1052_s1 }
 0x116   :  { %v357_v45 = vsel %vm355_vm9, %v356_v44, 0.0  ;;  %v376_v46 = vstv %s787_s27  ;;  %vm675_vm9 = vcmp.eq.s32.totalorder %v1048_v15, 24 }
 0x117   :  { %v358_v47 = vadd.f32 %v357_v45, %v338_v43  ;;  %v377_v48 = vsel %vm375_vm10, %v376_v46, 0.0  ;;  %vm695_vm10 = vcmp.eq.s32.totalorder %v1048_v15, 25  ;;  %v748_v45 = vstv %s1054_s2 }
 0x118   :  { %s789_s28 = spop %788 }
 0x119   :  { %v378_v49 = vadd.f32 %v377_v48, %v358_v47  ;;  %v396_v50 = vstv %s789_s28  ;;  %s791_s29 = spop %790 }
 0x11a   :  { %v397_v14 = vsel %vm395_vm11, %v396_v50, 0.0  ;;  %v416_v17 = vstv %s791_s29  ;;  %vm715_vm11 = vcmp.eq.s32.totalorder %v1048_v15, 26 }
 0x11b   :  { %v398_v51 = vadd.f32 %v397_v14, %v378_v49  ;;  %v417_v52 = vsel %vm415_vm12, %v416_v17, 0.0  ;;  %vm735_vm12 = vcmp.eq.s32.totalorder %v1048_v15, 27 }
 0x11c   :  { %s793_s30 = spop %792 }
 0x11d   :  { %v418_v53 = vadd.f32 %v417_v52, %v398_v51  ;;  %v436_v54 = vstv %s793_s30  ;;  %s795_s4 = spop %794 }
 0x11e   :  { %v437_v55 = vsel %vm435_vm13, %v436_v54, 0.0  ;;  %v456_v56 = vstv %s795_s4  ;;  %vm739_vm13 = vcmp.eq.s32.totalorder %v1048_v15, 120 }
 0x11f   :  { %v438_v7 = vadd.f32 %v437_v55, %v418_v53  ;;  %v457_v57 = vsel %vm455_vm14, %v456_v56, 0.0  ;;  %vm743_vm14 = vcmp.eq.s32.totalorder %v1048_v15, 121  ;;  %v741_v44 = vsel %vm739_vm13, %v740_v39, 0.0 }
 0x120   :  { %s797_s5 = spop %796  ;;  %v745_v47 = vsel %vm743_vm14, %v744_v42, 0.0 }
 0x121   :  { %v458_v11 = vadd.f32 %v457_v57, %v438_v7  ;;  %v476_v58 = vstv %s797_s5  ;;  %s799_s6 = spop %798 }
 0x122   :  { %v477_v59 = vsel %vm475_vm15, %v476_v58, 0.0  ;;  %v496_v60 = vstv %s799_s6  ;;  %vm747_vm15 = vcmp.eq.s32.totalorder %v1048_v15, 122 }
 0x123   :  { %v478_v61 = vadd.f32 %v477_v59, %v458_v11  ;;  %v497_v62 = vsel %vm495_vm1, %v496_v60, 0.0  ;;  %v749_v49 = vsel %vm747_vm15, %v748_v45, 0.0  ;;  %vm753_vm1 = vcmp.eq.s32.totalorder %v860_v6, 0 }
 0x124   :  { %s801_s7 = spop %800 }
 0x125   :  { %v498_v63 = vadd.f32 %v497_v62, %v478_v61  ;;  %v516_v1 = vstv %s801_s7  ;;  %s803_s8 = spop %802 }
 0x126   :  { %v517_v2 = vsel %vm515_vm0, %v516_v1, 0.0  ;;  %v536_v3 = vstv %s803_s8 }
 0x127   :  { %v518_v4 = vadd.f32 %v517_v2, %v498_v63  ;;  %v537_v5 = vsel %vm535_vm2, %v536_v3, 0.0 }
 0x128   :  { %s805_s9 = spop %804 }
 0x129   :  { %v538_v8 = vadd.f32 %v537_v5, %v518_v4  ;;  %v556_v9 = vstv %s805_s9  ;;  %s807_s10 = spop %806 }
 0x12a   :  { %v557_v10 = vsel %vm555_vm3, %v556_v9, 0.0  ;;  %v576_v12 = vstv %s807_s10 }
 0x12b   :  { %v558_v13 = vadd.f32 %v557_v10, %v538_v8  ;;  %v577_v16 = vsel %vm575_vm4, %v576_v12, 0.0 }
 0x12c   :  { %s809_s11 = spop %808 }
 0x12d   :  { %v578_v18 = vadd.f32 %v577_v16, %v558_v13  ;;  %v596_v19 = vstv %s809_s11  ;;  %s811_s12 = spop %810 }
 0x12e   :  { %v597_v20 = vsel %vm595_vm5, %v596_v19, 0.0  ;;  %v616_v21 = vstv %s811_s12 }
 0x12f   :  { %v598_v0 = vadd.f32 %v597_v20, %v578_v18  ;;  %v617_v22 = vsel %vm615_vm6, %v616_v21, 0.0 }
 0x130   :  { %s813_s13 = spop %812 }
 0x131   :  { %v618_v23 = vadd.f32 %v617_v22, %v598_v0  ;;  %v636_v24 = vstv %s813_s13  ;;  %s815_s14 = spop %814 }
 0x132   :  { %v637_v25 = vsel %vm635_vm7, %v636_v24, 0.0  ;;  %v656_v26 = vstv %s815_s14 }
 0x133   :  { %v638_v27 = vadd.f32 %v637_v25, %v618_v23  ;;  %v657_v28 = vsel %vm655_vm8, %v656_v26, 0.0 }
 0x134   :  { %s817_s15 = spop %816 }
 0x135   :  { %v658_v29 = vadd.f32 %v657_v28, %v638_v27  ;;  %v676_v30 = vstv %s817_s15  ;;  %s819_s16 = spop %818 }
 0x136   :  { %v677_v31 = vsel %vm675_vm9, %v676_v30, 0.0  ;;  %v696_v32 = vstv %s819_s16 }
 0x137   :  { %v678_v33 = vadd.f32 %v677_v31, %v658_v29  ;;  %v697_v34 = vsel %vm695_vm10, %v696_v32, 0.0 }
 0x138   :  { %s821_s17 = spop %820 }
 0x139   :  { %v698_v35 = vadd.f32 %v697_v34, %v678_v33  ;;  %v716_v36 = vstv %s821_s17  ;;  %s823_s18 = spop %822 }
 0x13a   :  { %v717_v37 = vsel %vm715_vm11, %v716_v36, 0.0  ;;  %v736_v38 = vstv %s823_s18 }
 0x13b   :  { %v718_v40 = vadd.f32 %v717_v37, %v698_v35  ;;  %v737_v41 = vsel %vm735_vm12, %v736_v38, 0.0 }
 0x13d   :  { %v738_v43 = vadd.f32 %v737_v41, %v718_v40 }
 0x13f   :  { %v742_v46 = vadd.f32 %v741_v44, %v738_v43 }
 0x141   :  { %v746_v48 = vadd.f32 %v745_v47, %v742_v46 }
 0x143   :  { %v750_v50 = vadd.f32 %v749_v49, %v746_v48 }
 0x145   :  { %v754_v14 = vsel %vm753_vm1, %v750_v50, 0.0 }
 0x146   :  { %755 = vst [vmem:[%s1097_s3] sm:$0xff] %v754_v14 }

// kernel: hard_bce_loss.3
= control target key start
LH: loop header
LB: loop body
LE: loop exit
PB: predicated region body
PF: predicated region fallthrough
CT: control target
= control target key end

     0   :  { %9 = vsyncpa [#allocation3], 0  ;;  %s2221_s0 = inlined_call_operand.vmem [shape: f32[4], index: 0, kind: input, shape index: {}]   ;;  %s2222_s1 = inlined_call_operand.vmem [shape: f32[2,256], index: 1, kind: input, shape index: {}]   ;;  %s2223_s2 = inlined_call_operand.vmem [shape: f32[2,256], index: 2, kind: input, shape index: {}]   ;;  %s2224_s3 = inlined_call_operand.vmem [shape: f32[2,256], index: 3, kind: input, shape index: {}]   ;;  %s2225_s4 = inlined_call_operand.vmem [shape: f32[8,128], index: 4, kind: output, shape index: {}]  }
   0x1   :  { %s16_s17 = sshll.u32 %s2221_s0, 4  ;;  %s17_s17 = int_to_ptr.vmem [resolvable:$true] %s16_s17 }
   0x2   :  { %s1541_s18 = scalar_lea.vmem %s17_s17, 16  ;;  %p1546_p1 = scmp.lt.s32.totalorder %s17_s17, %s17_s17 }
   0x3   :  { %p1542_p0 = scmp.ne.s32.totalorder %s17_s17, %s1541_s18  ;;  %p1547_p2 = scmp.lt.s32.totalorder %s1541_s18, %s1541_s18 }
   0x5   :  { %p1548_p3 = por %p1547_p2, %p1546_p1 }
   0x7   :  { %p1549_p4 = pnand %p1548_p3, %p1542_p0 }
   0x9   :  { %1552 = shalt.err (!%p1549_p4)
}
   0xa   :  { %s1555_s19 = smov [#allocation2]  }
   0xb   :  { %19 = dma.vmem_to_smem %s17_s17, 16, %s1555_s19, [#allocation3]  }
   0xc   :  { %1553 = dma.done.wait [#allocation3], 16  }
   0xd   :  { %1554 = vsyncadd [#allocation3], 4294967280 }
   0xe   :  { %29 = sfence }
   0xf   :  { %v33_v0 = vld [vmem:[%s2222_s1] sm:$0xf]  ;;  %v39_v1 = vlaneseq  ;;  %v1556_v7 = vmov 1983009808   ;;  %vm91_vm0 = vcmask 1041408   ;;  %s1397_s1 = sld [smem:[#allocation2 + $0x1]] }
  0x10   :  { %v34_v2 = vmax.f32 %v33_v0, 0.0  ;;  %v36_v3 = vld [vmem:[%s2223_s2] sm:$0xf]  ;;  %v65_v8 = vunpack.c.l.s4 %v1556_v7  ;;  %s30_s2 = sld [smem:[#allocation2]] }
  0x11   :  { %v37_v4 = vld [vmem:[%s2224_s3] sm:$0xf]  ;;  %v55_v5 = vsub.f32 1.0, %v36_v3  ;;  %v1595_v9 = vshrl.u32 %v39_v1, 7  ;;  %s1398_s3 = sld [smem:[#allocation2 + $0x2]] }
  0x12   :  { %v35_v6 = vmin.f32 %v34_v2, 1.0  ;;  %v66_v12 = vunpack.c.0.s8 %v65_v8 }
  0x13   :  { %v76_v10 = vmul.f32 %v55_v5, %v37_v4 }
  0x14   :  { %1537 = vlog2.f32 %v35_v6  ;;  %v50_v11 = vsub.f32 1.0, %v35_v6  ;;  %v69_v14 = vsub.s32 %v66_v12, %v1595_v9 }
  0x15   :  { %v77_v13 = vfloor.f32 %v76_v10  ;;  %v106_v40 = vstv %s1397_s1 }
  0x16   :  { %1539 = vlog2.f32 %v50_v11  ;;  %v139_v42 = vstv %s30_s2 }
  0x17   :  { %v85_v15 = vrot.slane %v77_v13, %v69_v14  ;;  %v150_v45 = vstv %s1398_s3 }
  0x19   :  { %v86_v16 = vcombine.high %v85_v15, %v85_v15  ;;  %v92_v17 = vsel %vm91_vm0, %v85_v15, 0.0 }
  0x1a   :  { %v93_v18 = vrot.slane %v92_v17, 4 }
  0x1b   :  { %v99_v19 = vsel %vm91_vm0, %v86_v16, 0.0 }
  0x1c   :  { %v94_v20 = vadd.f32 %v93_v18, %v92_v17  ;;  %v100_v21 = vrot.slane %v99_v19, 4 }
  0x1e   :  { %v1538_v22 = vpop.eup %1537  ;;  %v95_v24 = vrot.slane %v94_v20, 2  ;;  %v101_v25 = vadd.f32 %v100_v21, %v99_v19 }
  0x1f   :  { %v48_v23 = vmul.f32 0.6931472, %v1538_v22 }
  0x20   :  { %v1540_v26 = vpop.eup %1539  ;;  %v102_v29 = vrot.slane %v101_v25, 2  ;;  %v96_v30 = vadd.f32 %v95_v24, %v94_v20 }
  0x21   :  { %v49_v27 = vmax.f32 %v48_v23, -100.0  ;;  %v52_v28 = vmul.f32 0.6931472, %v1540_v26 }
  0x22   :  { %v103_v33 = vadd.f32 %v102_v29, %v101_v25  ;;  %v97_v35 = vrot.slane %v96_v30, 1 }
  0x23   :  { %v53_v31 = vmax.f32 %v52_v28, -100.0  ;;  %v54_v32 = vmul.f32 %v49_v27, %v36_v3 }
  0x24   :  { %v104_v37 = vrot.slane %v103_v33, 1  ;;  %v98_v39 = vadd.f32 %v97_v35, %v96_v30 }
  0x25   :  { %v56_v34 = vmul.f32 %v55_v5, %v53_v31 }
  0x26   :  { %v105_v43 = vadd.f32 %v104_v37, %v103_v33 }
  0x27   :  { %v57_v36 = vadd.f32 %v56_v34, %v54_v32 }
  0x29   :  { %v58_v38 = vsub.f32 0.0, %v57_v36 }
  0x2b   :  { %v1600_v41 = vrot.slane %v58_v38, %v69_v14 }
  0x2d   :  { %v1604_v44 = vcombine.high %v1600_v41, %v1600_v41  ;;  %vm107_vm1 = vcmp.ge.f32.partialorder %v1600_v41, %v106_v40  ;;  %v148_v47 = vsub.f32 %v1600_v41, %v139_v42  ;;  %v123_v48 = vmul.f32 %v98_v39, %v1600_v41 }
  0x2e   :  { %v109_v46 = vsel %vm107_vm1, %v98_v39, 0.0  ;;  %vm142_vm3 = vcmp.lt.f32.partialorder %v1600_v41, %v106_v40  ;;  %vm140_vm4 = vcmp.ge.f32.partialorder %v1600_v41, %v139_v42 }
  0x2f   :  { %vm108_vm2 = vcmp.ge.f32.partialorder %v1604_v44, %v106_v40  ;;  %v111_v49 = vsel %vm91_vm0, %v109_v46, 0.0  ;;  %v149_v51 = vsub.f32 %v1604_v44, %v139_v42  ;;  %v151_v52 = vmul.f32 %v150_v45, %v148_v47  ;;  %vm144_vm7 = vmand %vm140_vm4, %vm142_vm3 }
  0x30   :  { %v110_v50 = vsel %vm108_vm2, %v105_v43, 0.0  ;;  %v124_v54 = vmul.f32 %v105_v43, %v1604_v44  ;;  %v125_v55 = vsel %vm107_vm1, %v123_v48, 0.0  ;;  %vm143_vm5 = vcmp.lt.f32.partialorder %v1604_v44, %v106_v40 }
  0x31   :  { %v112_v53 = vsel %vm91_vm0, %v110_v50, 0.0  ;;  %v152_v57 = vmul.f32 %v150_v45, %v149_v51  ;;  %v1403_v58 = vtrunc.f32 %v151_v52  ;;  %v127_v59 = vsel %vm91_vm0, %v125_v55, 0.0 }
  0x32   :  { %v113_v56 = vadd.f32 %v112_v53, %v111_v49  ;;  %vm141_vm6 = vcmp.ge.f32.partialorder %v1604_v44, %v139_v42  ;;  %v126_v60 = vsel %vm108_vm2, %v124_v54, 0.0  ;;  %v1626_v4 = vsel %vm144_vm7, %v98_v39, 0.0 }
  0x33   :  { %v1404_v61 = vcvt.f32.s32 %v1403_v58  ;;  %v1405_v62 = vtrunc.f32 %v152_v57  ;;  %v128_v63 = vsel %vm91_vm0, %v126_v60, 0.0  ;;  %vm145_vm8 = vmand %vm141_vm6, %vm143_vm5 }
  0x34   :  { %114 = vadd.xlane.f32.xlu0 %v113_v56  ;;  %v129_v0 = vadd.f32 %v128_v63, %v127_v59  ;;  %v1628_v5 = vsel %vm145_vm8, %v105_v43, 0.0 }
  0x35   :  { %v1406_v2 = vcvt.f32.s32 %v1405_v62  ;;  %vm155_vm9 = vcmp.gt.s32.totalorder %v1404_v61, 0 }
  0x36   :  { %v156_v3 = vsel %vm155_vm9, %v1404_v61, 0 }
  0x37   :  { %vm157_vm10 = vcmp.gt.s32.totalorder %v1406_v2, 0  ;;  %vm159_vm11 = vcmp.lt.s32.totalorder %v156_v3, 31 }
  0x38   :  { %130 = vadd.xlane.f32.xlu0 %v129_v0  ;;  %v158_v6 = vsel %vm157_vm10, %v1406_v2, 0  ;;  %v1630_v7 = vsel %vm159_vm11, %v156_v3, 31 }
  0x39   :  { %vm161_vm12 = vcmp.lt.s32.totalorder %v158_v6, 31  ;;  %vm201_vm13 = vcmp.eq.s32.totalorder %v1630_v7, 1  ;;  %vm163_vm14 = vcmp.eq.s32.totalorder %v1630_v7, 0  ;;  %vm239_vm15 = vcmp.eq.s32.totalorder %v1630_v7, 2 }
  0x3a   :  { %v1635_v8 = vsel %vm161_vm12, %v158_v6, 31  ;;  %v203_v10 = vsel %vm201_vm13, %v1626_v4, 0.0  ;;  %v165_v11 = vsel %vm163_vm14, %v1626_v4, 0.0  ;;  %v241_v12 = vsel %vm239_vm15, %v1626_v4, 0.0 }
  0x3b   :  { %vm202_vm1 = vcmp.eq.s32.totalorder %v1635_v8, 1  ;;  %v206_v13 = vsel %vm91_vm0, %v203_v10, 0.0  ;;  %vm164_vm2 = vcmp.eq.s32.totalorder %v1635_v8, 0  ;;  %v168_v14 = vsel %vm91_vm0, %v165_v11, 0.0 }
  0x3c   :  { %v204_v15 = vsel %vm202_vm1, %v1628_v5, 0.0  ;;  %v166_v16 = vsel %vm164_vm2, %v1628_v5, 0.0  ;;  %v184_v17 = vmul.f32 %v165_v11, %v1600_v41  ;;  %vm240_vm3 = vcmp.eq.s32.totalorder %v1635_v8, 2 }
  0x3d   :  { %v207_v18 = vsel %vm91_vm0, %v204_v15, 0.0  ;;  %v169_v19 = vsel %vm91_vm0, %v166_v16, 0.0  ;;  %v185_v20 = vmul.f32 %v166_v16, %v1604_v44  ;;  %v242_v21 = vsel %vm240_vm3, %v1628_v5, 0.0 }
  0x3e   :  { %v208_v22 = vadd.f32 %v207_v18, %v206_v13  ;;  %v170_v23 = vadd.f32 %v169_v19, %v168_v14  ;;  %v244_v24 = vsel %vm91_vm0, %v241_v12, 0.0  ;;  %v245_v25 = vsel %vm91_vm0, %v242_v21, 0.0 }
  0x3f   :  { %v246_v26 = vadd.f32 %v245_v25, %v244_v24  ;;  %v186_v27 = vsel %vm91_vm0, %v184_v17, 0.0  ;;  %v187_v28 = vsel %vm91_vm0, %v185_v20, 0.0  ;;  %vm277_vm4 = vcmp.eq.s32.totalorder %v1630_v7, 3 }
  0x40   :  { %209 = vadd.xlane.f32.xlu0 %v208_v22  ;;  %171 = vadd.xlane.f32.xlu1 %v170_v23  ;;  %v188_v29 = vadd.f32 %v187_v28, %v186_v27  ;;  %vm278_vm5 = vcmp.eq.s32.totalorder %v1635_v8, 3  ;;  %v279_v30 = vsel %vm277_vm4, %v1626_v4, 0.0  ;;  %v222_v31 = vmul.f32 %v203_v10, %v1600_v41 }
  0x41   :  { %v280_v32 = vsel %vm278_vm5, %v1628_v5, 0.0  ;;  %v282_v33 = vsel %vm91_vm0, %v279_v30, 0.0  ;;  %v223_v34 = vmul.f32 %v204_v15, %v1604_v44  ;;  %vm315_vm6 = vcmp.eq.s32.totalorder %v1630_v7, 4 }
  0x42   :  { %v283_v35 = vsel %vm91_vm0, %v280_v32, 0.0  ;;  %v224_v36 = vsel %vm91_vm0, %v222_v31, 0.0  ;;  %vm316_vm7 = vcmp.eq.s32.totalorder %v1635_v8, 4  ;;  %v317_v37 = vsel %vm315_vm6, %v1626_v4, 0.0 }
  0x43   :  { %v284_v38 = vadd.f32 %v283_v35, %v282_v33  ;;  %v225_v39 = vsel %vm91_vm0, %v223_v34, 0.0  ;;  %v318_v40 = vsel %vm316_vm7, %v1628_v5, 0.0  ;;  %v320_v42 = vsel %vm91_vm0, %v317_v37, 0.0 }
  0x44   :  { %247 = vadd.xlane.f32.xlu0 %v246_v26  ;;  %189 = vadd.xlane.f32.xlu1 %v188_v29  ;;  %v226_v43 = vadd.f32 %v225_v39, %v224_v36  ;;  %v321_v45 = vsel %vm91_vm0, %v318_v40, 0.0  ;;  %v260_v46 = vmul.f32 %v241_v12, %v1600_v41  ;;  %v261_v47 = vmul.f32 %v242_v21, %v1604_v44 }
  0x45   :  { %vm353_vm8 = vcmp.eq.s32.totalorder %v1630_v7, 5  ;;  %vm354_vm9 = vcmp.eq.s32.totalorder %v1635_v8, 5  ;;  %v298_v48 = vmul.f32 %v279_v30, %v1600_v41  ;;  %v322_v53 = vadd.f32 %v321_v45, %v320_v42 }
  0x46   :  { %v262_v49 = vsel %vm91_vm0, %v260_v46, 0.0  ;;  %v263_v50 = vsel %vm91_vm0, %v261_v47, 0.0  ;;  %v355_v51 = vsel %vm353_vm8, %v1626_v4, 0.0  ;;  %v356_v52 = vsel %vm354_vm9, %v1628_v5, 0.0 }
  0x47   :  { %v358_v54 = vsel %vm91_vm0, %v355_v51, 0.0  ;;  %v359_v55 = vsel %vm91_vm0, %v356_v52, 0.0  ;;  %v299_v56 = vmul.f32 %v280_v32, %v1604_v44  ;;  %v264_v57 = vadd.f32 %v263_v50, %v262_v49 }
  0x48   :  { %285 = vadd.xlane.f32.xlu0 %v284_v38  ;;  %227 = vadd.xlane.f32.xlu1 %v226_v43  ;;  %v300_v58 = vsel %vm91_vm0, %v298_v48, 0.0  ;;  %vm391_vm10 = vcmp.eq.s32.totalorder %v1630_v7, 6  ;;  %vm392_vm11 = vcmp.eq.s32.totalorder %v1635_v8, 6  ;;  %v336_v62 = vmul.f32 %v317_v37, %v1600_v41 }
  0x49   :  { %v301_v59 = vsel %vm91_vm0, %v299_v56, 0.0  ;;  %v393_v60 = vsel %vm391_vm10, %v1626_v4, 0.0  ;;  %v394_v61 = vsel %vm392_vm11, %v1628_v5, 0.0  ;;  %v360_v63 = vadd.f32 %v359_v55, %v358_v54 }
  0x4a   :  { %v337_v0 = vmul.f32 %v318_v40, %v1604_v44  ;;  %v396_v2 = vsel %vm91_vm0, %v393_v60, 0.0  ;;  %v397_v3 = vsel %vm91_vm0, %v394_v61, 0.0  ;;  %vm429_vm12 = vcmp.eq.s32.totalorder %v1630_v7, 7 }
  0x4b   :  { %vm430_vm13 = vcmp.eq.s32.totalorder %v1635_v8, 7  ;;  %v302_v6 = vadd.f32 %v301_v59, %v300_v58  ;;  %v431_v10 = vsel %vm429_vm12, %v1626_v4, 0.0  ;;  %v374_v12 = vmul.f32 %v355_v51, %v1600_v41 }
  0x4c   :  { %323 = vadd.xlane.f32.xlu0 %v322_v53  ;;  %265 = vadd.xlane.f32.xlu1 %v264_v57  ;;  %v432_v11 = vsel %vm430_vm13, %v1628_v5, 0.0  ;;  %v338_v13 = vsel %vm91_vm0, %v336_v62, 0.0  ;;  %v339_v14 = vsel %vm91_vm0, %v337_v0, 0.0  ;;  %v375_v15 = vmul.f32 %v356_v52, %v1604_v44 }
  0x4d   :  { %v398_v16 = vadd.f32 %v397_v3, %v396_v2  ;;  %v434_v17 = vsel %vm91_vm0, %v431_v10, 0.0  ;;  %vm467_vm14 = vcmp.eq.s32.totalorder %v1630_v7, 8  ;;  %vm468_vm15 = vcmp.eq.s32.totalorder %v1635_v8, 8 }
  0x4e   :  { %v435_v18 = vsel %vm91_vm0, %v432_v11, 0.0  ;;  %v376_v19 = vsel %vm91_vm0, %v374_v12, 0.0  ;;  %v377_v20 = vsel %vm91_vm0, %v375_v15, 0.0  ;;  %v412_v21 = vmul.f32 %v393_v60, %v1600_v41 }
  0x4f   :  { %v340_v22 = vadd.f32 %v339_v14, %v338_v13  ;;  %v469_v23 = vsel %vm467_vm14, %v1626_v4, 0.0  ;;  %v470_v24 = vsel %vm468_vm15, %v1628_v5, 0.0  ;;  %v413_v25 = vmul.f32 %v394_v61, %v1604_v44 }
  0x50   :  { %361 = vadd.xlane.f32.xlu0 %v360_v63  ;;  %303 = vadd.xlane.f32.xlu1 %v302_v6  ;;  %vm505_vm1 = vcmp.eq.s32.totalorder %v1630_v7, 9  ;;  %vm506_vm2 = vcmp.eq.s32.totalorder %v1635_v8, 9  ;;  %v436_v26 = vadd.f32 %v435_v18, %v434_v17  ;;  %v378_v27 = vadd.f32 %v377_v20, %v376_v19 }
  0x51   :  { %v472_v28 = vsel %vm91_vm0, %v469_v23, 0.0  ;;  %v473_v29 = vsel %vm91_vm0, %v470_v24, 0.0  ;;  %v414_v30 = vsel %vm91_vm0, %v412_v21, 0.0  ;;  %v415_v31 = vsel %vm91_vm0, %v413_v25, 0.0 }
  0x52   :  { %v507_v32 = vsel %vm505_vm1, %v1626_v4, 0.0  ;;  %v508_v33 = vsel %vm506_vm2, %v1628_v5, 0.0  ;;  %v450_v34 = vmul.f32 %v431_v10, %v1600_v41  ;;  %v451_v35 = vmul.f32 %v432_v11, %v1604_v44 }
  0x53   :  { %vm543_vm3 = vcmp.eq.s32.totalorder %v1630_v7, 10  ;;  %vm544_vm4 = vcmp.eq.s32.totalorder %v1635_v8, 10  ;;  %v474_v36 = vadd.f32 %v473_v29, %v472_v28  ;;  %v416_v37 = vadd.f32 %v415_v31, %v414_v30 }
  0x54   :  { %399 = vadd.xlane.f32.xlu0 %v398_v16  ;;  %341 = vadd.xlane.f32.xlu1 %v340_v22  ;;  %v510_v38 = vsel %vm91_vm0, %v507_v32, 0.0  ;;  %v511_v39 = vsel %vm91_vm0, %v508_v33, 0.0  ;;  %v452_v40 = vsel %vm91_vm0, %v450_v34, 0.0  ;;  %v453_v42 = vsel %vm91_vm0, %v451_v35, 0.0 }
  0x55   :  { %vm581_vm5 = vcmp.eq.s32.totalorder %v1630_v7, 11  ;;  %vm582_vm6 = vcmp.eq.s32.totalorder %v1635_v8, 11  ;;  %v545_v43 = vsel %vm543_vm3, %v1626_v4, 0.0  ;;  %v546_v45 = vsel %vm544_vm4, %v1628_v5, 0.0 }
  0x56   :  { %v488_v46 = vmul.f32 %v469_v23, %v1600_v41  ;;  %v489_v47 = vmul.f32 %v470_v24, %v1604_v44  ;;  %v583_v48 = vsel %vm581_vm5, %v1626_v4, 0.0  ;;  %v584_v49 = vsel %vm582_vm6, %v1628_v5, 0.0 }
  0x57   :  { %v526_v50 = vmul.f32 %v507_v32, %v1600_v41  ;;  %v527_v51 = vmul.f32 %v508_v33, %v1604_v44  ;;  %v512_v52 = vadd.f32 %v511_v39, %v510_v38  ;;  %v454_v53 = vadd.f32 %v453_v42, %v452_v40 }
  0x58   :  { %437 = vadd.xlane.f32.xlu0 %v436_v26  ;;  %379 = vadd.xlane.f32.xlu1 %v378_v27  ;;  %v548_v54 = vsel %vm91_vm0, %v545_v43, 0.0  ;;  %v549_v55 = vsel %vm91_vm0, %v546_v45, 0.0  ;;  %v490_v56 = vsel %vm91_vm0, %v488_v46, 0.0  ;;  %v491_v57 = vsel %vm91_vm0, %v489_v47, 0.0 }
  0x59   :  { %vm619_vm7 = vcmp.eq.s32.totalorder %v1630_v7, 12  ;;  %vm620_vm8 = vcmp.eq.s32.totalorder %v1635_v8, 12  ;;  %v586_v58 = vsel %vm91_vm0, %v583_v48, 0.0  ;;  %v587_v59 = vsel %vm91_vm0, %v584_v49, 0.0 }
  0x5a   :  { %v528_v60 = vsel %vm91_vm0, %v526_v50, 0.0  ;;  %v529_v61 = vsel %vm91_vm0, %v527_v51, 0.0  ;;  %v564_v62 = vmul.f32 %v545_v43, %v1600_v41  ;;  %v565_v63 = vmul.f32 %v546_v45, %v1604_v44 }
  0x5b   :  { %v550_v0 = vadd.f32 %v549_v55, %v548_v54  ;;  %v492_v2 = vadd.f32 %v491_v57, %v490_v56  ;;  %v621_v3 = vsel %vm619_vm7, %v1626_v4, 0.0  ;;  %v622_v6 = vsel %vm620_vm8, %v1628_v5, 0.0 }
  0x5c   :  { %475 = vadd.xlane.f32.xlu0 %v474_v36  ;;  %417 = vadd.xlane.f32.xlu1 %v416_v37  ;;  %vm657_vm9 = vcmp.eq.s32.totalorder %v1630_v7, 13  ;;  %vm658_vm10 = vcmp.eq.s32.totalorder %v1635_v8, 13  ;;  %v588_v10 = vadd.f32 %v587_v59, %v586_v58  ;;  %v530_v11 = vadd.f32 %v529_v61, %v528_v60 }
  0x5d   :  { %v624_v12 = vsel %vm91_vm0, %v621_v3, 0.0  ;;  %v625_v13 = vsel %vm91_vm0, %v622_v6, 0.0  ;;  %v566_v14 = vsel %vm91_vm0, %v564_v62, 0.0  ;;  %v567_v15 = vsel %vm91_vm0, %v565_v63, 0.0 }
  0x5e   :  { %v659_v16 = vsel %vm657_vm9, %v1626_v4, 0.0  ;;  %v660_v17 = vsel %vm658_vm10, %v1628_v5, 0.0  ;;  %v602_v18 = vmul.f32 %v583_v48, %v1600_v41  ;;  %v603_v19 = vmul.f32 %v584_v49, %v1604_v44 }
  0x5f   :  { %vm695_vm11 = vcmp.eq.s32.totalorder %v1630_v7, 14  ;;  %vm696_vm12 = vcmp.eq.s32.totalorder %v1635_v8, 14  ;;  %v626_v20 = vadd.f32 %v625_v13, %v624_v12  ;;  %v568_v21 = vadd.f32 %v567_v15, %v566_v14 }
  0x60   :  { %513 = vadd.xlane.f32.xlu0 %v512_v52  ;;  %455 = vadd.xlane.f32.xlu1 %v454_v53  ;;  %v662_v22 = vsel %vm91_vm0, %v659_v16, 0.0  ;;  %v663_v23 = vsel %vm91_vm0, %v660_v17, 0.0  ;;  %v604_v24 = vsel %vm91_vm0, %v602_v18, 0.0  ;;  %v605_v25 = vsel %vm91_vm0, %v603_v19, 0.0 }
  0x61   :  { %vm733_vm13 = vcmp.eq.s32.totalorder %v1630_v7, 15  ;;  %vm734_vm14 = vcmp.eq.s32.totalorder %v1635_v8, 15  ;;  %v697_v26 = vsel %vm695_vm11, %v1626_v4, 0.0  ;;  %v698_v27 = vsel %vm696_vm12, %v1628_v5, 0.0 }
  0x62   :  { %v640_v28 = vmul.f32 %v621_v3, %v1600_v41  ;;  %v641_v29 = vmul.f32 %v622_v6, %v1604_v44  ;;  %v735_v30 = vsel %vm733_vm13, %v1626_v4, 0.0  ;;  %v736_v31 = vsel %vm734_vm14, %v1628_v5, 0.0 }
  0x63   :  { %v678_v32 = vmul.f32 %v659_v16, %v1600_v41  ;;  %v679_v33 = vmul.f32 %v660_v17, %v1604_v44  ;;  %v664_v34 = vadd.f32 %v663_v23, %v662_v22  ;;  %v606_v35 = vadd.f32 %v605_v25, %v604_v24 }
  0x64   :  { %551 = vadd.xlane.f32.xlu0 %v550_v0  ;;  %493 = vadd.xlane.f32.xlu1 %v492_v2  ;;  %v700_v36 = vsel %vm91_vm0, %v697_v26, 0.0  ;;  %v701_v37 = vsel %vm91_vm0, %v698_v27, 0.0  ;;  %v642_v38 = vsel %vm91_vm0, %v640_v28, 0.0  ;;  %v643_v39 = vsel %vm91_vm0, %v641_v29, 0.0 }
  0x65   :  { %vm771_vm15 = vcmp.eq.s32.totalorder %v1630_v7, 16  ;;  %vm772_vm1 = vcmp.eq.s32.totalorder %v1635_v8, 16  ;;  %v738_v40 = vsel %vm91_vm0, %v735_v30, 0.0  ;;  %v739_v42 = vsel %vm91_vm0, %v736_v31, 0.0 }
  0x66   :  { %v680_v43 = vsel %vm91_vm0, %v678_v32, 0.0  ;;  %v681_v45 = vsel %vm91_vm0, %v679_v33, 0.0  ;;  %v716_v46 = vmul.f32 %v697_v26, %v1600_v41  ;;  %v717_v47 = vmul.f32 %v698_v27, %v1604_v44 }
  0x67   :  { %v702_v48 = vadd.f32 %v701_v37, %v700_v36  ;;  %v644_v49 = vadd.f32 %v643_v39, %v642_v38  ;;  %v773_v50 = vsel %vm771_vm15, %v1626_v4, 0.0  ;;  %v774_v51 = vsel %vm772_vm1, %v1628_v5, 0.0 }
  0x68   :  { %589 = vadd.xlane.f32.xlu0 %v588_v10  ;;  %531 = vadd.xlane.f32.xlu1 %v530_v11  ;;  %vm809_vm2 = vcmp.eq.s32.totalorder %v1630_v7, 17  ;;  %vm810_vm3 = vcmp.eq.s32.totalorder %v1635_v8, 17  ;;  %v740_v52 = vadd.f32 %v739_v42, %v738_v40  ;;  %v682_v53 = vadd.f32 %v681_v45, %v680_v43 }
  0x69   :  { %v776_v54 = vsel %vm91_vm0, %v773_v50, 0.0  ;;  %v777_v55 = vsel %vm91_vm0, %v774_v51, 0.0  ;;  %v718_v56 = vsel %vm91_vm0, %v716_v46, 0.0  ;;  %v719_v57 = vsel %vm91_vm0, %v717_v47, 0.0 }
  0x6a   :  { %v811_v58 = vsel %vm809_vm2, %v1626_v4, 0.0  ;;  %v812_v59 = vsel %vm810_vm3, %v1628_v5, 0.0  ;;  %v754_v60 = vmul.f32 %v735_v30, %v1600_v41  ;;  %v755_v61 = vmul.f32 %v736_v31, %v1604_v44 }
  0x6b   :  { %vm847_vm4 = vcmp.eq.s32.totalorder %v1630_v7, 18  ;;  %vm848_vm5 = vcmp.eq.s32.totalorder %v1635_v8, 18  ;;  %v778_v62 = vadd.f32 %v777_v55, %v776_v54  ;;  %v720_v63 = vadd.f32 %v719_v57, %v718_v56 }
  0x6c   :  { %627 = vadd.xlane.f32.xlu0 %v626_v20  ;;  %569 = vadd.xlane.f32.xlu1 %v568_v21  ;;  %v814_v0 = vsel %vm91_vm0, %v811_v58, 0.0  ;;  %v815_v2 = vsel %vm91_vm0, %v812_v59, 0.0  ;;  %v756_v3 = vsel %vm91_vm0, %v754_v60, 0.0  ;;  %v757_v6 = vsel %vm91_vm0, %v755_v61, 0.0 }
  0x6d   :  { %vm885_vm6 = vcmp.eq.s32.totalorder %v1630_v7, 19  ;;  %vm886_vm7 = vcmp.eq.s32.totalorder %v1635_v8, 19  ;;  %v849_v10 = vsel %vm847_vm4, %v1626_v4, 0.0  ;;  %v850_v11 = vsel %vm848_vm5, %v1628_v5, 0.0 }
  0x6e   :  { %v792_v12 = vmul.f32 %v773_v50, %v1600_v41  ;;  %v793_v13 = vmul.f32 %v774_v51, %v1604_v44  ;;  %v887_v14 = vsel %vm885_vm6, %v1626_v4, 0.0  ;;  %v888_v15 = vsel %vm886_vm7, %v1628_v5, 0.0 }
  0x6f   :  { %v830_v16 = vmul.f32 %v811_v58, %v1600_v41  ;;  %v831_v17 = vmul.f32 %v812_v59, %v1604_v44  ;;  %v816_v18 = vadd.f32 %v815_v2, %v814_v0  ;;  %v758_v19 = vadd.f32 %v757_v6, %v756_v3 }
  0x70   :  { %665 = vadd.xlane.f32.xlu0 %v664_v34  ;;  %607 = vadd.xlane.f32.xlu1 %v606_v35  ;;  %v852_v20 = vsel %vm91_vm0, %v849_v10, 0.0  ;;  %v853_v21 = vsel %vm91_vm0, %v850_v11, 0.0  ;;  %v794_v22 = vsel %vm91_vm0, %v792_v12, 0.0  ;;  %v795_v23 = vsel %vm91_vm0, %v793_v13, 0.0 }
  0x71   :  { %vm923_vm8 = vcmp.eq.s32.totalorder %v1630_v7, 20  ;;  %vm924_vm9 = vcmp.eq.s32.totalorder %v1635_v8, 20  ;;  %v890_v24 = vsel %vm91_vm0, %v887_v14, 0.0  ;;  %v891_v25 = vsel %vm91_vm0, %v888_v15, 0.0 }
  0x72   :  { %v832_v26 = vsel %vm91_vm0, %v830_v16, 0.0  ;;  %v833_v27 = vsel %vm91_vm0, %v831_v17, 0.0  ;;  %v868_v28 = vmul.f32 %v849_v10, %v1600_v41  ;;  %v869_v29 = vmul.f32 %v850_v11, %v1604_v44 }
  0x73   :  { %v854_v30 = vadd.f32 %v853_v21, %v852_v20  ;;  %v796_v31 = vadd.f32 %v795_v23, %v794_v22  ;;  %v925_v32 = vsel %vm923_vm8, %v1626_v4, 0.0  ;;  %v926_v33 = vsel %vm924_vm9, %v1628_v5, 0.0 }
  0x74   :  { %703 = vadd.xlane.f32.xlu0 %v702_v48  ;;  %645 = vadd.xlane.f32.xlu1 %v644_v49  ;;  %vm961_vm10 = vcmp.eq.s32.totalorder %v1630_v7, 21  ;;  %vm962_vm11 = vcmp.eq.s32.totalorder %v1635_v8, 21  ;;  %v892_v34 = vadd.f32 %v891_v25, %v890_v24  ;;  %v834_v35 = vadd.f32 %v833_v27, %v832_v26 }
  0x75   :  { %v928_v36 = vsel %vm91_vm0, %v925_v32, 0.0  ;;  %v929_v37 = vsel %vm91_vm0, %v926_v33, 0.0  ;;  %v870_v38 = vsel %vm91_vm0, %v868_v28, 0.0  ;;  %v871_v39 = vsel %vm91_vm0, %v869_v29, 0.0 }
  0x76   :  { %v963_v40 = vsel %vm961_vm10, %v1626_v4, 0.0  ;;  %v964_v42 = vsel %vm962_vm11, %v1628_v5, 0.0  ;;  %v906_v43 = vmul.f32 %v887_v14, %v1600_v41  ;;  %v907_v45 = vmul.f32 %v888_v15, %v1604_v44 }
  0x77   :  { %vm999_vm12 = vcmp.eq.s32.totalorder %v1630_v7, 22  ;;  %vm1000_vm13 = vcmp.eq.s32.totalorder %v1635_v8, 22  ;;  %v930_v46 = vadd.f32 %v929_v37, %v928_v36  ;;  %v872_v47 = vadd.f32 %v871_v39, %v870_v38 }
  0x78   :  { %741 = vadd.xlane.f32.xlu0 %v740_v52  ;;  %683 = vadd.xlane.f32.xlu1 %v682_v53  ;;  %v966_v48 = vsel %vm91_vm0, %v963_v40, 0.0  ;;  %v967_v49 = vsel %vm91_vm0, %v964_v42, 0.0  ;;  %v908_v50 = vsel %vm91_vm0, %v906_v43, 0.0  ;;  %v909_v51 = vsel %vm91_vm0, %v907_v45, 0.0 }
  0x79   :  { %vm1037_vm14 = vcmp.eq.s32.totalorder %v1630_v7, 23  ;;  %vm1038_vm15 = vcmp.eq.s32.totalorder %v1635_v8, 23  ;;  %v1001_v52 = vsel %vm999_vm12, %v1626_v4, 0.0  ;;  %v1002_v53 = vsel %vm1000_vm13, %v1628_v5, 0.0 }
  0x7a   :  { %v944_v54 = vmul.f32 %v925_v32, %v1600_v41  ;;  %v945_v55 = vmul.f32 %v926_v33, %v1604_v44  ;;  %v1039_v56 = vsel %vm1037_vm14, %v1626_v4, 0.0  ;;  %v1040_v57 = vsel %vm1038_vm15, %v1628_v5, 0.0 }
  0x7b   :  { %v982_v58 = vmul.f32 %v963_v40, %v1600_v41  ;;  %v983_v59 = vmul.f32 %v964_v42, %v1604_v44  ;;  %v968_v60 = vadd.f32 %v967_v49, %v966_v48  ;;  %v910_v61 = vadd.f32 %v909_v51, %v908_v50 }
  0x7c   :  { %779 = vadd.xlane.f32.xlu0 %v778_v62  ;;  %721 = vadd.xlane.f32.xlu1 %v720_v63  ;;  %v1004_v62 = vsel %vm91_vm0, %v1001_v52, 0.0  ;;  %v1005_v63 = vsel %vm91_vm0, %v1002_v53, 0.0  ;;  %v946_v0 = vsel %vm91_vm0, %v944_v54, 0.0  ;;  %v947_v2 = vsel %vm91_vm0, %v945_v55, 0.0 }
  0x7d   :  { %vm1075_vm1 = vcmp.eq.s32.totalorder %v1630_v7, 24  ;;  %vm1076_vm2 = vcmp.eq.s32.totalorder %v1635_v8, 24  ;;  %v1042_v3 = vsel %vm91_vm0, %v1039_v56, 0.0  ;;  %v1043_v6 = vsel %vm91_vm0, %v1040_v57, 0.0 }
  0x7e   :  { %v984_v10 = vsel %vm91_vm0, %v982_v58, 0.0  ;;  %v985_v11 = vsel %vm91_vm0, %v983_v59, 0.0  ;;  %v1020_v12 = vmul.f32 %v1001_v52, %v1600_v41  ;;  %v1021_v13 = vmul.f32 %v1002_v53, %v1604_v44 }
  0x7f   :  { %v1006_v14 = vadd.f32 %v1005_v63, %v1004_v62  ;;  %v948_v15 = vadd.f32 %v947_v2, %v946_v0  ;;  %v1077_v16 = vsel %vm1075_vm1, %v1626_v4, 0.0  ;;  %v1078_v17 = vsel %vm1076_vm2, %v1628_v5, 0.0 }
  0x80   :  { %817 = vadd.xlane.f32.xlu0 %v816_v18  ;;  %759 = vadd.xlane.f32.xlu1 %v758_v19  ;;  %vm1113_vm3 = vcmp.eq.s32.totalorder %v1630_v7, 25  ;;  %vm1114_vm4 = vcmp.eq.s32.totalorder %v1635_v8, 25  ;;  %v1044_v18 = vadd.f32 %v1043_v6, %v1042_v3  ;;  %v986_v19 = vadd.f32 %v985_v11, %v984_v10 }
  0x81   :  { %v1080_v20 = vsel %vm91_vm0, %v1077_v16, 0.0  ;;  %v1081_v21 = vsel %vm91_vm0, %v1078_v17, 0.0  ;;  %v1022_v22 = vsel %vm91_vm0, %v1020_v12, 0.0  ;;  %v1023_v23 = vsel %vm91_vm0, %v1021_v13, 0.0 }
  0x82   :  { %v1115_v24 = vsel %vm1113_vm3, %v1626_v4, 0.0  ;;  %v1116_v25 = vsel %vm1114_vm4, %v1628_v5, 0.0  ;;  %v1058_v26 = vmul.f32 %v1039_v56, %v1600_v41  ;;  %v1059_v27 = vmul.f32 %v1040_v57, %v1604_v44 }
  0x83   :  { %vm1151_vm5 = vcmp.eq.s32.totalorder %v1630_v7, 26  ;;  %vm1152_vm6 = vcmp.eq.s32.totalorder %v1635_v8, 26  ;;  %v1082_v28 = vadd.f32 %v1081_v21, %v1080_v20  ;;  %v1024_v29 = vadd.f32 %v1023_v23, %v1022_v22 }
  0x84   :  { %855 = vadd.xlane.f32.xlu0 %v854_v30  ;;  %797 = vadd.xlane.f32.xlu1 %v796_v31  ;;  %v1118_v30 = vsel %vm91_vm0, %v1115_v24, 0.0  ;;  %v1119_v31 = vsel %vm91_vm0, %v1116_v25, 0.0  ;;  %v1060_v32 = vsel %vm91_vm0, %v1058_v26, 0.0  ;;  %v1061_v33 = vsel %vm91_vm0, %v1059_v27, 0.0 }
  0x85   :  { %vm1189_vm7 = vcmp.eq.s32.totalorder %v1630_v7, 27  ;;  %vm1190_vm8 = vcmp.eq.s32.totalorder %v1635_v8, 27  ;;  %v1096_v36 = vmul.f32 %v1077_v16, %v1600_v41  ;;  %v1097_v37 = vmul.f32 %v1078_v17, %v1604_v44 }
  0x86   :  { %v1191_v38 = vsel %vm1189_vm7, %v1626_v4, 0.0  ;;  %v1192_v39 = vsel %vm1190_vm8, %v1628_v5, 0.0  ;;  %v1134_v40 = vmul.f32 %v1115_v24, %v1600_v41  ;;  %v1135_v42 = vmul.f32 %v1116_v25, %v1604_v44 }
  0x87   :  { %v1120_v43 = vadd.f32 %v1119_v31, %v1118_v30  ;;  %v1062_v45 = vadd.f32 %v1061_v33, %v1060_v32  ;;  %v1098_v48 = vsel %vm91_vm0, %v1096_v36, 0.0  ;;  %v1099_v49 = vsel %vm91_vm0, %v1097_v37, 0.0 }
  0x88   :  { %893 = vadd.xlane.f32.xlu0 %v892_v34  ;;  %835 = vadd.xlane.f32.xlu1 %v834_v35  ;;  %v1153_v34 = vsel %vm1151_vm5, %v1626_v4, 0.0  ;;  %v1154_v35 = vsel %vm1152_vm6, %v1628_v5, 0.0  ;;  %vm1227_vm9 = vcmp.eq.s32.totalorder %v1630_v7, 28  ;;  %vm1228_vm10 = vcmp.eq.s32.totalorder %v1635_v8, 28 }
  0x89   :  { %v1194_v50 = vsel %vm91_vm0, %v1191_v38, 0.0  ;;  %v1195_v51 = vsel %vm91_vm0, %v1192_v39, 0.0  ;;  %v1136_v52 = vsel %vm91_vm0, %v1134_v40, 0.0  ;;  %v1137_v53 = vsel %vm91_vm0, %v1135_v42, 0.0 }
  0x8a   :  { %v1172_v54 = vmul.f32 %v1153_v34, %v1600_v41  ;;  %v1173_v55 = vmul.f32 %v1154_v35, %v1604_v44  ;;  %v1100_v57 = vadd.f32 %v1099_v49, %v1098_v48  ;;  %v1229_v58 = vsel %vm1227_vm9, %v1626_v4, 0.0 }
  0x8b   :  { %v1230_v59 = vsel %vm1228_vm10, %v1628_v5, 0.0  ;;  %vm1265_vm11 = vcmp.eq.s32.totalorder %v1630_v7, 29  ;;  %vm1266_vm12 = vcmp.eq.s32.totalorder %v1635_v8, 29  ;;  %v1232_v62 = vsel %vm91_vm0, %v1229_v58, 0.0 }
  0x8c   :  { %931 = vadd.xlane.f32.xlu0 %v930_v46  ;;  %873 = vadd.xlane.f32.xlu1 %v872_v47  ;;  %v1156_v46 = vsel %vm91_vm0, %v1153_v34, 0.0  ;;  %v1157_v47 = vsel %vm91_vm0, %v1154_v35, 0.0  ;;  %v1233_v63 = vsel %vm91_vm0, %v1230_v59, 0.0  ;;  %v1174_v0 = vsel %vm91_vm0, %v1172_v54, 0.0 }
  0x8d   :  { %v1158_v56 = vadd.f32 %v1157_v47, %v1156_v46  ;;  %v1175_v2 = vsel %vm91_vm0, %v1173_v55, 0.0  ;;  %v1267_v3 = vsel %vm1265_vm11, %v1626_v4, 0.0  ;;  %v1268_v6 = vsel %vm1266_vm12, %v1628_v5, 0.0 }
  0x8e   :  { %v1210_v10 = vmul.f32 %v1191_v38, %v1600_v41  ;;  %v1211_v11 = vmul.f32 %v1192_v39, %v1604_v44  ;;  %vm1303_vm13 = vcmp.eq.s32.totalorder %v1630_v7, 30  ;;  %vm1304_vm14 = vcmp.eq.s32.totalorder %v1635_v8, 30 }
  0x8f   :  { %v1234_v12 = vadd.f32 %v1233_v63, %v1232_v62  ;;  %v1176_v13 = vadd.f32 %v1175_v2, %v1174_v0  ;;  %v1305_v20 = vsel %vm1303_vm13, %v1626_v4, 0.0  ;;  %v1306_v21 = vsel %vm1304_vm14, %v1628_v5, 0.0 }
  0x90   :  { %969 = vadd.xlane.f32.xlu0 %v968_v60  ;;  %911 = vadd.xlane.f32.xlu1 %v910_v61  ;;  %v1196_v60 = vadd.f32 %v1195_v51, %v1194_v50  ;;  %v1138_v61 = vadd.f32 %v1137_v53, %v1136_v52  ;;  %v1212_v16 = vsel %vm91_vm0, %v1210_v10, 0.0  ;;  %v1213_v17 = vsel %vm91_vm0, %v1211_v11, 0.0 }
  0x91   :  { %vm1341_vm15 = vcmp.eq.s32.totalorder %v1630_v7, 31  ;;  %vm1342_vm1 = vcmp.eq.s32.totalorder %v1635_v8, 31  ;;  %v1214_v23 = vadd.f32 %v1213_v17, %v1212_v16  ;;  %v1308_v24 = vsel %vm91_vm0, %v1305_v20, 0.0 }
  0x92   :  { %v1309_v25 = vsel %vm91_vm0, %v1306_v21, 0.0  ;;  %v1286_v7 = vmul.f32 %v1267_v3, %v1600_v41  ;;  %v1287_v8 = vmul.f32 %v1268_v6, %v1604_v44 }
  0x93   :  { %v1310_v30 = vadd.f32 %v1309_v25, %v1308_v24 }
  0x94   :  { %1007 = vadd.xlane.f32.xlu0 %v1006_v14  ;;  %949 = vadd.xlane.f32.xlu1 %v948_v15  ;;  %v1270_v14 = vsel %vm91_vm0, %v1267_v3, 0.0  ;;  %v1271_v15 = vsel %vm91_vm0, %v1268_v6, 0.0  ;;  %v1288_v34 = vsel %vm91_vm0, %v1286_v7, 0.0  ;;  %v1289_v35 = vsel %vm91_vm0, %v1287_v8, 0.0 }
  0x95   :  { %v1272_v22 = vadd.f32 %v1271_v15, %v1270_v14  ;;  %v1290_v37 = vadd.f32 %v1289_v35, %v1288_v34 }
  0x98   :  { %1045 = vadd.xlane.f32.xlu0 %v1044_v18  ;;  %987 = vadd.xlane.f32.xlu1 %v986_v19  ;;  %v1248_v18 = vmul.f32 %v1229_v58, %v1600_v41  ;;  %v1249_v19 = vmul.f32 %v1230_v59, %v1604_v44 }
  0x9a   :  { %v1250_v26 = vsel %vm91_vm0, %v1248_v18, 0.0  ;;  %v1251_v27 = vsel %vm91_vm0, %v1249_v19, 0.0 }
  0x9b   :  { %v1252_v31 = vadd.f32 %v1251_v27, %v1250_v26 }
  0x9c   :  { %1083 = vadd.xlane.f32.xlu0 %v1082_v28  ;;  %1025 = vadd.xlane.f32.xlu1 %v1024_v29  ;;  %v1343_v28 = vsel %vm1341_vm15, %v1626_v4, 0.0  ;;  %v1344_v29 = vsel %vm1342_vm1, %v1628_v5, 0.0  ;;  %v1324_v4 = vmul.f32 %v1305_v20, %v1600_v41  ;;  %v1325_v5 = vmul.f32 %v1306_v21, %v1604_v44 }
  0x9d   :  { %v1346_v32 = vsel %vm91_vm0, %v1343_v28, 0.0  ;;  %v1347_v33 = vsel %vm91_vm0, %v1344_v29, 0.0  ;;  %v1362_v40 = vmul.f32 %v1343_v28, %v1600_v41  ;;  %v1363_v42 = vmul.f32 %v1344_v29, %v1604_v44 }
  0x9e   :  { %v1348_v36 = vadd.f32 %v1347_v33, %v1346_v32  ;;  %v1326_v38 = vsel %vm91_vm0, %v1324_v4, 0.0  ;;  %v1327_v39 = vsel %vm91_vm0, %v1325_v5, 0.0 }
  0x9f   :  { %v1365_v46 = vsel %vm91_vm0, %v1363_v42, 0.0 }
  0xa0   :  { %1121 = vadd.xlane.f32.xlu0 %v1120_v43  ;;  %1063 = vadd.xlane.f32.xlu1 %v1062_v45  ;;  %v1328_v43 = vadd.f32 %v1327_v39, %v1326_v38  ;;  %v1364_v45 = vsel %vm91_vm0, %v1362_v40, 0.0 }
  0xa1   :  { %v1366_v47 = vadd.f32 %v1365_v46, %v1364_v45 }
  0xa4   :  { %1159 = vadd.xlane.f32.xlu0 %v1158_v56  ;;  %1101 = vadd.xlane.f32.xlu1 %v1100_v57 }
  0xa8   :  { %1197 = vadd.xlane.f32.xlu0 %v1196_v60  ;;  %1139 = vadd.xlane.f32.xlu1 %v1138_v61 }
  0xac   :  { %1235 = vadd.xlane.f32.xlu0 %v1234_v12  ;;  %1177 = vadd.xlane.f32.xlu1 %v1176_v13 }
  0xb0   :  { %1273 = vadd.xlane.f32.xlu0 %v1272_v22  ;;  %1215 = vadd.xlane.f32.xlu1 %v1214_v23 }
  0xb4   :  { %1311 = vadd.xlane.f32.xlu0 %v1310_v30  ;;  %1253 = vadd.xlane.f32.xlu1 %v1252_v31 }
  0xb8   :  { %1349 = vadd.xlane.f32.xlu0 %v1348_v36  ;;  %1291 = vadd.xlane.f32.xlu1 %v1290_v37 }
  0xbc   :  { %1329 = vadd.xlane.f32.xlu1 %v1328_v43 }
  0xc0   :  { %1367 = vadd.xlane.f32.xlu1 %v1366_v47 }
  0xc1   :  { %v115_v48 = vpop.xlane.xlu0 %114 }
  0xc2   :  { %v116_v49 = vrot.slane %v115_v48, 4 }
  0xc4   :  { %v117_v50 = vadd.f32 %v116_v49, %v115_v48 }
  0xc5   :  { %v131_v51 = vpop.xlane.xlu0 %130 }
  0xc6   :  { %v118_v52 = vrot.slane %v117_v50, 2  ;;  %v132_v53 = vrot.slane %v131_v51, 4 }
  0xc8   :  { %v133_v54 = vadd.f32 %v132_v53, %v131_v51  ;;  %v119_v41 = vadd.f32 %v118_v52, %v117_v50 }
  0xca   :  { %v134_v55 = vrot.slane %v133_v54, 2  ;;  %v120_v44 = vrot.slane %v119_v41, 1 }
  0xcc   :  { %v121_v56 = vadd.f32 %v120_v44, %v119_v41  ;;  %v135_v57 = vadd.f32 %v134_v55, %v133_v54 }
  0xcd   :  { %v210_v58 = vpop.xlane.xlu0 %209  ;;  %v172_v59 = vpop.xlane.xlu1 %171 }
  0xce   :  { %1399 = vpush %v121_v56  ;;  %v136_v60 = vrot.slane %v135_v57, 1  ;;  %v211_v61 = vrot.slane %v210_v58, 4  ;;  %v173_v62 = vrot.slane %v172_v59, 4 }
  0xd0   :  { %v137_v63 = vadd.f32 %v136_v60, %v135_v57  ;;  %v212_v0 = vadd.f32 %v211_v61, %v210_v58  ;;  %v174_v2 = vadd.f32 %v173_v62, %v172_v59 }
  0xd1   :  { %v248_v3 = vpop.xlane.xlu0 %247  ;;  %v190_v6 = vpop.xlane.xlu1 %189 }
  0xd2   :  { %1401 = vpush %v137_v63  ;;  %v213_v10 = vrot.slane %v212_v0, 2  ;;  %v175_v11 = vrot.slane %v174_v2, 2  ;;  %v249_v12 = vrot.slane %v248_v3, 4  ;;  %v191_v13 = vrot.slane %v190_v6, 4 }
  0xd4   :  { %v250_v14 = vadd.f32 %v249_v12, %v248_v3  ;;  %v192_v15 = vadd.f32 %v191_v13, %v190_v6  ;;  %v176_v16 = vadd.f32 %v175_v11, %v174_v2  ;;  %v214_v19 = vadd.f32 %v213_v10, %v212_v0 }
  0xd5   :  { %v286_v17 = vpop.xlane.xlu0 %285  ;;  %v228_v18 = vpop.xlane.xlu1 %227 }
  0xd6   :  { %v251_v20 = vrot.slane %v250_v14, 2  ;;  %v193_v21 = vrot.slane %v192_v15, 2  ;;  %v287_v22 = vrot.slane %v286_v17, 4  ;;  %v229_v23 = vrot.slane %v228_v18, 4 }
  0xd7   :  { %v177_v24 = vrot.slane %v176_v16, 1  ;;  %v215_v8 = vrot.slane %v214_v19, 1 }
  0xd8   :  { %v288_v25 = vadd.f32 %v287_v22, %v286_v17  ;;  %v230_v26 = vadd.f32 %v229_v23, %v228_v18  ;;  %v194_v27 = vadd.f32 %v193_v21, %v192_v15  ;;  %v252_v30 = vadd.f32 %v251_v20, %v250_v14 }
  0xd9   :  { %v324_v28 = vpop.xlane.xlu0 %323  ;;  %v266_v29 = vpop.xlane.xlu1 %265  ;;  %v178_v7 = vadd.f32 %v177_v24, %v176_v16  ;;  %v216_v40 = vadd.f32 %v215_v8, %v214_v19 }
  0xda   :  { %v289_v31 = vrot.slane %v288_v25, 2  ;;  %v231_v32 = vrot.slane %v230_v26, 2  ;;  %v325_v33 = vrot.slane %v324_v28, 4  ;;  %v267_v34 = vrot.slane %v266_v29, 4 }
  0xdb   :  { %1407 = vpush %v178_v7  ;;  %v195_v35 = vrot.slane %v194_v27, 1  ;;  %v253_v42 = vrot.slane %v252_v30, 1 }
  0xdc   :  { %v326_v4 = vadd.f32 %v325_v33, %v324_v28  ;;  %v268_v5 = vadd.f32 %v267_v34, %v266_v29  ;;  %v232_v36 = vadd.f32 %v231_v32, %v230_v26  ;;  %v290_v43 = vadd.f32 %v289_v31, %v288_v25 }
  0xdd   :  { %v362_v37 = vpop.xlane.xlu0 %361  ;;  %v304_v38 = vpop.xlane.xlu1 %303  ;;  %v196_v39 = vadd.f32 %v195_v35, %v194_v27  ;;  %v254_v55 = vadd.f32 %v253_v42, %v252_v30 }
  0xde   :  { %v327_v45 = vrot.slane %v326_v4, 2  ;;  %v269_v46 = vrot.slane %v268_v5, 2  ;;  %v363_v47 = vrot.slane %v362_v37, 4  ;;  %v305_v48 = vrot.slane %v304_v38, 4 }
  0xdf   :  { %1409 = vpush %v196_v39  ;;  %v233_v49 = vrot.slane %v232_v36, 1  ;;  %v291_v44 = vrot.slane %v290_v43, 1 }
  0xe0   :  { %v364_v50 = vadd.f32 %v363_v47, %v362_v37  ;;  %v306_v51 = vadd.f32 %v305_v48, %v304_v38  ;;  %1411 = vpush %v216_v40  ;;  %v270_v52 = vadd.f32 %v269_v46, %v268_v5  ;;  %v328_v56 = vadd.f32 %v327_v45, %v326_v4 }
  0xe1   :  { %v400_v53 = vpop.xlane.xlu0 %399  ;;  %v342_v54 = vpop.xlane.xlu1 %341  ;;  %v234_v41 = vadd.f32 %v233_v49, %v232_v36  ;;  %v292_v10 = vadd.f32 %v291_v44, %v290_v43 }
  0xe2   :  { %v365_v57 = vrot.slane %v364_v50, 2  ;;  %v307_v58 = vrot.slane %v306_v51, 2  ;;  %v401_v59 = vrot.slane %v400_v53, 4  ;;  %v343_v60 = vrot.slane %v342_v54, 4 }
  0xe3   :  { %1413 = vpush %v234_v41  ;;  %v271_v61 = vrot.slane %v270_v52, 1  ;;  %v329_v11 = vrot.slane %v328_v56, 1 }
  0xe4   :  { %v402_v62 = vadd.f32 %v401_v59, %v400_v53  ;;  %v344_v63 = vadd.f32 %v343_v60, %v342_v54  ;;  %1415 = vpush %v254_v55  ;;  %v308_v0 = vadd.f32 %v307_v58, %v306_v51  ;;  %v366_v12 = vadd.f32 %v365_v57, %v364_v50 }
  0xe5   :  { %v438_v2 = vpop.xlane.xlu0 %437  ;;  %v380_v3 = vpop.xlane.xlu1 %379  ;;  %v272_v6 = vadd.f32 %v271_v61, %v270_v52  ;;  %v330_v24 = vadd.f32 %v329_v11, %v328_v56 }
  0xe6   :  { %v403_v13 = vrot.slane %v402_v62, 2  ;;  %v345_v14 = vrot.slane %v344_v63, 2  ;;  %v439_v15 = vrot.slane %v438_v2, 4  ;;  %v381_v16 = vrot.slane %v380_v3, 4 }
  0xe7   :  { %1417 = vpush %v272_v6  ;;  %v309_v17 = vrot.slane %v308_v0, 1  ;;  %v367_v25 = vrot.slane %v366_v12, 1 }
  0xe8   :  { %v440_v18 = vadd.f32 %v439_v15, %v438_v2  ;;  %v382_v19 = vadd.f32 %v381_v16, %v380_v3  ;;  %1419 = vpush %v292_v10  ;;  %v346_v20 = vadd.f32 %v345_v14, %v344_v63  ;;  %v404_v26 = vadd.f32 %v403_v13, %v402_v62 }
  0xe9   :  { %v476_v21 = vpop.xlane.xlu0 %475  ;;  %v418_v22 = vpop.xlane.xlu1 %417  ;;  %v310_v23 = vadd.f32 %v309_v17, %v308_v0  ;;  %v368_v4 = vadd.f32 %v367_v25, %v366_v12 }
  0xea   :  { %v441_v27 = vrot.slane %v440_v18, 2  ;;  %v383_v28 = vrot.slane %v382_v19, 2  ;;  %v477_v29 = vrot.slane %v476_v21, 4  ;;  %v419_v7 = vrot.slane %v418_v22, 4 }
  0xeb   :  { %1421 = vpush %v310_v23  ;;  %v347_v8 = vrot.slane %v346_v20, 1  ;;  %v405_v5 = vrot.slane %v404_v26, 1 }
  0xec   :  { %v478_v30 = vadd.f32 %v477_v29, %v476_v21  ;;  %v420_v31 = vadd.f32 %v419_v7, %v418_v22  ;;  %1423 = vpush %v330_v24  ;;  %v384_v32 = vadd.f32 %v383_v28, %v382_v19  ;;  %v442_v36 = vadd.f32 %v441_v27, %v440_v18 }
  0xed   :  { %v514_v33 = vpop.xlane.xlu0 %513  ;;  %v456_v34 = vpop.xlane.xlu1 %455  ;;  %v348_v35 = vadd.f32 %v347_v8, %v346_v20  ;;  %v406_v50 = vadd.f32 %v405_v5, %v404_v26 }
  0xee   :  { %v479_v37 = vrot.slane %v478_v30, 2  ;;  %v421_v38 = vrot.slane %v420_v31, 2  ;;  %v515_v39 = vrot.slane %v514_v33, 4  ;;  %v457_v40 = vrot.slane %v456_v34, 4 }
  0xef   :  { %1425 = vpush %v348_v35  ;;  %v385_v42 = vrot.slane %v384_v32, 1  ;;  %v443_v51 = vrot.slane %v442_v36, 1 }
  0xf0   :  { %v516_v43 = vadd.f32 %v515_v39, %v514_v33  ;;  %v458_v45 = vadd.f32 %v457_v40, %v456_v34  ;;  %1427 = vpush %v368_v4  ;;  %v422_v46 = vadd.f32 %v421_v38, %v420_v31  ;;  %v480_v52 = vadd.f32 %v479_v37, %v478_v30 }
  0xf1   :  { %v552_v47 = vpop.xlane.xlu0 %551  ;;  %v494_v48 = vpop.xlane.xlu1 %493  ;;  %v386_v49 = vadd.f32 %v385_v42, %v384_v32  ;;  %v444_v62 = vadd.f32 %v443_v51, %v442_v36 }
  0xf2   :  { %v517_v53 = vrot.slane %v516_v43, 2  ;;  %v459_v54 = vrot.slane %v458_v45, 2  ;;  %v553_v41 = vrot.slane %v552_v47, 4  ;;  %v495_v55 = vrot.slane %v494_v48, 4 }
  0xf3   :  { %1429 = vpush %v386_v49  ;;  %v423_v44 = vrot.slane %v422_v46, 1  ;;  %v481_v63 = vrot.slane %v480_v52, 1 }
  0xf4   :  { %v554_v56 = vadd.f32 %v553_v41, %v552_v47  ;;  %v496_v57 = vadd.f32 %v495_v55, %v494_v48  ;;  %1431 = vpush %v406_v50  ;;  %v460_v58 = vadd.f32 %v459_v54, %v458_v45  ;;  %v518_v0 = vadd.f32 %v517_v53, %v516_v43 }
  0xf5   :  { %v590_v59 = vpop.xlane.xlu0 %589  ;;  %v532_v60 = vpop.xlane.xlu1 %531  ;;  %v424_v61 = vadd.f32 %v423_v44, %v422_v46  ;;  %v482_v18 = vadd.f32 %v481_v63, %v480_v52  ;;  %v1955_v63 = vand.u32 127, %v39_v1 }
  0xf6   :  { %v555_v2 = vrot.slane %v554_v56, 2  ;;  %v497_v3 = vrot.slane %v496_v57, 2  ;;  %v591_v6 = vrot.slane %v590_v59, 4  ;;  %v533_v10 = vrot.slane %v532_v60, 4 }
  0xf7   :  { %1433 = vpush %v424_v61  ;;  %v461_v11 = vrot.slane %v460_v58, 1  ;;  %v519_v19 = vrot.slane %v518_v0, 1  ;;  %vm167_vm0 = vcmp.eq.s32.totalorder %v1955_v63, 0  ;;  %vm183_vm2 = vcmp.eq.s32.totalorder %v1955_v63, 32 }
  0xf8   :  { %v592_v12 = vadd.f32 %v591_v6, %v590_v59  ;;  %v534_v13 = vadd.f32 %v533_v10, %v532_v60  ;;  %1435 = vpush %v444_v62  ;;  %v498_v14 = vadd.f32 %v497_v3, %v496_v57  ;;  %v556_v20 = vadd.f32 %v555_v2, %v554_v56 }
  0xf9   :  { %v628_v15 = vpop.xlane.xlu0 %627  ;;  %v570_v16 = vpop.xlane.xlu1 %569  ;;  %v462_v17 = vadd.f32 %v461_v11, %v460_v58  ;;  %v520_v30 = vadd.f32 %v519_v19, %v518_v0  ;;  %vm205_vm3 = vcmp.eq.s32.totalorder %v1955_v63, 1  ;;  %vm221_vm4 = vcmp.eq.s32.totalorder %v1955_v63, 33 }
  0xfa   :  { %v593_v21 = vrot.slane %v592_v12, 2  ;;  %v535_v22 = vrot.slane %v534_v13, 2  ;;  %v629_v23 = vrot.slane %v628_v15, 4  ;;  %v571_v24 = vrot.slane %v570_v16, 4 }
  0xfb   :  { %1437 = vpush %v462_v17  ;;  %v499_v25 = vrot.slane %v498_v14, 1  ;;  %v557_v31 = vrot.slane %v556_v20, 1  ;;  %vm243_vm5 = vcmp.eq.s32.totalorder %v1955_v63, 2  ;;  %vm259_vm6 = vcmp.eq.s32.totalorder %v1955_v63, 34 }
  0xfc   :  { %v630_v26 = vadd.f32 %v629_v23, %v628_v15  ;;  %v572_v27 = vadd.f32 %v571_v24, %v570_v16  ;;  %1439 = vpush %v482_v18  ;;  %v536_v28 = vadd.f32 %v535_v22, %v534_v13  ;;  %v594_v32 = vadd.f32 %v593_v21, %v592_v12 }
  0xfd   :  { %v666_v29 = vpop.xlane.xlu0 %665  ;;  %v608_v7 = vpop.xlane.xlu1 %607  ;;  %v500_v8 = vadd.f32 %v499_v25, %v498_v14  ;;  %v558_v43 = vadd.f32 %v557_v31, %v556_v20  ;;  %vm281_vm7 = vcmp.eq.s32.totalorder %v1955_v63, 3  ;;  %vm297_vm8 = vcmp.eq.s32.totalorder %v1955_v63, 35 }
  0xfe   :  { %v631_v33 = vrot.slane %v630_v26, 2  ;;  %v573_v34 = vrot.slane %v572_v27, 2  ;;  %v667_v35 = vrot.slane %v666_v29, 4  ;;  %v609_v4 = vrot.slane %v608_v7, 4 }
  0xff   :  { %1441 = vpush %v500_v8  ;;  %v537_v5 = vrot.slane %v536_v28, 1  ;;  %v595_v45 = vrot.slane %v594_v32, 1  ;;  %s1958_s25 = spop %1399  ;;  %vm319_vm9 = vcmp.eq.s32.totalorder %v1955_v63, 4  ;;  %vm335_vm10 = vcmp.eq.s32.totalorder %v1955_v63, 36 }
 0x100   :  { %v668_v36 = vadd.f32 %v667_v35, %v666_v29  ;;  %v610_v37 = vadd.f32 %v609_v4, %v608_v7  ;;  %1443 = vpush %v520_v30  ;;  %v574_v38 = vadd.f32 %v573_v34, %v572_v27  ;;  %v632_v46 = vadd.f32 %v631_v33, %v630_v26 }
 0x101   :  { %v704_v39 = vpop.xlane.xlu0 %703  ;;  %v646_v40 = vpop.xlane.xlu1 %645  ;;  %v538_v42 = vadd.f32 %v537_v5, %v536_v28  ;;  %v596_v56 = vadd.f32 %v595_v45, %v594_v32  ;;  %vm357_vm11 = vcmp.eq.s32.totalorder %v1955_v63, 5  ;;  %vm373_vm12 = vcmp.eq.s32.totalorder %v1955_v63, 37 }
 0x102   :  { %v669_v47 = vrot.slane %v668_v36, 2  ;;  %v611_v48 = vrot.slane %v610_v37, 2  ;;  %v705_v49 = vrot.slane %v704_v39, 4  ;;  %v647_v50 = vrot.slane %v646_v40, 4 }
 0x103   :  { %1445 = vpush %v538_v42  ;;  %v575_v51 = vrot.slane %v574_v38, 1  ;;  %v633_v57 = vrot.slane %v632_v46, 1  ;;  %s1960_s26 = spop %1401  ;;  %vm395_vm13 = vcmp.eq.s32.totalorder %v1955_v63, 6  ;;  %vm411_vm14 = vcmp.eq.s32.totalorder %v1955_v63, 38 }
 0x104   :  { %v706_v52 = vadd.f32 %v705_v49, %v704_v39  ;;  %v648_v53 = vadd.f32 %v647_v50, %v646_v40  ;;  %1447 = vpush %v558_v43  ;;  %v612_v54 = vadd.f32 %v611_v48, %v610_v37  ;;  %v670_v58 = vadd.f32 %v669_v47, %v668_v36 }
 0x105   :  { %v742_v41 = vpop.xlane.xlu0 %741  ;;  %v684_v55 = vpop.xlane.xlu1 %683  ;;  %v576_v44 = vadd.f32 %v575_v51, %v574_v38  ;;  %v634_v14 = vadd.f32 %v633_v57, %v632_v46  ;;  %vm433_vm15 = vcmp.eq.s32.totalorder %v1955_v63, 7  ;;  %vm449_vm1 = vcmp.eq.s32.totalorder %v1955_v63, 39 }
 0x106   :  { %v707_v59 = vrot.slane %v706_v52, 2  ;;  %v649_v60 = vrot.slane %v648_v53, 2  ;;  %v743_v61 = vrot.slane %v742_v41, 4  ;;  %v685_v62 = vrot.slane %v684_v55, 4 }
 0x107   :  { %1449 = vpush %v576_v44  ;;  %v613_v0 = vrot.slane %v612_v54, 1  ;;  %v671_v15 = vrot.slane %v670_v58, 1 }
 0x108   :  { %v744_v2 = vadd.f32 %v743_v61, %v742_v41  ;;  %v686_v3 = vadd.f32 %v685_v62, %v684_v55  ;;  %1451 = vpush %v596_v56  ;;  %v650_v6 = vadd.f32 %v649_v60, %v648_v53  ;;  %v708_v10 = vadd.f32 %v707_v59, %v706_v52 }
 0x109   :  { %v780_v11 = vpop.xlane.xlu0 %779  ;;  %v722_v12 = vpop.xlane.xlu1 %721  ;;  %v614_v13 = vadd.f32 %v613_v0, %v612_v54  ;;  %v672_v30 = vadd.f32 %v671_v15, %v670_v58 }
 0x10a   :  { %v745_v16 = vrot.slane %v744_v2, 2  ;;  %v687_v17 = vrot.slane %v686_v3, 2  ;;  %v781_v1 = vrot.slane %v780_v11, 4  ;;  %v723_v18 = vrot.slane %v722_v12, 4 }
 0x10b   :  { %1453 = vpush %v614_v13  ;;  %v651_v19 = vrot.slane %v650_v6, 1  ;;  %v709_v20 = vrot.slane %v708_v10, 1 }
 0x10c   :  { %v782_v21 = vadd.f32 %v781_v1, %v780_v11  ;;  %v724_v22 = vadd.f32 %v723_v18, %v722_v12  ;;  %1455 = vpush %v634_v14  ;;  %s1408_s27 = spop %1407  ;;  %v688_v23 = vadd.f32 %v687_v17, %v686_v3  ;;  %v746_v24 = vadd.f32 %v745_v16, %v744_v2 }
 0x10d   :  { %v180_v25 = vstv %s1408_s27  ;;  %v818_v26 = vpop.xlane.xlu0 %817  ;;  %v760_v27 = vpop.xlane.xlu1 %759  ;;  %v652_v28 = vadd.f32 %v651_v19, %v650_v6  ;;  %v710_v33 = vadd.f32 %v709_v20, %v708_v10 }
 0x10e   :  { %v783_v29 = vrot.slane %v782_v21, 2  ;;  %v725_v7 = vrot.slane %v724_v22, 2  ;;  %v819_v8 = vrot.slane %v818_v26, 4  ;;  %v761_v31 = vrot.slane %v760_v27, 4 }
 0x10f   :  { %1457 = vpush %v652_v28  ;;  %v689_v32 = vrot.slane %v688_v23, 1  ;;  %v747_v34 = vrot.slane %v746_v24, 1  ;;  %v181_v35 = vsel %vm167_vm0, %v180_v25, 0.0  ;;  %vm471_vm0 = vcmp.eq.s32.totalorder %v1955_v63, 8 }
 0x110   :  { %v820_v4 = vadd.f32 %v819_v8, %v818_v26  ;;  %1459 = vpush %v672_v30  ;;  %s1410_s28 = spop %1409  ;;  %v726_v5 = vadd.f32 %v725_v7, %v724_v22  ;;  %v784_v36 = vadd.f32 %v783_v29, %v782_v21  ;;  %v762_v37 = vadd.f32 %v761_v31, %v760_v27 }
 0x111   :  { %v198_v38 = vstv %s1410_s28  ;;  %s1412_s29 = spop %1411  ;;  %v856_v39 = vpop.xlane.xlu0 %855  ;;  %v798_v40 = vpop.xlane.xlu1 %797  ;;  %v690_v42 = vadd.f32 %v689_v32, %v688_v23  ;;  %v748_v43 = vadd.f32 %v747_v34, %v746_v24 }
 0x112   :  { %v821_v45 = vrot.slane %v820_v4, 2  ;;  %v199_v46 = vsel %vm183_vm2, %v198_v38, 0.0  ;;  %v218_v47 = vstv %s1412_s29  ;;  %v857_v48 = vrot.slane %v856_v39, 4 }
 0x113   :  { %v763_v49 = vrot.slane %v762_v37, 2  ;;  %v200_v50 = vadd.f32 %v199_v46, %v181_v35  ;;  %v219_v51 = vsel %vm205_vm3, %v218_v47, 0.0  ;;  %v799_v52 = vrot.slane %v798_v40, 4  ;;  %1461 = vpush %v690_v42 }
 0x114   :  { %v1975_v53 = vadd.f32 %v857_v48, %v856_v39  ;;  %1463 = vpush %v710_v33  ;;  %s1414_s30 = spop %1413  ;;  %v727_v54 = vrot.slane %v726_v5, 1  ;;  %v785_v41 = vrot.slane %v784_v36, 1  ;;  %v1978_v55 = vadd.f32 %v821_v45, %v820_v4 }
 0x115   :  { %v220_v44 = vadd.f32 %v219_v51, %v200_v50  ;;  %v800_v56 = vadd.f32 %v799_v52, %v798_v40  ;;  %v236_v57 = vstv %s1414_s30  ;;  %s1416_s5 = spop %1415  ;;  %v894_v58 = vpop.xlane.xlu0 %893  ;;  %v836_v59 = vpop.xlane.xlu1 %835  ;;  %v764_v60 = vadd.f32 %v763_v49, %v762_v37 }
 0x116   :  { %v859_v61 = vrot.slane %v1975_v53, 2  ;;  %v237_v62 = vsel %vm221_vm4, %v236_v57, 0.0  ;;  %v256_v0 = vstv %s1416_s5  ;;  %v895_v2 = vrot.slane %v894_v58, 4 }
 0x117   :  { %v801_v3 = vrot.slane %v800_v56, 2  ;;  %v238_v6 = vadd.f32 %v237_v62, %v220_v44  ;;  %v257_v10 = vsel %vm243_vm5, %v256_v0, 0.0  ;;  %v837_v11 = vrot.slane %v836_v59, 4 }
 0x118   :  { %v1986_v12 = vadd.f32 %v895_v2, %v894_v58  ;;  %v728_v13 = vadd.f32 %v727_v54, %v726_v5  ;;  %s1418_s6 = spop %1417  ;;  %v765_v14 = vrot.slane %v764_v60, 1  ;;  %v786_v15 = vadd.f32 %v785_v41, %v784_v36 }
 0x119   :  { %v258_v16 = vadd.f32 %v257_v10, %v238_v6  ;;  %v838_v17 = vadd.f32 %v837_v11, %v836_v59  ;;  %v274_v1 = vstv %s1418_s6  ;;  %s1420_s7 = spop %1419  ;;  %v932_v18 = vpop.xlane.xlu0 %931  ;;  %v874_v19 = vpop.xlane.xlu1 %873  ;;  %v802_v20 = vadd.f32 %v801_v3, %v800_v56 }
 0x11a   :  { %v897_v21 = vrot.slane %v1986_v12, 2  ;;  %1465 = vpush %v728_v13  ;;  %v275_v22 = vsel %vm259_vm6, %v274_v1, 0.0  ;;  %v294_v23 = vstv %s1420_s7  ;;  %v933_v24 = vrot.slane %v932_v18, 4 }
 0x11b   :  { %v839_v25 = vrot.slane %v838_v17, 2  ;;  %1467 = vpush %v748_v43  ;;  %v276_v26 = vadd.f32 %v275_v22, %v258_v16  ;;  %v295_v27 = vsel %vm281_vm7, %v294_v23, 0.0  ;;  %v875_v28 = vrot.slane %v874_v19, 4 }
 0x11c   :  { %v1995_v29 = vadd.f32 %v933_v24, %v932_v18  ;;  %v766_v7 = vadd.f32 %v765_v14, %v764_v60  ;;  %s1422_s8 = spop %1421  ;;  %v803_v8 = vrot.slane %v802_v20, 1  ;;  %v823_v30 = vrot.slane %v1978_v55, 1 }
 0x11d   :  { %v296_v31 = vadd.f32 %v295_v27, %v276_v26  ;;  %v876_v32 = vadd.f32 %v875_v28, %v874_v19  ;;  %v312_v33 = vstv %s1422_s8  ;;  %s1424_s9 = spop %1423  ;;  %v970_v34 = vpop.xlane.xlu0 %969  ;;  %v912_v35 = vpop.xlane.xlu1 %911  ;;  %v840_v4 = vadd.f32 %v839_v25, %v838_v17 }
 0x11e   :  { %v935_v5 = vrot.slane %v1995_v29, 2  ;;  %1469 = vpush %v766_v7  ;;  %v313_v36 = vsel %vm297_vm8, %v312_v33, 0.0  ;;  %v332_v37 = vstv %s1424_s9  ;;  %v971_v38 = vrot.slane %v970_v34, 4 }
 0x11f   :  { %v877_v39 = vrot.slane %v876_v32, 2  ;;  %1471 = vpush %v786_v15  ;;  %v314_v40 = vadd.f32 %v313_v36, %v296_v31  ;;  %v333_v42 = vsel %vm319_vm9, %v332_v37, 0.0  ;;  %v913_v43 = vrot.slane %v912_v35, 4 }
 0x120   :  { %v2005_v45 = vadd.f32 %v971_v38, %v970_v34  ;;  %v804_v46 = vadd.f32 %v803_v8, %v802_v20  ;;  %v824_v47 = vadd.f32 %v823_v30, %v1978_v55  ;;  %s1426_s10 = spop %1425  ;;  %v841_v48 = vrot.slane %v840_v4, 1 }
 0x121   :  { %v334_v49 = vadd.f32 %v333_v42, %v314_v40  ;;  %v914_v50 = vadd.f32 %v913_v43, %v912_v35  ;;  %v350_v51 = vstv %s1426_s10  ;;  %s1428_s11 = spop %1427  ;;  %v1008_v52 = vpop.xlane.xlu0 %1007  ;;  %v950_v54 = vpop.xlane.xlu1 %949  ;;  %v860_v41 = vadd.f32 %v859_v61, %v1975_v53 }
 0x122   :  { %v973_v44 = vrot.slane %v2005_v45, 2  ;;  %1473 = vpush %v804_v46  ;;  %v351_v55 = vsel %vm335_vm10, %v350_v51, 0.0  ;;  %v370_v56 = vstv %s1428_s11  ;;  %v1009_v57 = vrot.slane %v1008_v52, 4 }
 0x123   :  { %v915_v58 = vrot.slane %v914_v50, 2  ;;  %1475 = vpush %v824_v47  ;;  %v352_v59 = vadd.f32 %v351_v55, %v334_v49  ;;  %v371_v60 = vsel %vm357_vm11, %v370_v56, 0.0  ;;  %v951_v62 = vrot.slane %v950_v54, 4 }
 0x124   :  { %v2018_v53 = vadd.f32 %v1009_v57, %v1008_v52  ;;  %v842_v61 = vadd.f32 %v841_v48, %v840_v4  ;;  %v861_v0 = vrot.slane %v860_v41, 1  ;;  %s1430_s12 = spop %1429  ;;  %v878_v2 = vadd.f32 %v877_v39, %v876_v32 }
 0x125   :  { %v372_v3 = vadd.f32 %v371_v60, %v352_v59  ;;  %v2021_v6 = vadd.f32 %v951_v62, %v950_v54  ;;  %v388_v10 = vstv %s1430_s12  ;;  %s1432_s13 = spop %1431  ;;  %v1046_v11 = vpop.xlane.xlu0 %1045  ;;  %v988_v13 = vpop.xlane.xlu1 %987  ;;  %v898_v14 = vadd.f32 %v897_v21, %v1986_v12 }
 0x126   :  { %v1011_v15 = vrot.slane %v2018_v53, 2  ;;  %1477 = vpush %v842_v61  ;;  %v862_v16 = vadd.f32 %v861_v0, %v860_v41  ;;  %v389_v17 = vsel %vm373_vm12, %v388_v10, 0.0  ;;  %v408_v1 = vstv %s1432_s13 }
 0x127   :  { %v953_v18 = vrot.slane %v2021_v6, 2  ;;  %v390_v19 = vadd.f32 %v389_v17, %v372_v3  ;;  %v409_v20 = vsel %vm395_vm13, %v408_v1, 0.0  ;;  %v1047_v22 = vrot.slane %v1046_v11, 4 }
 0x128   :  { %vm487_vm2 = vcmp.eq.s32.totalorder %v1955_v63, 40  ;;  %1479 = vpush %v862_v16  ;;  %v989_v23 = vrot.slane %v988_v13, 4  ;;  %v879_v12 = vrot.slane %v878_v2, 1  ;;  %v899_v21 = vrot.slane %v898_v14, 1  ;;  %s1434_s14 = spop %1433 }
 0x129   :  { %v916_v24 = vadd.f32 %v915_v58, %v914_v50  ;;  %v410_v25 = vadd.f32 %v409_v20, %v390_v19  ;;  %v2033_v26 = vadd.f32 %v1047_v22, %v1046_v11  ;;  %v426_v27 = vstv %s1434_s14  ;;  %s1436_s15 = spop %1435  ;;  %v1084_v28 = vpop.xlane.xlu0 %1083  ;;  %v1026_v7 = vpop.xlane.xlu1 %1025 }
 0x12a   :  { %v936_v8 = vadd.f32 %v935_v5, %v1995_v29  ;;  %vm509_vm3 = vcmp.eq.s32.totalorder %v1955_v63, 9  ;;  %v990_v30 = vadd.f32 %v989_v23, %v988_v13  ;;  %v880_v31 = vadd.f32 %v879_v12, %v878_v2 }
 0x12b   :  { %v900_v32 = vadd.f32 %v899_v21, %v898_v14  ;;  %v427_v33 = vsel %vm411_vm14, %v426_v27, 0.0  ;;  %v1049_v34 = vrot.slane %v2033_v26, 2  ;;  %v446_v4 = vstv %s1436_s15 }
 0x12c   :  { %v428_v35 = vadd.f32 %v427_v33, %v410_v25  ;;  %v1085_v36 = vrot.slane %v1084_v28, 4  ;;  %v991_v37 = vrot.slane %v990_v30, 2  ;;  %1481 = vpush %v880_v31  ;;  %v447_v38 = vsel %vm433_vm15, %v446_v4, 0.0  ;;  %s1438_s16 = spop %1437 }
 0x12d   :  { %v1027_v39 = vrot.slane %v1026_v7, 4  ;;  %v917_v29 = vrot.slane %v916_v24, 1  ;;  %vm525_vm4 = vcmp.eq.s32.totalorder %v1955_v63, 41  ;;  %vm547_vm5 = vcmp.eq.s32.totalorder %v1955_v63, 10  ;;  %1483 = vpush %v900_v32  ;;  %s1440_s17 = spop %1439  ;;  %v1122_v46 = vpop.xlane.xlu0 %1121  ;;  %v1064_v47 = vpop.xlane.xlu1 %1063 }
 0x12e   :  { %v448_v5 = vadd.f32 %v447_v38, %v428_v35  ;;  %v2046_v40 = vadd.f32 %v1085_v36, %v1084_v28  ;;  %v937_v42 = vrot.slane %v936_v8, 1  ;;  %v464_v43 = vstv %s1438_s16 }
 0x12f   :  { %v2048_v48 = vadd.f32 %v1027_v39, %v1026_v7  ;;  %v918_v49 = vadd.f32 %v917_v29, %v916_v24  ;;  %v465_v50 = vsel %vm449_vm1, %v464_v43, 0.0  ;;  %v484_v51 = vstv %s1440_s17 }
 0x130   :  { %v1087_v52 = vrot.slane %v2046_v40, 2  ;;  %v938_v54 = vadd.f32 %v937_v42, %v936_v8  ;;  %v466_v41 = vadd.f32 %v465_v50, %v448_v5  ;;  %v485_v55 = vsel %vm471_vm0, %v484_v51, 0.0  ;;  %s1442_s18 = spop %1441 }
 0x131   :  { %v1029_v56 = vrot.slane %v2048_v48, 2  ;;  %1485 = vpush %v918_v49  ;;  %v1123_v57 = vrot.slane %v1122_v46, 4  ;;  %v1065_v58 = vrot.slane %v1064_v47, 4  ;;  %v954_v59 = vadd.f32 %v953_v18, %v2021_v6  ;;  %s1444_s19 = spop %1443  ;;  %v1160_v0 = vpop.xlane.xlu0 %1159  ;;  %v1102_v2 = vpop.xlane.xlu1 %1101 }
 0x132   :  { %vm563_vm6 = vcmp.eq.s32.totalorder %v1955_v63, 42  ;;  %1487 = vpush %v938_v54  ;;  %v486_v60 = vadd.f32 %v485_v55, %v466_v41  ;;  %v974_v62 = vadd.f32 %v973_v44, %v2005_v45  ;;  %v502_v61 = vstv %s1442_s18 }
 0x133   :  { %v992_v3 = vadd.f32 %v991_v37, %v990_v30  ;;  %v2061_v10 = vadd.f32 %v1123_v57, %v1122_v46  ;;  %v2063_v11 = vadd.f32 %v1065_v58, %v1064_v47  ;;  %v955_v13 = vrot.slane %v954_v59, 1 }
 0x134   :  { %v503_v6 = vsel %vm487_vm2, %v502_v61, 0.0  ;;  %vm585_vm7 = vcmp.eq.s32.totalorder %v1955_v63, 11  ;;  %v975_v14 = vrot.slane %v974_v62, 1  ;;  %v522_v17 = vstv %s1444_s19  ;;  %s1446_s20 = spop %1445 }
 0x135   :  { %v504_v16 = vadd.f32 %v503_v6, %v486_v60  ;;  %v1161_v1 = vrot.slane %v1160_v0, 4  ;;  %v1125_v45 = vrot.slane %v2061_v10, 2  ;;  %v1067_v44 = vrot.slane %v2063_v11, 2  ;;  %s1448_s21 = spop %1447  ;;  %v1198_v21 = vpop.xlane.xlu0 %1197  ;;  %v1140_v24 = vpop.xlane.xlu1 %1139 }
 0x136   :  { %v956_v18 = vadd.f32 %v955_v13, %v954_v59  ;;  %v523_v19 = vsel %vm509_vm3, %v522_v17, 0.0  ;;  %v976_v20 = vadd.f32 %v975_v14, %v974_v62  ;;  %v1103_v12 = vrot.slane %v1102_v2, 4 }
 0x137   :  { %v524_v22 = vadd.f32 %v523_v19, %v504_v16  ;;  %v2072_v23 = vadd.f32 %v1161_v1, %v1160_v0  ;;  %vm601_vm8 = vcmp.eq.s32.totalorder %v1955_v63, 43  ;;  %v993_v25 = vrot.slane %v992_v3, 1 }
 0x138   :  { %1489 = vpush %v956_v18  ;;  %v1012_v27 = vadd.f32 %v1011_v15, %v2018_v53  ;;  %v540_v28 = vstv %s1446_s20  ;;  %v560_v7 = vstv %s1448_s21  ;;  %vm623_vm9 = vcmp.eq.s32.totalorder %v1955_v63, 12  ;;  %s1450_s0 = spop %1449 }
 0x139   :  { %1491 = vpush %v976_v20  ;;  %v1163_v8 = vrot.slane %v2072_v23, 2  ;;  %v2080_v30 = vadd.f32 %v1103_v12, %v1102_v2  ;;  %v541_v31 = vsel %vm525_vm4, %v540_v28, 0.0  ;;  %v561_v32 = vsel %vm547_vm5, %v560_v7, 0.0  ;;  %s1452_s22 = spop %1451  ;;  %v1236_v39 = vpop.xlane.xlu0 %1235  ;;  %v1178_v29 = vpop.xlane.xlu1 %1177 }
 0x13a   :  { %v994_v33 = vadd.f32 %v993_v25, %v992_v3  ;;  %v1013_v35 = vrot.slane %v1012_v27, 1  ;;  %v542_v4 = vadd.f32 %v541_v31, %v524_v22  ;;  %v1199_v36 = vrot.slane %v1198_v21, 4 }
 0x13b   :  { %v1105_v53 = vrot.slane %v2080_v30, 2  ;;  %v1141_v15 = vrot.slane %v1140_v24, 4  ;;  %v1030_v37 = vadd.f32 %v1029_v56, %v2048_v48  ;;  %v1050_v38 = vadd.f32 %v1049_v34, %v2033_v26 }
 0x13c   :  { %1493 = vpush %v994_v33  ;;  %v1014_v5 = vadd.f32 %v1013_v35, %v1012_v27  ;;  %v562_v42 = vadd.f32 %v561_v32, %v542_v4  ;;  %v2091_v43 = vadd.f32 %v1199_v36, %v1198_v21  ;;  %v578_v46 = vstv %s1450_s0  ;;  %s1454_s23 = spop %1453 }
 0x13d   :  { %vm639_vm10 = vcmp.eq.s32.totalorder %v1955_v63, 44  ;;  %vm661_vm11 = vcmp.eq.s32.totalorder %v1955_v63, 13  ;;  %v2095_v47 = vadd.f32 %v1141_v15, %v1140_v24  ;;  %v1031_v48 = vrot.slane %v1030_v37, 1  ;;  %s1456_s24 = spop %1455  ;;  %v1274_v58 = vpop.xlane.xlu0 %1273  ;;  %v1216_v59 = vpop.xlane.xlu1 %1215 }
 0x13e   :  { %v1051_v49 = vrot.slane %v1050_v38, 1  ;;  %v579_v26 = vsel %vm563_vm6, %v578_v46, 0.0  ;;  %1495 = vpush %v1014_v5  ;;  %v1201_v34 = vrot.slane %v2091_v43, 2  ;;  %v598_v51 = vstv %s1452_s22 }
 0x13f   :  { %v580_v50 = vadd.f32 %v579_v26, %v562_v42  ;;  %v1237_v54 = vrot.slane %v1236_v39, 4  ;;  %v1143_v41 = vrot.slane %v2095_v47, 2  ;;  %v1032_v55 = vadd.f32 %v1031_v48, %v1030_v37 }
 0x140   :  { %v1052_v56 = vadd.f32 %v1051_v49, %v1050_v38  ;;  %v599_v57 = vsel %vm585_vm7, %v598_v51, 0.0  ;;  %v1179_v61 = vrot.slane %v1178_v29, 4  ;;  %v1068_v0 = vadd.f32 %v1067_v44, %v2063_v11  ;;  %s1458_s1 = spop %1457 }
 0x141   :  { %v600_v60 = vadd.f32 %v599_v57, %v580_v50  ;;  %v2103_v62 = vadd.f32 %v1237_v54, %v1236_v39  ;;  %vm677_vm12 = vcmp.eq.s32.totalorder %v1955_v63, 45  ;;  %1497 = vpush %v1032_v55  ;;  %v1088_v2 = vadd.f32 %v1087_v52, %v2046_v40  ;;  %s1460_s2 = spop %1459  ;;  %v1312_v18 = vpop.xlane.xlu0 %1311  ;;  %v1254_v19 = vpop.xlane.xlu1 %1253 }
 0x142   :  { %v616_v3 = vstv %s1454_s23  ;;  %v636_v13 = vstv %s1456_s24  ;;  %v1275_v6 = vrot.slane %v1274_v58, 4  ;;  %vm699_vm13 = vcmp.eq.s32.totalorder %v1955_v63, 14  ;;  %1499 = vpush %v1052_v56 }
 0x143   :  { %v1239_v14 = vrot.slane %v2103_v62, 2  ;;  %v2112_v16 = vadd.f32 %v1179_v61, %v1178_v29  ;;  %v1069_v17 = vrot.slane %v1068_v0, 1  ;;  %v617_v11 = vsel %vm601_vm8, %v616_v3, 0.0 }
 0x144   :  { %v1089_v1 = vrot.slane %v1088_v2, 1  ;;  %v618_v44 = vadd.f32 %v617_v11, %v600_v60  ;;  %v637_v40 = vsel %vm623_vm9, %v636_v13, 0.0  ;;  %v2118_v52 = vadd.f32 %v1275_v6, %v1274_v58  ;;  %s1462_s3 = spop %1461 }
 0x145   :  { %v1181_v20 = vrot.slane %v2112_v16, 2  ;;  %v1070_v22 = vadd.f32 %v1069_v17, %v1068_v0  ;;  %v1217_v12 = vrot.slane %v1216_v59, 4  ;;  %v1106_v21 = vadd.f32 %v1105_v53, %v2080_v30  ;;  %s1464_s27 = spop %1463  ;;  %v1350_v42 = vpop.xlane.xlu0 %1349 }
 0x146   :  { %vm715_vm14 = vcmp.eq.s32.totalorder %v1955_v63, 46  ;;  %v1090_v24 = vadd.f32 %v1089_v1, %v1088_v2  ;;  %v638_v25 = vadd.f32 %v637_v40, %v618_v44  ;;  %v1277_v27 = vrot.slane %v2118_v52, 2 }
 0x147   :  { %v1126_v28 = vadd.f32 %v1125_v45, %v2061_v10  ;;  %vm737_vm15 = vcmp.eq.s32.totalorder %v1955_v63, 15  ;;  %1501 = vpush %v1070_v22  ;;  %v2128_v7 = vadd.f32 %v1217_v12, %v1216_v59  ;;  %v1107_v31 = vrot.slane %v1106_v21, 1  ;;  %v1292_v10 = vpop.xlane.xlu1 %1291 }
 0x148   :  { %v654_v32 = vstv %s1458_s1  ;;  %v674_v33 = vstv %s1460_s2  ;;  %1503 = vpush %v1090_v24  ;;  %v1313_v36 = vrot.slane %v1312_v18, 4  ;;  %v1255_v37 = vrot.slane %v1254_v19, 4 }
 0x149   :  { %v1127_v30 = vrot.slane %v1126_v28, 1  ;;  %v655_v35 = vsel %vm639_vm10, %v654_v32, 0.0  ;;  %v675_v4 = vsel %vm661_vm11, %v674_v33, 0.0  ;;  %v1219_v45 = vrot.slane %v2128_v7, 2 }
 0x14a   :  { %v1108_v53 = vadd.f32 %v1107_v31, %v1106_v21  ;;  %v656_v15 = vadd.f32 %v655_v35, %v638_v25  ;;  %v2135_v39 = vadd.f32 %v1313_v36, %v1312_v18  ;;  %v1144_v29 = vadd.f32 %v1143_v41, %v2095_v47 }
 0x14b   :  { %v1128_v38 = vadd.f32 %v1127_v30, %v1126_v28  ;;  %v1164_v5 = vadd.f32 %v1163_v8, %v2072_v23  ;;  %vm753_vm1 = vcmp.eq.s32.totalorder %v1955_v63, 47  ;;  %vm775_vm0 = vcmp.eq.s32.totalorder %v1955_v63, 16  ;;  %v1330_v41 = vpop.xlane.xlu1 %1329  ;;  %s1466_s28 = spop %1465 }
 0x14c   :  { %1505 = vpush %v1108_v53  ;;  %v676_v46 = vadd.f32 %v675_v4, %v656_v15  ;;  %v1256_v48 = vadd.f32 %v1255_v37, %v1254_v19  ;;  %v692_v49 = vstv %s1462_s3  ;;  %v712_v26 = vstv %s1464_s27  ;;  %s1468_s29 = spop %1467 }
 0x14d   :  { %1507 = vpush %v1128_v38  ;;  %v1315_v50 = vrot.slane %v2135_v39, 2  ;;  %v1145_v51 = vrot.slane %v1144_v29, 1  ;;  %v1165_v54 = vrot.slane %v1164_v5, 1  ;;  %v693_v47 = vsel %vm677_vm12, %v692_v49, 0.0 }
 0x14e   :  { %v1257_v23 = vrot.slane %v1256_v48, 2  ;;  %v694_v8 = vadd.f32 %v693_v47, %v676_v46  ;;  %v713_v55 = vsel %vm699_vm13, %v712_v26, 0.0  ;;  %v1351_v56 = vrot.slane %v1350_v42, 4 }
 0x14f   :  { %vm791_vm2 = vcmp.eq.s32.totalorder %v1955_v63, 48  ;;  %v1146_v57 = vadd.f32 %v1145_v51, %v1144_v29  ;;  %v1166_v58 = vadd.f32 %v1165_v54, %v1164_v5  ;;  %v1293_v59 = vrot.slane %v1292_v10, 4  ;;  %s1470_s30 = spop %1469 }
 0x150   :  { %v1182_v60 = vadd.f32 %v1181_v20, %v2112_v16  ;;  %vm813_vm3 = vcmp.eq.s32.totalorder %v1955_v63, 17  ;;  %v714_v61 = vadd.f32 %v713_v55, %v694_v8  ;;  %v1352_v0 = vadd.f32 %v1351_v56, %v1350_v42  ;;  %v1368_v20 = vpop.xlane.xlu1 %1367  ;;  %s1472_s5 = spop %1471 }
 0x151   :  { %v1202_v2 = vadd.f32 %v1201_v34, %v2091_v43  ;;  %v730_v3 = vstv %s1466_s28  ;;  %1509 = vpush %v1146_v57  ;;  %v1294_v13 = vadd.f32 %v1293_v59, %v1292_v10  ;;  %v750_v11 = vstv %s1468_s29 }
 0x152   :  { %v1183_v6 = vrot.slane %v1182_v60, 1  ;;  %v731_v17 = vsel %vm715_vm14, %v730_v3, 0.0  ;;  %1511 = vpush %v1166_v58  ;;  %v1353_v16 = vrot.slane %v1352_v0, 2  ;;  %v751_v40 = vsel %vm737_vm15, %v750_v11, 0.0 }
 0x153   :  { %v1203_v1 = vrot.slane %v1202_v2, 1  ;;  %v732_v44 = vadd.f32 %v731_v17, %v714_v61  ;;  %vm829_vm4 = vcmp.eq.s32.totalorder %v1955_v63, 49  ;;  %v1295_v18 = vrot.slane %v1294_v13, 2  ;;  %s1474_s6 = spop %1473 }
 0x154   :  { %v1184_v43 = vadd.f32 %v1183_v6, %v1182_v60  ;;  %v1331_v34 = vrot.slane %v1330_v41, 4  ;;  %v1220_v19 = vadd.f32 %v1219_v45, %v2128_v7  ;;  %v2160_v22 = vadd.f32 %v1353_v16, %v1352_v0  ;;  %s1476_s7 = spop %1475 }
 0x155   :  { %v1204_v12 = vadd.f32 %v1203_v1, %v1202_v2  ;;  %v752_v21 = vadd.f32 %v751_v40, %v732_v44  ;;  %v1240_v24 = vadd.f32 %v1239_v14, %v2103_v62  ;;  %v768_v31 = vstv %s1470_s30 }
 0x156   :  { %1513 = vpush %v1184_v43  ;;  %v1332_v25 = vadd.f32 %v1331_v34, %v1330_v41  ;;  %v1221_v28 = vrot.slane %v1220_v19, 1  ;;  %v788_v32 = vstv %s1472_s5  ;;  %vm851_vm5 = vcmp.eq.s32.totalorder %v1955_v63, 18 }
 0x157   :  { %1515 = vpush %v1204_v12  ;;  %v1241_v7 = vrot.slane %v1240_v24, 1  ;;  %v769_v33 = vsel %vm753_vm1, %v768_v31, 0.0  ;;  %v789_v30 = vsel %vm775_vm0, %v788_v32, 0.0  ;;  %v1369_v35 = vrot.slane %v1368_v20, 4  ;;  %s1478_s8 = spop %1477 }
 0x158   :  { %v1333_v4 = vrot.slane %v1332_v25, 2  ;;  %v1222_v36 = vadd.f32 %v1221_v28, %v1220_v19  ;;  %v770_v62 = vadd.f32 %v769_v33, %v752_v21  ;;  %v1258_v14 = vadd.f32 %v1257_v23, %v1256_v48 }
 0x159   :  { %v1242_v10 = vadd.f32 %v1241_v7, %v1240_v24  ;;  %v1370_v45 = vadd.f32 %v1369_v35, %v1368_v20  ;;  %v1278_v53 = vadd.f32 %v1277_v27, %v2118_v52  ;;  %v806_v15 = vstv %s1474_s6  ;;  %s1480_s9 = spop %1479 }
 0x15a   :  { %1517 = vpush %v1222_v36  ;;  %v790_v37 = vadd.f32 %v789_v30, %v770_v62  ;;  %v1259_v38 = vrot.slane %v1258_v14, 1  ;;  %v807_v29 = vsel %vm791_vm2, %v806_v15, 0.0  ;;  %v826_v5 = vstv %s1476_s7 }
 0x15b   :  { %1519 = vpush %v1242_v10  ;;  %v1371_v42 = vrot.slane %v1370_v45, 2  ;;  %v1279_v46 = vrot.slane %v1278_v53, 1  ;;  %v827_v48 = vsel %vm813_vm3, %v826_v5, 0.0  ;;  %v1296_v49 = vadd.f32 %v1295_v18, %v1294_v13 }
 0x15c   :  { %v1260_v26 = vadd.f32 %v1259_v38, %v1258_v14  ;;  %v808_v51 = vadd.f32 %v807_v29, %v790_v37  ;;  %v1316_v52 = vadd.f32 %v1315_v50, %v2135_v39  ;;  %v1334_v27 = vadd.f32 %v1333_v4, %v1332_v25 }
 0x15d   :  { %v1372_v54 = vadd.f32 %v1371_v42, %v1370_v45  ;;  %v1280_v47 = vadd.f32 %v1279_v46, %v1278_v53  ;;  %v1297_v41 = vrot.slane %v1296_v49, 1  ;;  %v844_v23 = vstv %s1478_s8  ;;  %s1482_s10 = spop %1481 }
 0x15e   :  { %1521 = vpush %v1260_v26  ;;  %v828_v8 = vadd.f32 %v827_v48, %v808_v51  ;;  %v1317_v55 = vrot.slane %v1316_v52, 1  ;;  %v845_v56 = vsel %vm829_vm4, %v844_v23, 0.0  ;;  %v1335_v57 = vrot.slane %v1334_v27, 1  ;;  %s1484_s11 = spop %1483 }
 0x15f   :  { %1523 = vpush %v1280_v47  ;;  %v1298_v58 = vadd.f32 %v1297_v41, %v1296_v49  ;;  %v864_v59 = vstv %s1480_s9  ;;  %v1355_v60 = vrot.slane %v2160_v22, 1  ;;  %v1373_v39 = vrot.slane %v1372_v54, 1 }
 0x160   :  { %v1318_v50 = vadd.f32 %v1317_v55, %v1316_v52  ;;  %v846_v61 = vadd.f32 %v845_v56, %v828_v8  ;;  %v1336_v0 = vadd.f32 %v1335_v57, %v1334_v27  ;;  %v865_v2 = vsel %vm851_vm5, %v864_v59, 0.0 }
 0x161   :  { %1525 = vpush %v1298_v58  ;;  %vm867_vm6 = vcmp.eq.s32.totalorder %v1955_v63, 50  ;;  %v1374_v3 = vadd.f32 %v1373_v39, %v1372_v54  ;;  %v1356_v6 = vadd.f32 %v1355_v60, %v2160_v22  ;;  %v882_v17 = vstv %s1482_s10 }
 0x162   :  { %1527 = vpush %v1318_v50  ;;  %v866_v13 = vadd.f32 %v865_v2, %v846_v61  ;;  %vm889_vm7 = vcmp.eq.s32.totalorder %v1955_v63, 19  ;;  %v883_v11 = vsel %vm867_vm6, %v882_v17, 0.0  ;;  %v902_v16 = vstv %s1484_s11  ;;  %s1486_s12 = spop %1485 }
 0x163   :  { %1529 = vpush %v1336_v0  ;;  %vm905_vm8 = vcmp.eq.s32.totalorder %v1955_v63, 51  ;;  %v903_v44 = vsel %vm889_vm7, %v902_v16, 0.0  ;;  %v920_v18 = vstv %s1486_s12  ;;  %vm927_vm9 = vcmp.eq.s32.totalorder %v1955_v63, 20  ;;  %s1488_s13 = spop %1487 }
 0x164   :  { %1531 = vpush %v1356_v6  ;;  %v884_v1 = vadd.f32 %v883_v11, %v866_v13  ;;  %v921_v43 = vsel %vm905_vm8, %v920_v18, 0.0  ;;  %v940_v34 = vstv %s1488_s13  ;;  %vm943_vm10 = vcmp.eq.s32.totalorder %v1955_v63, 52 }
 0x165   :  { %1533 = vpush %v1374_v3  ;;  %v941_v20 = vsel %vm927_vm9, %v940_v34, 0.0  ;;  %vm965_vm11 = vcmp.eq.s32.totalorder %v1955_v63, 21  ;;  %vm981_vm12 = vcmp.eq.s32.totalorder %v1955_v63, 53  ;;  %vm1003_vm13 = vcmp.eq.s32.totalorder %v1955_v63, 22 }
 0x166   :  { %v904_v40 = vadd.f32 %v903_v44, %v884_v1  ;;  %vm1019_vm14 = vcmp.eq.s32.totalorder %v1955_v63, 54  ;;  %vm1041_vm15 = vcmp.eq.s32.totalorder %v1955_v63, 23  ;;  %vm1057_vm1 = vcmp.eq.s32.totalorder %v1955_v63, 55 }
 0x167   :  { %vm1079_vm0 = vcmp.eq.s32.totalorder %v1955_v63, 24  ;;  %vm1095_vm2 = vcmp.eq.s32.totalorder %v1955_v63, 56  ;;  %vm1117_vm3 = vcmp.eq.s32.totalorder %v1955_v63, 25  ;;  %vm1133_vm4 = vcmp.eq.s32.totalorder %v1955_v63, 57 }
 0x168   :  { %v922_v19 = vadd.f32 %v921_v43, %v904_v40  ;;  %vm1155_vm5 = vcmp.eq.s32.totalorder %v1955_v63, 26  ;;  %vm1171_vm6 = vcmp.eq.s32.totalorder %v1955_v63, 58  ;;  %vm1193_vm7 = vcmp.eq.s32.totalorder %v1955_v63, 27 }
 0x169   :  { %s1490_s14 = spop %1489  ;;  %vm1209_vm8 = vcmp.eq.s32.totalorder %v1955_v63, 59  ;;  %vm1231_vm9 = vcmp.eq.s32.totalorder %v1955_v63, 28 }
 0x16a   :  { %v942_v22 = vadd.f32 %v941_v20, %v922_v19  ;;  %v958_v12 = vstv %s1490_s14  ;;  %s1492_s15 = spop %1491 }
 0x16b   :  { %v959_v21 = vsel %vm943_vm10, %v958_v12, 0.0  ;;  %v978_v24 = vstv %s1492_s15  ;;  %vm1247_vm10 = vcmp.eq.s32.totalorder %v1955_v63, 60 }
 0x16c   :  { %v960_v25 = vadd.f32 %v959_v21, %v942_v22  ;;  %v979_v28 = vsel %vm965_vm11, %v978_v24, 0.0  ;;  %vm1269_vm11 = vcmp.eq.s32.totalorder %v1955_v63, 29 }
 0x16d   :  { %s1494_s16 = spop %1493 }
 0x16e   :  { %v980_v31 = vadd.f32 %v979_v28, %v960_v25  ;;  %v996_v32 = vstv %s1494_s16 }
 0x16f   :  { %v997_v7 = vsel %vm981_vm12, %v996_v32, 0.0  ;;  %s1496_s17 = spop %1495  ;;  %vm1285_vm12 = vcmp.eq.s32.totalorder %v1955_v63, 61 }
 0x170   :  { %v998_v33 = vadd.f32 %v997_v7, %v980_v31  ;;  %v1016_v30 = vstv %s1496_s17  ;;  %v1380_v31 = vstv %s1958_s25  ;;  %v1384_v7 = vstv %s1960_s26 }
 0x171   :  { %v1017_v35 = vsel %vm1003_vm13, %v1016_v30, 0.0  ;;  %vm1307_vm13 = vcmp.eq.s32.totalorder %v1955_v63, 30 }
 0x172   :  { %v1018_v4 = vadd.f32 %v1017_v35, %v998_v33  ;;  %s1498_s18 = spop %1497 }
 0x173   :  { %v1034_v36 = vstv %s1498_s18  ;;  %s1500_s19 = spop %1499 }
 0x174   :  { %v1035_v62 = vsel %vm1019_vm14, %v1034_v36, 0.0  ;;  %v1054_v14 = vstv %s1500_s19  ;;  %vm1323_vm14 = vcmp.eq.s32.totalorder %v1955_v63, 62 }
 0x175   :  { %v1036_v10 = vadd.f32 %v1035_v62, %v1018_v4  ;;  %v1055_v45 = vsel %vm1041_vm15, %v1054_v14, 0.0  ;;  %vm1345_vm15 = vcmp.eq.s32.totalorder %v1955_v63, 31 }
 0x177   :  { %v1056_v53 = vadd.f32 %v1055_v45, %v1036_v10 }
 0x178   :  { %s1502_s20 = spop %1501 }
 0x179   :  { %v1072_v15 = vstv %s1502_s20  ;;  %s1504_s21 = spop %1503 }
 0x17a   :  { %v1073_v37 = vsel %vm1057_vm1, %v1072_v15, 0.0  ;;  %v1092_v38 = vstv %s1504_s21  ;;  %vm1361_vm1 = vcmp.eq.s32.totalorder %v1955_v63, 63 }
 0x17b   :  { %v1074_v29 = vadd.f32 %v1073_v37, %v1056_v53  ;;  %v1093_v5 = vsel %vm1079_vm0, %v1092_v38, 0.0  ;;  %vm1379_vm0 = vcmp.eq.s32.totalorder %v1955_v63, 120 }
 0x17c   :  { %v1381_v30 = vsel %vm1379_vm0, %v1380_v31, 0.0 }
 0x17d   :  { %s1506_s0 = spop %1505  ;;  %v1094_v42 = vadd.f32 %v1093_v5, %v1074_v29 }
 0x17e   :  { %v1110_v46 = vstv %s1506_s0  ;;  %s1508_s22 = spop %1507 }
 0x17f   :  { %v1111_v48 = vsel %vm1095_vm2, %v1110_v46, 0.0  ;;  %v1130_v49 = vstv %s1508_s22  ;;  %vm1383_vm2 = vcmp.eq.s32.totalorder %v1955_v63, 121 }
 0x180   :  { %v1112_v26 = vadd.f32 %v1111_v48, %v1094_v42  ;;  %v1131_v51 = vsel %vm1117_vm3, %v1130_v49, 0.0  ;;  %v1385_v4 = vsel %vm1383_vm2, %v1384_v7, 0.0  ;;  %vm1389_vm3 = vcmp.eq.s32.totalorder %v1595_v9, 0 }
 0x182   :  { %v1132_v52 = vadd.f32 %v1131_v51, %v1112_v26  ;;  %s1510_s23 = spop %1509 }
 0x183   :  { %v1148_v27 = vstv %s1510_s23  ;;  %s1512_s24 = spop %1511 }
 0x184   :  { %v1149_v54 = vsel %vm1133_vm4, %v1148_v27, 0.0  ;;  %v1168_v47 = vstv %s1512_s24 }
 0x185   :  { %v1150_v41 = vadd.f32 %v1149_v54, %v1132_v52  ;;  %v1169_v23 = vsel %vm1155_vm5, %v1168_v47, 0.0 }
 0x187   :  { %s1514_s1 = spop %1513  ;;  %v1170_v8 = vadd.f32 %v1169_v23, %v1150_v41 }
 0x188   :  { %v1186_v55 = vstv %s1514_s1  ;;  %s1516_s2 = spop %1515 }
 0x189   :  { %v1187_v56 = vsel %vm1171_vm6, %v1186_v55, 0.0  ;;  %v1206_v57 = vstv %s1516_s2 }
 0x18a   :  { %v1188_v58 = vadd.f32 %v1187_v56, %v1170_v8  ;;  %v1207_v59 = vsel %vm1193_vm7, %v1206_v57, 0.0 }
 0x18b   :  { %s1518_s3 = spop %1517 }
 0x18c   :  { %v1208_v60 = vadd.f32 %v1207_v59, %v1188_v58  ;;  %v1224_v39 = vstv %s1518_s3  ;;  %s1520_s27 = spop %1519 }
 0x18d   :  { %v1225_v50 = vsel %vm1209_vm8, %v1224_v39, 0.0  ;;  %v1244_v61 = vstv %s1520_s27 }
 0x18e   :  { %v1226_v0 = vadd.f32 %v1225_v50, %v1208_v60  ;;  %v1245_v2 = vsel %vm1231_vm9, %v1244_v61, 0.0 }
 0x18f   :  { %s1522_s28 = spop %1521 }
 0x190   :  { %v1246_v3 = vadd.f32 %v1245_v2, %v1226_v0  ;;  %v1262_v13 = vstv %s1522_s28  ;;  %s1524_s29 = spop %1523 }
 0x191   :  { %v1263_v6 = vsel %vm1247_vm10, %v1262_v13, 0.0  ;;  %v1282_v17 = vstv %s1524_s29 }
 0x192   :  { %v1264_v11 = vadd.f32 %v1263_v6, %v1246_v3  ;;  %s1526_s30 = spop %1525  ;;  %v1283_v16 = vsel %vm1269_vm11, %v1282_v17, 0.0 }
 0x193   :  { %v1300_v1 = vstv %s1526_s30  ;;  %s1528_s5 = spop %1527 }
 0x194   :  { %v1284_v44 = vadd.f32 %v1283_v16, %v1264_v11  ;;  %v1301_v40 = vsel %vm1285_vm12, %v1300_v1, 0.0  ;;  %v1320_v18 = vstv %s1528_s5  ;;  %s1530_s6 = spop %1529 }
 0x195   :  { %v1338_v43 = vstv %s1530_s6  ;;  %s1532_s7 = spop %1531  ;;  %v1321_v19 = vsel %vm1307_vm13, %v1320_v18, 0.0 }
 0x196   :  { %v1302_v34 = vadd.f32 %v1301_v40, %v1284_v44  ;;  %s1534_s8 = spop %1533  ;;  %v1339_v20 = vsel %vm1323_vm14, %v1338_v43, 0.0  ;;  %v1358_v12 = vstv %s1532_s7 }
 0x197   :  { %v1376_v21 = vstv %s1534_s8  ;;  %v1359_v25 = vsel %vm1345_vm15, %v1358_v12, 0.0 }
 0x198   :  { %v1322_v22 = vadd.f32 %v1321_v19, %v1302_v34  ;;  %v1377_v28 = vsel %vm1361_vm1, %v1376_v21, 0.0 }
 0x19a   :  { %v1340_v24 = vadd.f32 %v1339_v20, %v1322_v22 }
 0x19c   :  { %v1360_v32 = vadd.f32 %v1359_v25, %v1340_v24 }
 0x19e   :  { %v1378_v33 = vadd.f32 %v1377_v28, %v1360_v32 }
 0x1a0   :  { %v1382_v35 = vadd.f32 %v1381_v30, %v1378_v33 }
 0x1a2   :  { %v1386_v36 = vadd.f32 %v1385_v4, %v1382_v35 }
 0x1a4   :  { %v1390_v62 = vsel %vm1389_vm3, %v1386_v36, 0.0 }
 0x1a5   :  { %1391 = vst [vmem:[%s2225_s4] sm:$0xff] %v1390_v62 }
 0x1a6   :  { %1396 = vsyncpa [#allocation3], 1 }

</bundles_post_ra>
